<compile_context>
chip_gen: v6e
topology: v6e:2x2x1
jax: 0.10.0
libtpu: 0.0.40
codegen_flags: <defaults>
</compile_context>

<pallas_src>
import functools
import math

import jax
import jax.numpy as jnp
from jax.experimental import pallas as pl
from jax.experimental.pallas import tpu as pltpu


# ----------------------------------------------------------------------------
# Fused Pallas kernel: one bottleneck block per (batch) grid step.
# ----------------------------------------------------------------------------
def _bottleneck_kernel(x_ref, w1_ref, b1_ref, w2_ref, b2_ref, w3_ref, b3_ref,
                       wd_ref, bd_ref, o_ref, h1pad_ref, *, stride):
    # x_ref:    (1, H, W, Cin)        bf16
    # w1_ref:   (Cin, P)  bf16        b1_ref: (1, P)    f32   (BN scale folded)
    # w2_ref:   (9*P, P)  bf16        b2_ref: (1, P)    f32
    # w3_ref:   (P, Cout) bf16        b3_ref: (1, Cout) f32
    # wd_ref:   (Cin, Cout) bf16      bd_ref: (1, Cout) f32   (downsample 1x1)
    # o_ref:    (1, Ho*Wo, Cout)      output dtype (f32)
    # h1pad_ref:(H+2, W+2, P) f32     VMEM scratch (padded conv1 output)
    _, H, W, Cin = x_ref.shape
    _, _, P = h1pad_ref.shape
    Ho = (H - 1) // stride + 1
    Wo = (W - 1) // stride + 1

    # ---- conv1 (1x1) + bn1 + relu ------------------------------------------
    x2 = x_ref[0].reshape(H * W, Cin)                           # (HW, Cin) bf16
    h1 = jnp.dot(x2, w1_ref[...], preferred_element_type=jnp.float32)
    h1 = jnp.maximum(h1 + b1_ref[...], 0.0)                     # f32 (HW, P)

    # ---- zero-pad conv1 output into VMEM scratch (pad=1 for the 3x3) --------
    h1pad_ref[...] = jnp.zeros_like(h1pad_ref)
    h1pad_ref[pl.ds(1, H), pl.ds(1, W), :] = h1.reshape(H, W, P)

    # ---- conv2 (3x3, stride, pad=1) + bn2 + relu: single K = 9*P matmul ------
    taps = []
    for ky in range(3):
        for kx in range(3):
            t = h1pad_ref[pl.ds(ky, H), pl.ds(kx, W), :]        # (H, W, P)
            if stride > 1:
                # stride>1 path uses value-level strided slices (untested here;
                # demo runs stride=1).
                t = t[::stride, ::stride, :]
            taps.append(t.reshape(Ho * Wo, P))
    tap = jnp.concatenate(taps, axis=-1).astype(jnp.bfloat16)   # (HoWo, 9P)
    h2 = jnp.dot(tap, w2_ref[...], preferred_element_type=jnp.float32)
    h2 = jnp.maximum(h2 + b2_ref[...], 0.0).astype(jnp.bfloat16)

    # ---- conv3 (1x1) + bn3 ---------------------------------------------------
    h3 = jnp.dot(h2, w3_ref[...], preferred_element_type=jnp.float32)
    h3 = h3 + b3_ref[...]

    # ---- downsample path: 1x1 conv (stride) + bn (reuses loaded input) -------
    if stride > 1:
        xs = x_ref[0][::stride, ::stride, :].reshape(Ho * Wo, Cin)
    else:
        xs = x2
    res = jnp.dot(xs, wd_ref[...], preferred_element_type=jnp.float32)
    res = res + bd_ref[...]

    # ---- residual add + relu --------------------------------------------------
    o_ref[0] = jnp.maximum(h3 + res, 0.0).astype(o_ref.dtype)


# ----------------------------------------------------------------------------
# BN folding & weight preparation (host-side glue)
# ----------------------------------------------------------------------------
def _fold_bn(bn, eps=1e-5):
    gamma, beta, mean, var = bn
    scale = gamma * jax.lax.rsqrt(var + eps)
    bias = beta - mean * scale
    return scale, bias


def _prep_weights(p):
    """Fold BN scale into conv weights, convert to matmul layout, cast bf16."""
    def fold_1x1(w_oihw, bn):
        s, b = _fold_bn(bn)
        w = jnp.transpose(w_oihw[:, :, 0, 0])                   # (Cin, Cout)
        return (w * s[None, :]).astype(jnp.bfloat16), b.reshape(1, -1)

    def fold_3x3(w_oihw, bn):
        s, b = _fold_bn(bn)
        cout, cin = w_oihw.shape[0], w_oihw.shape[1]
        # tap order ky*3+kx (cross-correlation, matches PyTorch conv)
        w = jnp.transpose(w_oihw, (2, 3, 1, 0)).reshape(9 * cin, cout)
        return (w * s[None, :]).astype(jnp.bfloat16), b.reshape(1, -1)

    w1, b1 = fold_1x1(p["w1"], p["bn1"])
    w2, b2 = fold_3x3(p["w2"], p["bn2"])
    w3, b3 = fold_1x1(p["w3"], p["bn3"])
    wd, bd = fold_1x1(p["wd"], p["bnd"])
    return w1, b1, w2, b2, w3, b3, wd, bd


# ----------------------------------------------------------------------------
# Public forward (NCHW in / NCHW out, like PyTorch)
# ----------------------------------------------------------------------------
def sto_bottleneck_forward(x_nchw, p, *, stride=1):
    x = jnp.transpose(x_nchw, (0, 2, 3, 1)).astype(jnp.bfloat16)   # NHWC bf16
    N, H, W, Cin = x.shape
    w1, b1, w2, b2, w3, b3, wd, bd = _prep_weights(p)
    P = w1.shape[1]
    Cout = w3.shape[1]
    Ho = (H - 1) // stride + 1
    Wo = (W - 1) // stride + 1

    kernel = functools.partial(_bottleneck_kernel, stride=stride)
    full2d = lambda n: (0, 0)

    out = pl.pallas_call(
        kernel,
        out_shape=jax.ShapeDtypeStruct((N, Ho * Wo, Cout), x_nchw.dtype),
        grid_spec=pltpu.PrefetchScalarGridSpec(
            num_scalar_prefetch=0,
            grid=(N,),
            in_specs=[
                pl.BlockSpec((1, H, W, Cin), lambda n: (n, 0, 0, 0)),
                pl.BlockSpec(w1.shape, full2d),
                pl.BlockSpec(b1.shape, full2d),
                pl.BlockSpec(w2.shape, full2d),
                pl.BlockSpec(b2.shape, full2d),
                pl.BlockSpec(w3.shape, full2d),
                pl.BlockSpec(b3.shape, full2d),
                pl.BlockSpec(wd.shape, full2d),
                pl.BlockSpec(bd.shape, full2d),
            ],
            out_specs=pl.BlockSpec((1, Ho * Wo, Cout), lambda n: (n, 0, 0)),
            scratch_shapes=[pltpu.VMEM((H + 2, W + 2, P), jnp.float32)],
        ),
        compiler_params=pltpu.CompilerParams(
            dimension_semantics=("parallel",),
            vmem_limit_bytes=32 * 1024 * 1024),
    )(x, w1, b1, w2, b2, w3, b3, wd, bd)

    out = out.reshape(N, Ho, Wo, Cout)
    return jnp.transpose(out, (0, 3, 1, 2))   # -> NCHW


# ----------------------------------------------------------------------------
# Parameter construction
# ----------------------------------------------------------------------------
def make_params(key, inplanes, planes, expansion=4):
    outplanes = planes * expansion
    ks = jax.random.split(key, 16)

    def conv_w(k, cout, cin, kh, kw):
        fan_in = cin * kh * kw
        return jax.random.normal(k, (cout, cin, kh, kw), jnp.float32) * math.sqrt(2.0 / fan_in)

    def bn_p(k, c):
        k1, k2, k3, k4 = jax.random.split(k, 4)
        gamma = 1.0 + 0.1 * jax.random.normal(k1, (c,), jnp.float32)
        beta = 0.1 * jax.random.normal(k2, (c,), jnp.float32)
        mean = 0.1 * jax.random.normal(k3, (c,), jnp.float32)
        var = 0.5 + jnp.abs(jax.random.normal(k4, (c,), jnp.float32)) * 0.5
        return (gamma, beta, mean, var)

    return dict(
        w1=conv_w(ks[0], planes, inplanes, 1, 1),
        bn1=bn_p(ks[1], planes),
        w2=conv_w(ks[2], planes, planes, 3, 3),
        bn2=bn_p(ks[3], planes),
        w3=conv_w(ks[4], outplanes, planes, 1, 1),
        bn3=bn_p(ks[5], outplanes),
        wd=conv_w(ks[6], outplanes, inplanes, 1, 1),   # downsample 1x1 conv
        bnd=bn_p(ks[7], outplanes),                    # downsample BN
    )


# ----------------------------------------------------------------------------
# Pure-JAX reference (for correctness check)
# ----------------------------------------------------------------------------
def ref_forward(x_nchw, p, *, stride=1):
    x = jnp.transpose(x_nchw, (0, 2, 3, 1))

    def conv(y, w_oihw, s=1, pad=0):
        return jax.lax.conv_general_dilated(
            y, jnp.transpose(w_oihw, (2, 3, 1, 0)),
            window_strides=(s, s),
            padding=[(pad, pad), (pad, pad)],
            dimension_numbers=("NHWC", "HWIO", "NHWC"))

    def bn(y, bnp):
        s, b = _fold_bn(bnp)
        return y * s + b

    out = jax.nn.relu(bn(conv(x, p["w1"]), p["bn1"]))
    out = jax.nn.relu(bn(conv(out, p["w2"], stride, 1), p["bn2"]))
    out = bn(conv(out, p["w3"]), p["bn3"])
    res = bn(conv(x, p["wd"], stride), p["bnd"])
    out = jax.nn.relu(out + res)
    return jnp.transpose(out, (0, 3, 1, 2))


# ----------------------------------------------------------------------------
if __name__ == "__main__":
    key = jax.random.PRNGKey(0)
    k_x, k_p = jax.random.split(key)

    # Small but lane-friendly shapes: batch=2, inplanes=64, planes=32
    # (expansion 4 -> outplanes=128, i.e. a lane-dense output), 16x16 spatial.
    N, inplanes, planes, H, W = 2, 64, 32, 16, 16
    stride = 1
    x = jax.random.normal(k_x, (N, inplanes, H, W), jnp.float32)   # NCHW
    params = make_params(k_p, inplanes, planes)

    out = jax.block_until_ready(sto_bottleneck_forward(x, params, stride=stride))
    ref = jax.block_until_ready(ref_forward(x, params, stride=stride))

    assert out.shape == (N, planes * 4, H // stride, W // stride), out.shape
    max_err = float(jnp.max(jnp.abs(out - ref)))
    assert jnp.allclose(out, ref, rtol=5e-2, atol=1e-1), max_err

    print("KERNEL_OK")
</pallas_src>

<mosaic_0001>
module attributes {stable_mosaic.version = 11 : i64} {
  func.func @_bottleneck_kernel(%arg0: i32, %arg1: memref<1x16x16x64xbf16, #tpu.memory_space<vmem>>, %arg2: memref<64x32xbf16, #tpu.memory_space<vmem>>, %arg3: memref<1x32xf32, #tpu.memory_space<vmem>>, %arg4: memref<288x32xbf16, #tpu.memory_space<vmem>>, %arg5: memref<1x32xf32, #tpu.memory_space<vmem>>, %arg6: memref<32x128xbf16, #tpu.memory_space<vmem>>, %arg7: memref<1x128xf32, #tpu.memory_space<vmem>>, %arg8: memref<64x128xbf16, #tpu.memory_space<vmem>>, %arg9: memref<1x128xf32, #tpu.memory_space<vmem>>, %arg10: memref<1x256x128xf32, #tpu.memory_space<vmem>>, %arg11: memref<18x18x32xf32, #tpu.memory_space<vmem>>) attributes {dimension_semantics = [#tpu.dimension_semantics<parallel>], iteration_bounds = array<i64: 2>, scalar_prefetch = 0 : i64, scratch_operands = 1 : i64, tpu.core_type = #tpu.core_type<tc>, window_params = [{transform_indices = @transform_0, window_bounds = array<i64: 1, 16, 16, 64>}, {pipeline_mode = #tpu.pipeline_mode<synchronous>, transform_indices = @transform_1, window_bounds = array<i64: 64, 32>}, {pipeline_mode = #tpu.pipeline_mode<synchronous>, transform_indices = @transform_2, window_bounds = array<i64: 1, 32>}, {pipeline_mode = #tpu.pipeline_mode<synchronous>, transform_indices = @transform_3, window_bounds = array<i64: 288, 32>}, {pipeline_mode = #tpu.pipeline_mode<synchronous>, transform_indices = @transform_4, window_bounds = array<i64: 1, 32>}, {pipeline_mode = #tpu.pipeline_mode<synchronous>, transform_indices = @transform_5, window_bounds = array<i64: 32, 128>}, {pipeline_mode = #tpu.pipeline_mode<synchronous>, transform_indices = @transform_6, window_bounds = array<i64: 1, 128>}, {pipeline_mode = #tpu.pipeline_mode<synchronous>, transform_indices = @transform_7, window_bounds = array<i64: 64, 128>}, {pipeline_mode = #tpu.pipeline_mode<synchronous>, transform_indices = @transform_8, window_bounds = array<i64: 1, 128>}, {transform_indices = @transform_9, window_bounds = array<i64: 1, 256, 128>}]} {
    %c0 = arith.constant 0 : index
    %c0_0 = arith.constant 0 : index
    %c0_1 = arith.constant 0 : index
    %c0_2 = arith.constant 0 : index
    %0 = vector.load %arg1[%c0, %c0_0, %c0_1, %c0_2] : memref<1x16x16x64xbf16, #tpu.memory_space<vmem>>, vector<1x16x16x64xbf16>
    %1 = vector.shape_cast %0 : vector<1x16x16x64xbf16> to vector<16x16x64xbf16>
    %2 = vector.shape_cast %1 : vector<16x16x64xbf16> to vector<256x64xbf16>
    %c0_3 = arith.constant 0 : index
    %c0_4 = arith.constant 0 : index
    %3 = vector.load %arg2[%c0_3, %c0_4] : memref<64x32xbf16, #tpu.memory_space<vmem>>, vector<64x32xbf16>
    %cst = arith.constant dense<0.000000e+00> : vector<256x32xf32>
    %4 = tpu.matmul %2, %3, %cst {dimension_numbers = #tpu.dot_dimension_numbers<[1], [0], [0], [1], [0, 0, 1, 1], [], []>} : vector<256x64xbf16>, vector<64x32xbf16>, vector<256x32xf32> -> vector<256x32xf32>
    %c0_5 = arith.constant 0 : index
    %c0_6 = arith.constant 0 : index
    %5 = vector.load %arg3[%c0_5, %c0_6] : memref<1x32xf32, #tpu.memory_space<vmem>>, vector<1x32xf32>
    %6 = vector.broadcast %5 : vector<1x32xf32> to vector<256x32xf32>
    %7 = arith.addf %4, %6 : vector<256x32xf32>
    %cst_7 = arith.constant 0.000000e+00 : f32
    %8 = vector.broadcast %cst_7 : f32 to vector<256x32xf32>
    %9 = arith.maximumf %7, %8 : vector<256x32xf32>
    %cst_8 = arith.constant 0.000000e+00 : f32
    %10 = vector.broadcast %cst_8 : f32 to vector<18x18x32xf32>
    %c0_9 = arith.constant 0 : index
    %c0_10 = arith.constant 0 : index
    %c0_11 = arith.constant 0 : index
    %11 = vector.load %arg11[%c0_9, %c0_10, %c0_11] : memref<18x18x32xf32, #tpu.memory_space<vmem>>, vector<18x18x32xf32>
    tpu.vector_store %arg11[%c0_9, %c0_10, %c0_11], %10 {strides = array<i32>} : memref<18x18x32xf32, #tpu.memory_space<vmem>>, vector<18x18x32xf32>,
    %12 = vector.shape_cast %9 : vector<256x32xf32> to vector<16x16x32xf32>
    %c1 = arith.constant 1 : index
    %c1_12 = arith.constant 1 : index
    %c0_13 = arith.constant 0 : index
    %13 = vector.load %arg11[%c1, %c1_12, %c0_13] : memref<18x18x32xf32, #tpu.memory_space<vmem>>, vector<16x16x32xf32>
    tpu.vector_store %arg11[%c1, %c1_12, %c0_13], %12 {strides = array<i32>} : memref<18x18x32xf32, #tpu.memory_space<vmem>>, vector<16x16x32xf32>,
    %c0_14 = arith.constant 0 : index
    %c0_15 = arith.constant 0 : index
    %c0_16 = arith.constant 0 : index
    %14 = vector.load %arg11[%c0_14, %c0_15, %c0_16] : memref<18x18x32xf32, #tpu.memory_space<vmem>>, vector<16x16x32xf32>
    %15 = vector.shape_cast %14 : vector<16x16x32xf32> to vector<256x32xf32>
    %c0_17 = arith.constant 0 : index
    %c1_18 = arith.constant 1 : index
    %c0_19 = arith.constant 0 : index
    %16 = vector.load %arg11[%c0_17, %c1_18, %c0_19] : memref<18x18x32xf32, #tpu.memory_space<vmem>>, vector<16x16x32xf32>
    %17 = vector.shape_cast %16 : vector<16x16x32xf32> to vector<256x32xf32>
    %c0_20 = arith.constant 0 : index
    %c2 = arith.constant 2 : index
    %c0_21 = arith.constant 0 : index
    %18 = vector.load %arg11[%c0_20, %c2, %c0_21] : memref<18x18x32xf32, #tpu.memory_space<vmem>>, vector<16x16x32xf32>
    %19 = vector.shape_cast %18 : vector<16x16x32xf32> to vector<256x32xf32>
    %c1_22 = arith.constant 1 : index
    %c0_23 = arith.constant 0 : index
    %c0_24 = arith.constant 0 : index
    %20 = vector.load %arg11[%c1_22, %c0_23, %c0_24] : memref<18x18x32xf32, #tpu.memory_space<vmem>>, vector<16x16x32xf32>
    %21 = vector.shape_cast %20 : vector<16x16x32xf32> to vector<256x32xf32>
    %c1_25 = arith.constant 1 : index
    %c1_26 = arith.constant 1 : index
    %c0_27 = arith.constant 0 : index
    %22 = vector.load %arg11[%c1_25, %c1_26, %c0_27] : memref<18x18x32xf32, #tpu.memory_space<vmem>>, vector<16x16x32xf32>
    %23 = vector.shape_cast %22 : vector<16x16x32xf32> to vector<256x32xf32>
    %c1_28 = arith.constant 1 : index
    %c2_29 = arith.constant 2 : index
    %c0_30 = arith.constant 0 : index
    %24 = vector.load %arg11[%c1_28, %c2_29, %c0_30] : memref<18x18x32xf32, #tpu.memory_space<vmem>>, vector<16x16x32xf32>
    %25 = vector.shape_cast %24 : vector<16x16x32xf32> to vector<256x32xf32>
    %c2_31 = arith.constant 2 : index
    %c0_32 = arith.constant 0 : index
    %c0_33 = arith.constant 0 : index
    %26 = vector.load %arg11[%c2_31, %c0_32, %c0_33] : memref<18x18x32xf32, #tpu.memory_space<vmem>>, vector<16x16x32xf32>
    %27 = vector.shape_cast %26 : vector<16x16x32xf32> to vector<256x32xf32>
    %c2_34 = arith.constant 2 : index
    %c1_35 = arith.constant 1 : index
    %c0_36 = arith.constant 0 : index
    %28 = vector.load %arg11[%c2_34, %c1_35, %c0_36] : memref<18x18x32xf32, #tpu.memory_space<vmem>>, vector<16x16x32xf32>
    %29 = vector.shape_cast %28 : vector<16x16x32xf32> to vector<256x32xf32>
    %c2_37 = arith.constant 2 : index
    %c2_38 = arith.constant 2 : index
    %c0_39 = arith.constant 0 : index
    %30 = vector.load %arg11[%c2_37, %c2_38, %c0_39] : memref<18x18x32xf32, #tpu.memory_space<vmem>>, vector<16x16x32xf32>
    %31 = vector.shape_cast %30 : vector<16x16x32xf32> to vector<256x32xf32>
    %32 = tpu.concatenate %15, %17, %19, %21, %23, %25, %27, %29, %31 in 1 : vector<256x32xf32>, vector<256x32xf32>, vector<256x32xf32>, vector<256x32xf32>, vector<256x32xf32>, vector<256x32xf32>, vector<256x32xf32>, vector<256x32xf32>, vector<256x32xf32> -> vector<256x288xf32>
    %33 = arith.truncf %32 : vector<256x288xf32> to vector<256x288xbf16>
    %c0_40 = arith.constant 0 : index
    %c0_41 = arith.constant 0 : index
    %34 = vector.load %arg4[%c0_40, %c0_41] : memref<288x32xbf16, #tpu.memory_space<vmem>>, vector<288x32xbf16>
    %cst_42 = arith.constant dense<0.000000e+00> : vector<256x32xf32>
    %35 = tpu.matmul %33, %34, %cst_42 {dimension_numbers = #tpu.dot_dimension_numbers<[1], [0], [0], [1], [0, 0, 1, 1], [], []>} : vector<256x288xbf16>, vector<288x32xbf16>, vector<256x32xf32> -> vector<256x32xf32>
    %c0_43 = arith.constant 0 : index
    %c0_44 = arith.constant 0 : index
    %36 = vector.load %arg5[%c0_43, %c0_44] : memref<1x32xf32, #tpu.memory_space<vmem>>, vector<1x32xf32>
    %37 = vector.broadcast %36 : vector<1x32xf32> to vector<256x32xf32>
    %38 = arith.addf %35, %37 : vector<256x32xf32>
    %cst_45 = arith.constant 0.000000e+00 : f32
    %39 = vector.broadcast %cst_45 : f32 to vector<256x32xf32>
    %40 = arith.maximumf %38, %39 : vector<256x32xf32>
    %41 = arith.truncf %40 : vector<256x32xf32> to vector<256x32xbf16>
    %c0_46 = arith.constant 0 : index
    %c0_47 = arith.constant 0 : index
    %42 = vector.load %arg6[%c0_46, %c0_47] : memref<32x128xbf16, #tpu.memory_space<vmem>>, vector<32x128xbf16>
    %cst_48 = arith.constant dense<0.000000e+00> : vector<256x128xf32>
    %43 = tpu.matmul %41, %42, %cst_48 {dimension_numbers = #tpu.dot_dimension_numbers<[1], [0], [0], [1], [0, 0, 1, 1], [], []>} : vector<256x32xbf16>, vector<32x128xbf16>, vector<256x128xf32> -> vector<256x128xf32>
    %c0_49 = arith.constant 0 : index
    %c0_50 = arith.constant 0 : index
    %44 = vector.load %arg7[%c0_49, %c0_50] : memref<1x128xf32, #tpu.memory_space<vmem>>, vector<1x128xf32>
    %45 = vector.broadcast %44 : vector<1x128xf32> to vector<256x128xf32>
    %46 = arith.addf %43, %45 : vector<256x128xf32>
    %c0_51 = arith.constant 0 : index
    %c0_52 = arith.constant 0 : index
    %47 = vector.load %arg8[%c0_51, %c0_52] : memref<64x128xbf16, #tpu.memory_space<vmem>>, vector<64x128xbf16>
    %cst_53 = arith.constant dense<0.000000e+00> : vector<256x128xf32>
    %48 = tpu.matmul %2, %47, %cst_53 {dimension_numbers = #tpu.dot_dimension_numbers<[1], [0], [0], [1], [0, 0, 1, 1], [], []>} : vector<256x64xbf16>, vector<64x128xbf16>, vector<256x128xf32> -> vector<256x128xf32>
    %c0_54 = arith.constant 0 : index
    %c0_55 = arith.constant 0 : index
    %49 = vector.load %arg9[%c0_54, %c0_55] : memref<1x128xf32, #tpu.memory_space<vmem>>, vector<1x128xf32>
    %50 = vector.broadcast %49 : vector<1x128xf32> to vector<256x128xf32>
    %51 = arith.addf %48, %50 : vector<256x128xf32>
    %52 = arith.addf %46, %51 : vector<256x128xf32>
    %cst_56 = arith.constant 0.000000e+00 : f32
    %53 = vector.broadcast %cst_56 : f32 to vector<256x128xf32>
    %54 = arith.maximumf %52, %53 : vector<256x128xf32>
    %c0_57 = arith.constant 0 : index
    %c0_58 = arith.constant 0 : index
    %c0_59 = arith.constant 0 : index
    %55 = vector.load %arg10[%c0_57, %c0_58, %c0_59] : memref<1x256x128xf32, #tpu.memory_space<vmem>>, vector<1x256x128xf32>
    %56 = vector.shape_cast %55 : vector<1x256x128xf32> to vector<256x128xf32>
    %57 = vector.shape_cast %54 : vector<256x128xf32> to vector<1x256x128xf32>
    tpu.vector_store %arg10[%c0_57, %c0_58, %c0_59], %57 {strides = array<i32>} : memref<1x256x128xf32, #tpu.memory_space<vmem>>, vector<1x256x128xf32>,
    return
  }
  func.func @transform_0(%arg0: i32) -> (i32, i32, i32, i32) {
    %c0_i32 = arith.constant 0 : i32
    %c0_i32_0 = arith.constant 0 : i32
    %c0_i32_1 = arith.constant 0 : i32
    %c0_i32_2 = arith.constant 0 : i32
    return %arg0, %c0_i32, %c0_i32_0, %c0_i32_1 : i32, i32, i32, i32
  }
  func.func @transform_1(%arg0: i32) -> (i32, i32) {
    %c0_i32 = arith.constant 0 : i32
    %c0_i32_0 = arith.constant 0 : i32
    %c0_i32_1 = arith.constant 0 : i32
    return %c0_i32, %c0_i32_0 : i32, i32
  }
  func.func @transform_2(%arg0: i32) -> (i32, i32) {
    %c0_i32 = arith.constant 0 : i32
    %c0_i32_0 = arith.constant 0 : i32
    %c0_i32_1 = arith.constant 0 : i32
    return %c0_i32, %c0_i32_0 : i32, i32
  }
  func.func @transform_3(%arg0: i32) -> (i32, i32) {
    %c0_i32 = arith.constant 0 : i32
    %c0_i32_0 = arith.constant 0 : i32
    %c0_i32_1 = arith.constant 0 : i32
    return %c0_i32, %c0_i32_0 : i32, i32
  }
  func.func @transform_4(%arg0: i32) -> (i32, i32) {
    %c0_i32 = arith.constant 0 : i32
    %c0_i32_0 = arith.constant 0 : i32
    %c0_i32_1 = arith.constant 0 : i32
    return %c0_i32, %c0_i32_0 : i32, i32
  }
  func.func @transform_5(%arg0: i32) -> (i32, i32) {
    %c0_i32 = arith.constant 0 : i32
    %c0_i32_0 = arith.constant 0 : i32
    %c0_i32_1 = arith.constant 0 : i32
    return %c0_i32, %c0_i32_0 : i32, i32
  }
  func.func @transform_6(%arg0: i32) -> (i32, i32) {
    %c0_i32 = arith.constant 0 : i32
    %c0_i32_0 = arith.constant 0 : i32
    %c0_i32_1 = arith.constant 0 : i32
    return %c0_i32, %c0_i32_0 : i32, i32
  }
  func.func @transform_7(%arg0: i32) -> (i32, i32) {
    %c0_i32 = arith.constant 0 : i32
    %c0_i32_0 = arith.constant 0 : i32
    %c0_i32_1 = arith.constant 0 : i32
    return %c0_i32, %c0_i32_0 : i32, i32
  }
  func.func @transform_8(%arg0: i32) -> (i32, i32) {
    %c0_i32 = arith.constant 0 : i32
    %c0_i32_0 = arith.constant 0 : i32
    %c0_i32_1 = arith.constant 0 : i32
    return %c0_i32, %c0_i32_0 : i32, i32
  }
  func.func @transform_9(%arg0: i32) -> (i32, i32, i32) {
    %c0_i32 = arith.constant 0 : i32
    %c0_i32_0 = arith.constant 0 : i32
    %c0_i32_1 = arith.constant 0 : i32
    return %arg0, %c0_i32, %c0_i32_0 : i32, i32, i32
  }
}

</mosaic_0001>

<bundles_post_ra>
// kernel: tpu_custom_call.1
= control target key start
LH: loop header
LB: loop body
LE: loop exit
PB: predicated region body
PF: predicated region fallthrough
CT: control target
= control target key end

     0   :  { %14 = vsyncpa [#allocation4], 0  ;;  %s5799_s0 = inlined_call_operand.hbm [shape: bf16[2,16,16,64], index: 0, kind: input, shape index: {}]   ;;  %s5800_s1 = inlined_call_operand.vmem [shape: bf16[64,32], index: 1, kind: input, shape index: {}]   ;;  %s5801_s2 = inlined_call_operand.vmem [shape: f32[1,32], index: 2, kind: input, shape index: {}]   ;;  %s5802_s3 = inlined_call_operand.vmem [shape: bf16[288,32], index: 3, kind: input, shape index: {}]   ;;  %s5803_s4 = inlined_call_operand.vmem [shape: f32[1,32], index: 4, kind: input, shape index: {}]   ;;  %s5804_s5 = inlined_call_operand.vmem [shape: bf16[32,128], index: 5, kind: input, shape index: {}]   ;;  %s5805_s6 = inlined_call_operand.vmem [shape: f32[1,128], index: 6, kind: input, shape index: {}]   ;;  %s5806_s7 = inlined_call_operand.vmem [shape: bf16[64,128], index: 7, kind: input, shape index: {}]   ;;  %s5807_s8 = inlined_call_operand.vmem [shape: f32[1,128], index: 8, kind: input, shape index: {}]   ;;  %s5808_s9 = inlined_call_operand.hbm [shape: f32[2,256,128], index: 9, kind: output, shape index: {}]  }
   0x1   :  { %16 = vsyncpa [#allocation4 + $0x1], 0 }
   0x2   :  { %17 = vsyncpa [#allocation5], 0 }
   0x3   :  { %19 = vsyncpa [#allocation5 + $0x1], 0  ;;  %s4554_s30 = smov 0   ;;  %s4556_s10 = smov 0  }
   0x4   :  { %s4558_s11 = smov 0   ;;  %s4560_s12 = smov 0  }
   0x5 LB: > { %5812 = sst [smem:[#allocation9_spill]] %s4488_s11  ;;  %s4575_s13 = sadd.s32 4294967295, %s4492_s12   ;;  %s4492_s12 = sphi %s4560_s12, %s5827_s12   ;;  %s4488_s11 = sphi %s4558_s11, %s5824_s11   ;;  %s4484_s10 = sphi %s4556_s10, %s5826_s10   ;;  %s4480_s30 = sphi %s4554_s30, %s5825_s30  }
   0x6   : > { %s3316_s14 = sadd.s32 4294967294, %s4492_s12   ;;  %s4579_s15 = sadd.s32 1, %s4492_s12  }
   0x7   : > { %s32_s16 = sadd.s32 1, %s4488_s11  ;;  %s29_s17 = ssub.s32 %s4492_s12, %s4579_s15 }
   0x8   : > { %p39_p0 = scmp.ne.s32.totalorder %s4488_s11, %s4484_s10  ;;  %p30_p1 = scmp.eq.s32.totalorder %s29_s17, 0 }
   0x9   : > { %p40_p2 = scmp.eq.s32.totalorder %s4492_s12, 0  ;;  %p45_p3 = scmp.ne.s32.totalorder %s4484_s10, %s4480_s30 }
   0xa   : > { %p46_p4 = scmp.eq.s32.totalorder %s4575_s13, 0  ;;  %p237_p7 = scmp.eq.s32.totalorder %s4575_s13, 1 }
   0xb   : > { %s4591_s18 = scalar_select %p30_p1, %s4488_s11, %s32_s16  }
   0xc   : > { %p4593_p5 = por %p40_p2, %p39_p0  ;;  %p4597_p6 = por %p46_p4, %p45_p3 }
   0xd   : > { %5813 = sst [smem:[#allocation10_spill]] %s4591_s18  ;;  %p243_p8 = scmp.eq.s32.totalorder %s3316_s14, 1 }
   0xe   : > { %s5815_s20 = scalar_select %p4597_p6, 1, 0 }
   0xf   : > { %p3812_p10 = scmp.lt.s32.totalorder %s4492_s12, 2  ;;  %p4604_p11 = por %p237_p7, %p39_p0 }
  0x10   : > { %p4608_p12 = por %p243_p8, %p45_p3  ;;  %s287_s23 = sand.u32 1, %s4488_s11  }
  0x11   : > { %s5816_s21 = scalar_select %p4604_p11, 1, 0 }
  0x12   : > { %s5817_s22 = scalar_select %p4608_p12, 1, 0 }
  0x13   : > { %s3442_s24 = sshll.u32 %s4492_s12, 11  ;;  %s3319_s25 = sshll.u32 %s287_s23, 7 }
  0x14   : > { %s4617_s28 = scalar_lea.hbm %s5799_s0, %s3442_s24  ;;  %s291_s29 = scalar_lea.vmem [#allocation3], %s3319_s25 }
  0x15   : > { %s298_s14 = sshll.u32 %s291_s29, 4  ;;  %p4621_p13 = pnand %p3812_p10, %p4593_p5  ;;  %s4625_s14 = int_to_ptr.vmem [resolvable:$true] %s298_s14 }
  0x16   : > { %s4627_s17 = scalar_lea.sflag [#allocation4], %s287_s23  ;;  %s4400_s18 = scalar_lea.hbm %s4617_s28, 2048 }
  0x17   : > { %p4401_p0 = scmp.ne.s32.totalorder %s4617_s28, %s4400_s18  ;;  %p4402_p1 = pneg %p4621_p13 }
  0x18   : > { %s4405_s25 = scalar_lea.hbm %s5799_s0, 4096  ;;  %p4406_p4 = scmp.lt.s32.totalorder %s4617_s28, %s5799_s0 }
  0x19   : > { %p4403_p2 = pnand %p4402_p1, %p4401_p0  ;;  %p4407_p5 = scmp.lt.s32.totalorder %s4405_s25, %s4400_s18 }
  0x1b   : > { %p4404_p3 = pneg %p4403_p2  ;;  %p4408_p7 = por %p4407_p5, %p4406_p4 }
  0x1d   : > { %p4409_p8 = pnand %p4408_p7, %p4404_p3 }
  0x1f   : > { %4412 = shalt.err (!%p4409_p8)
}
  0x20   : > { %s4413_s23 = scalar_lea.vmem %s4625_s14, 2048  ;;  %s4494_s29 = smov [#allocation3]  }
  0x21   : > { %p4414_p10 = scmp.ne.s32.totalorder %s4625_s14, %s4413_s23  ;;  %s4418_s11 = sshll.u32 %s4494_s29, 4  ;;  %s4419_s11 = int_to_ptr.vmem [resolvable:$false] %s4418_s11 }
  0x22   : > { %s4420_s24 = scalar_lea.vmem %s4419_s11, 4096  ;;  %p4421_p2 = scmp.lt.s32.totalorder %s4625_s14, %s4419_s11 }
  0x23   : > { %p4416_p9 = pnand %p4414_p10, %p4402_p1  ;;  %p4422_p12 = scmp.lt.s32.totalorder %s4420_s24, %s4413_s23 }
  0x25   : > { %p4417_p0 = pneg %p4416_p9  ;;  %p4423_p11 = por %p4422_p12, %p4421_p2 }
  0x27   : > { %p4424_p6 = pnand %p4423_p11, %p4417_p0 }
  0x29   : > { %4427 = shalt.err (!%p4424_p6)
}
  0x2a   : > { %s4495_s18 = smov 64   ;;  %s4496_s26 = smov 4  }
  0x2b   : > { %3807 = dma.hbm_to_vmem [thread:$0]  (!%p4621_p13), %s4617_s28, 2048, %s4625_s14, %s4627_s17, %s4495_s18, %s4495_s18, %s4496_s26  }
  0x2c   : > { %p3322_p9 = scmp.ge.s32.totalorder %s4492_s12, 1  ;;  %p306_p1 = scmp.lt.s32.totalorder %s4492_s12, 3 }
  0x2e   : > { %p307_p3 = pnand %p3322_p9, %p306_p1 }
  0x2f   : > { %s4651_s11 = sand.u32 (!%p307_p3), 1, %s4484_s10   ;;  %p5819_p6 = scmp.ne.s32.totalorder (!%p307_p3), %s5815_s20, 0 }
  0x30   : > { %310 = sbr.rel (%p307_p3) target bundleno = 1019 (0x3fb), region = 56  ;;  %s3323_s25 = sshll.u32 (!%p307_p3), %s4651_s11, 7 }
  0x31   : > { %s313_s19 = scalar_lea.sflag (!%p307_p3), [#allocation4], %s4651_s11  ;;  %s4655_s27 = scalar_lea.vmem (!%p307_p3), [#allocation3], %s3323_s25 }
  0x35   : > { %4471 = dma.done.wait (%p5819_p6), %s313_s19, 2048  }
  0x36   : > { %4473 = vsyncadd (%p5819_p6), %s313_s19, 4294965248  ;;  %v4334_v0 = vld [vmem:[%s5800_s1 + $0x18] sm:$0xff]   ;;  %v4335_v1 = vld [vmem:[%s5800_s1 + $0x10] sm:$0xff]   ;;  %vm503_vm0 = vcmask 523264   ;;  %vm745_vm1 = vcmask 261120   ;;  %vm748_vm2 = vcmask 254976  }
  0x37   : > { %3632 = vmatprep.subr.bf16.mxu0 %v4334_v0  ;;  %v4336_v2 = vld [vmem:[%s5800_s1 + $0x8] sm:$0xff]   ;;  %v4338_v3 = vld [vmem:[%s4655_s27] sm:$0xff]   ;;  %v4337_v4 = vld [vmem:[%s5800_s1] sm:$0xff]   ;;  %v4497_v20 = vmov 0.0   ;;  %s4498_s18 = smov 32   ;;  %s4499_s26 = smov 64  }
  0x38   : > { %3633 = vmatpush3.bf16.msra.mxu0 %v4334_v0  ;;  %3640 = vmatprep.mubr.msk.bf16.mxu0 %vm503_vm0, %v4338_v3  ;;  %v4339_v5 = vld [vmem:[%s4655_s27 + $0x8] sm:$0xff]   ;;  %v4340_v6 = vld [vmem:[%s4655_s27 + $0x10] sm:$0xff]   ;;  %v4341_v7 = vld [vmem:[%s4655_s27 + $0x18] sm:$0xff]   ;;  %753 = vst.msk [vmem:[#allocation2 + $0x30] sm:$0xff] %vm745_vm1, %v4497_v20  ;;  %s4500_s16 = smov 96   ;;  %vm1955_vm3 = vcmask 785408  }
  0x39   : > { %3634 = vmatprep.subr.bf16.mxu0 %v4335_v1  ;;  %v4342_v8 = vld [vmem:[%s4655_s27 + $0x20] sm:$0xff]   ;;  %v4343_v9 = vld [vmem:[%s4655_s27 + $0x28] sm:$0xff]   ;;  %v4344_v10 = vld [vmem:[%s4655_s27 + $0x30] sm:$0xff]   ;;  %754 = vst.msk [vmem:[#allocation2 + $0x38] sm:$0xff] %vm745_vm1, %v4497_v20  ;;  %s3324_s28 = sshll.u32 %s4651_s11, 8  ;;  %s3443_s17 = sshll.u32 %s4575_s13, 12 }
  0x3a   : > { %v4345_v11 = vld [vmem:[%s4655_s27 + $0x38] sm:$0xff]   ;;  %v4346_v12 = vld [vmem:[%s4655_s27 + $0x40] sm:$0xff]   ;;  %v4347_v13 = vld [vmem:[%s4655_s27 + $0x48] sm:$0xff]   ;;  %746 = vst.msk [vmem:[#allocation2] sm:$0xff] %vm745_vm1, %v4497_v20  ;;  %s5658_s14 = scalar_lea.vmem [#allocation6], %s3324_s28  ;;  %s5752_s24 = scalar_lea.hbm %s5808_s9, %s3443_s17 }
  0x3b   : > { %v4348_v14 = vld [vmem:[%s4655_s27 + $0x50] sm:$0xff]   ;;  %v4349_v15 = vld [vmem:[%s4655_s27 + $0x58] sm:$0xff]   ;;  %v4350_v16 = vld [vmem:[%s4655_s27 + $0x60] sm:$0xff]   ;;  %747 = vst.msk [vmem:[#allocation2 + $0x8] sm:$0xff] %vm745_vm1, %v4497_v20  ;;  %s3243_s23 = sshll.u32 %s5658_s14, 4  ;;  %p5820_p12 = scmp.ne.s32.totalorder %s5816_s21, 0  ;;  %s5754_s23 = int_to_ptr.vmem [resolvable:$true] %s3243_s23 }
  0x3c   : > { %3635 = vmatpush3.bf16.msra.mxu0 %v4335_v1  ;;  %v4351_v17 = vld [vmem:[%s4655_s27 + $0x68] sm:$0xff]   ;;  %v4352_v18 = vld [vmem:[%s4655_s27 + $0x70] sm:$0xff]   ;;  %v4353_v19 = vld [vmem:[%s4655_s27 + $0x78] sm:$0xff]   ;;  %750 = vst.msk [vmem:[#allocation2 + $0x18] sm:$0xff] %vm745_vm1, %v4497_v20  ;;  %s4501_s13 = smov [#allocation6]  }
  0x3d   : > { %3636 = vmatprep.subr.bf16.mxu0 %v4336_v2  ;;  %751 = vst.msk [vmem:[#allocation2 + $0x20] sm:$0xff] %vm745_vm1, %v4497_v20  ;;  %756 = vst.msk [vmem:[#allocation2 + $0x48] sm:$0xff] %vm745_vm1, %v4497_v20  ;;  %v4354_v27 = vld [vmem:[%s5802_s3 + $0x78] sm:$0xff]   ;;  %v4770_v29 = vld [vmem:[%s5801_s2] ss:$0 sm:$0xff] }
  0x3e   : > { %757 = vst.msk [vmem:[#allocation2 + $0x50] sm:$0xff] %vm745_vm1, %v4497_v20  ;;  %759 = vst.msk [vmem:[#allocation2 + $0x60] sm:$0xff] %vm745_vm1, %v4497_v20  ;;  %v4355_v28 = vld [vmem:[%s5802_s3 + $0x38] sm:$0xff]   ;;  %3784 = vmatprep.subr.bf16.mxu1 %v4354_v27  ;;  %v4356_v30 = vld [vmem:[%s5802_s3 + $0x70] sm:$0xff]  }
  0x3f   : > { %760 = vst.msk [vmem:[#allocation2 + $0x68] sm:$0xff] %vm745_vm1, %v4497_v20  ;;  %762 = vst.msk [vmem:[#allocation2 + $0x78] sm:$0xff] %vm745_vm1, %v4497_v20  ;;  %3792 = vmatpush3.bf16.msra.mxu1 %v4355_v28  ;;  %v4357_v31 = vld [vmem:[%s5802_s3 + $0x30] sm:$0xff]   ;;  %v4358_v40 = vld [vmem:[%s5802_s3 + $0x68] sm:$0xff]  }
  0x40   : > { %3637 = vmatpush3.bf16.msra.mxu0 %v4336_v2  ;;  %763 = vst.msk [vmem:[#allocation2 + $0x80] sm:$0xff] %vm745_vm1, %v4497_v20  ;;  %765 = vst.msk [vmem:[#allocation2 + $0x90] sm:$0xff] %vm745_vm1, %v4497_v20  ;;  %3785 = vmatprep.subr.bf16.mxu1 %v4356_v30  ;;  %v4359_v42 = vld [vmem:[%s5802_s3 + $0x28] sm:$0xff]   ;;  %v4360_v48 = vld [vmem:[%s5802_s3 + $0x60] sm:$0xff]  }
  0x41   : > { %3638 = vmatprep.subr.bf16.mxu0 %v4337_v4  ;;  %766 = vst.msk [vmem:[#allocation2 + $0x98] sm:$0xff] %vm745_vm1, %v4497_v20  ;;  %768 = vst.msk [vmem:[#allocation2 + $0xa8] sm:$0xff] %vm745_vm1, %v4497_v20  ;;  %v4361_v50 = vld [vmem:[%s5802_s3 + $0x20] sm:$0xff]   ;;  %v4362_v56 = vld [vmem:[%s5802_s3 + $0x58] sm:$0xff]  }
  0x42   : > { %769 = vst.msk [vmem:[#allocation2 + $0xb0] sm:$0xff] %vm745_vm1, %v4497_v20  ;;  %771 = vst.msk [vmem:[#allocation2 + $0xc0] sm:$0xff] %vm745_vm1, %v4497_v20  ;;  %v866_v21 = vld [vmem:[#allocation2 + $0x1] sm:$0xff]  ;;  %v4363_v58 = vld [vmem:[%s5802_s3 + $0x18] sm:$0xff]  }
  0x43   : > { %772 = vst.msk [vmem:[#allocation2 + $0xc8] sm:$0xff] %vm745_vm1, %v4497_v20  ;;  %774 = vst.msk [vmem:[#allocation2 + $0xd8] sm:$0xff] %vm745_vm1, %v4497_v20  ;;  %v898_v24 = vld [vmem:[#allocation2 + $0x2] sm:$0xff]  ;;  %3793 = vmatpush3.bf16.msra.mxu1 %v4357_v31 }
  0x44   : > { %3639 = vmatpush3.bf16.msra.mxu0 %v4337_v4  ;;  %775 = vst.msk [vmem:[#allocation2 + $0xe0] sm:$0xff] %vm745_vm1, %v4497_v20  ;;  %777 = vst.msk [vmem:[#allocation2 + $0xf0] sm:$0xff] %vm745_vm1, %v4497_v20  ;;  %3786 = vmatprep.subr.bf16.mxu1 %v4358_v40 }
  0x45   : > { %778 = vst.msk [vmem:[#allocation2 + $0xf8] sm:$0xff] %vm745_vm1, %v4497_v20  ;;  %780 = vst.msk [vmem:[#allocation2 + $0x108] sm:$0xff] %vm745_vm1, %v4497_v20  ;;  %3464 = vmatprep.subr.bf16.mxu0 %v4354_v27 }
  0x46   : > { %781 = vst.msk [vmem:[#allocation2 + $0x110] sm:$0xff] %vm745_vm1, %v4497_v20  ;;  %783 = vst.msk [vmem:[#allocation2 + $0x120] sm:$0xff] %vm745_vm1, %v4497_v20 }
  0x47   : > { %3641 = vmatmul.mubr.msk.bf16.vlgmr.msra.gmra.mxu0 %vm503_vm0, %v4339_v5  ;;  %784 = vst.msk [vmem:[#allocation2 + $0x128] sm:$0xff] %vm745_vm1, %v4497_v20  ;;  %786 = vst.msk [vmem:[#allocation2 + $0x138] sm:$0xff] %vm745_vm1, %v4497_v20  ;;  %3794 = vmatpush3.bf16.msra.mxu1 %v4359_v42 }
  0x48   : > { %3644 = vmatprep.mubr.msk.bf16.mxu0 %vm503_vm0, %v4340_v6  ;;  %787 = vst.msk [vmem:[#allocation2 + $0x140] sm:$0xff] %vm745_vm1, %v4497_v20  ;;  %789 = vst.msk [vmem:[#allocation2 + $0x150] sm:$0xff] %vm745_vm1, %v4497_v20  ;;  %3465 = vmatpush3.bf16.msra.mxu0 %v4355_v28  ;;  %v4364_v6 = vld [vmem:[%s5802_s3 + $0x50] sm:$0xff]  }
  0x49   : > { %790 = vst.msk [vmem:[#allocation2 + $0x158] sm:$0xff] %vm745_vm1, %v4497_v20  ;;  %792 = vst.msk [vmem:[#allocation2 + $0x168] sm:$0xff] %vm745_vm1, %v4497_v20  ;;  %3466 = vmatprep.subr.bf16.mxu0 %v4356_v30  ;;  %3787 = vmatprep.subr.bf16.mxu1 %v4360_v48 }
  0x4a   : > { %793 = vst.msk [vmem:[#allocation2 + $0x170] sm:$0xff] %vm745_vm1, %v4497_v20  ;;  %795 = vst.msk [vmem:[#allocation2 + $0x180] sm:$0xff] %vm745_vm1, %v4497_v20 }
  0x4b   : > { %796 = vst.msk [vmem:[#allocation2 + $0x188] sm:$0xff] %vm745_vm1, %v4497_v20  ;;  %798 = vst.msk [vmem:[#allocation2 + $0x198] sm:$0xff] %vm745_vm1, %v4497_v20  ;;  %3795 = vmatpush3.bf16.msra.mxu1 %v4361_v50 }
  0x4c   : > { %799 = vst.msk [vmem:[#allocation2 + $0x1a0] sm:$0xff] %vm745_vm1, %v4497_v20  ;;  %3467 = vmatpush3.bf16.msra.mxu0 %v4357_v31  ;;  %3788 = vmatprep.subr.bf16.mxu1 %v4362_v56 }
  0x4d   : > { %755 = vst.msk [vmem:[#allocation2 + $0x40] sm:$0x3] %vm748_vm2, %v4497_v20  ;;  %749 = vst.msk [vmem:[#allocation2 + $0x10] sm:$0x3] %vm748_vm2, %v4497_v20  ;;  %3468 = vmatprep.subr.bf16.mxu0 %v4358_v40 }
  0x4e   : > { %752 = vst.msk [vmem:[#allocation2 + $0x28] sm:$0x3] %vm748_vm2, %v4497_v20  ;;  %758 = vst.msk [vmem:[#allocation2 + $0x58] sm:$0x3] %vm748_vm2, %v4497_v20 }
  0x4f   : > { %3645 = vmatmul.mubr.msk.bf16.gmra.mxu0 %vm503_vm0, %v4341_v7  ;;  %761 = vst.msk [vmem:[#allocation2 + $0x70] sm:$0x3] %vm748_vm2, %v4497_v20  ;;  %764 = vst.msk [vmem:[#allocation2 + $0x88] sm:$0x3] %vm748_vm2, %v4497_v20  ;;  %3796 = vmatpush3.bf16.msra.mxu1 %v4363_v58 }
  0x50   : > { %3648 = vmatprep.mubr.msk.bf16.mxu0 %vm503_vm0, %v4342_v8  ;;  %767 = vst.msk [vmem:[#allocation2 + $0xa0] sm:$0x3] %vm748_vm2, %v4497_v20  ;;  %770 = vst.msk [vmem:[#allocation2 + $0xb8] sm:$0x3] %vm748_vm2, %v4497_v20  ;;  %3469 = vmatpush3.bf16.msra.mxu0 %v4359_v42 }
  0x51   : > { %773 = vst.msk [vmem:[#allocation2 + $0xd0] sm:$0x3] %vm748_vm2, %v4497_v20  ;;  %776 = vst.msk [vmem:[#allocation2 + $0xe8] sm:$0x3] %vm748_vm2, %v4497_v20  ;;  %3470 = vmatprep.subr.bf16.mxu0 %v4360_v48  ;;  %3789 = vmatprep.subr.bf16.mxu1 %v4364_v6 }
  0x52   : > { %779 = vst.msk [vmem:[#allocation2 + $0x100] sm:$0x3] %vm748_vm2, %v4497_v20  ;;  %782 = vst.msk [vmem:[#allocation2 + $0x118] sm:$0x3] %vm748_vm2, %v4497_v20 }
  0x53   : > { %785 = vst.msk [vmem:[#allocation2 + $0x130] sm:$0x3] %vm748_vm2, %v4497_v20  ;;  %788 = vst.msk [vmem:[#allocation2 + $0x148] sm:$0x3] %vm748_vm2, %v4497_v20 }
  0x54   : > { %791 = vst.msk [vmem:[#allocation2 + $0x160] sm:$0x3] %vm748_vm2, %v4497_v20  ;;  %794 = vst.msk [vmem:[#allocation2 + $0x178] sm:$0x3] %vm748_vm2, %v4497_v20  ;;  %v867_v22 = vld [vmem:[#allocation2 + $0x9] sm:$0xff]  ;;  %3471 = vmatpush3.bf16.msra.mxu0 %v4361_v50 }
  0x55   : > { %797 = vst.msk [vmem:[#allocation2 + $0x190] sm:$0x3] %vm748_vm2, %v4497_v20  ;;  %800 = vst.msk [vmem:[#allocation2 + $0x1a8] sm:$0x3] %vm748_vm2, %v4497_v20  ;;  %v3854_v23 = vpack.i.bf16 %v867_v22, %v866_v21  ;;  %v899_v25 = vld [vmem:[#allocation2 + $0xa] sm:$0xff]  ;;  %3472 = vmatprep.subr.bf16.mxu0 %v4362_v56 }
  0x56   : > { %v3859_v26 = vpack.i.bf16 %v899_v25, %v898_v24 }
  0x57   : > { %3649 = vmatmul.mubr.msk.bf16.gmra.mxu0 %vm503_vm0, %v4343_v9  ;;  %3855 = vrot.lane.b32.xlu1 %v3854_v23, %s4498_s18 }
  0x58   : > { %3652 = vmatprep.mubr.msk.bf16.mxu0 %vm503_vm0, %v4344_v10  ;;  %3473 = vmatpush3.bf16.msra.mxu0 %v4363_v58 }
  0x59   : > { %3474 = vmatprep.subr.bf16.mxu0 %v4364_v6 }
  0x5b   : > { %3860 = vrot.lane.b32.xlu1 %v3859_v26, %s4499_s26  ;;  %v4368_v26 = vld [vmem:[%s5802_s3 + $0x40] sm:$0xff]  }
  0x5f   : > { %3653 = vmatmul.mubr.msk.bf16.gmra.mxu0 %vm503_vm0, %v4345_v11  ;;  %v4365_v11 = vld [vmem:[%s5802_s3 + $0x10] sm:$0xff]  }
  0x60   : > { %3656 = vmatprep.mubr.msk.bf16.mxu0 %vm503_vm0, %v4346_v12  ;;  %3475 = vmatpush3.bf16.msra.mxu0 %v4365_v11 }
  0x61   : > { %3797 = vmatpush3.bf16.msra.mxu1 %v4365_v11 }
  0x67   : > { %3657 = vmatmul.mubr.msk.bf16.gmra.mxu0 %vm503_vm0, %v4347_v13 }
  0x68   : > { %3660 = vmatprep.mubr.msk.bf16.mxu0 %vm503_vm0, %v4348_v14 }
  0x6f   : > { %3661 = vmatmul.mubr.msk.bf16.gmra.mxu0 %vm503_vm0, %v4349_v15 }
  0x70   : > { %3664 = vmatprep.mubr.msk.bf16.mxu0 %vm503_vm0, %v4350_v16 }
  0x77   : > { %3665 = vmatmul.mubr.msk.bf16.gmra.mxu0 %vm503_vm0, %v4351_v17  ;;  %v4366_v17 = vld [vmem:[%s5802_s3 + $0x48] sm:$0xff]  }
  0x78   : > { %3668 = vmatprep.mubr.msk.bf16.mxu0 %vm503_vm0, %v4352_v18  ;;  %3476 = vmatprep.subr.bf16.mxu0 %v4366_v17 }
  0x79   : > { %3790 = vmatprep.subr.bf16.mxu1 %v4366_v17 }
  0x7f   : > { %3669 = vmatmul.mubr.msk.bf16.gmra.mxu0 %vm503_vm0, %v4353_v19  ;;  %v4367_v19 = vld [vmem:[%s5802_s3 + $0x8] sm:$0xff]  }
  0x80   : > { %3477 = vmatpush3.bf16.msra.mxu0 %v4367_v19  ;;  %3798 = vmatpush3.bf16.msra.mxu1 %v4367_v19 }
  0x81   : > { %3478 = vmatprep.subr.bf16.mxu0 %v4368_v26  ;;  %3791 = vmatprep.subr.bf16.mxu1 %v4368_v26 }
 0x107   : > { %v3642_v32 = vpop.f32.mrf.mxu0 }
 0x108   : > { %v595_v33 = vadd.f32 %v3642_v32, %v4770_v29 }
 0x109   : > { %v586_v34 = vpop.f32.mrf.mxu0 }
 0x10a   : > { %v715_v35 = vmax.f32 %v595_v33, 0.0  ;;  %v587_v36 = vadd.f32 %v4770_v29, %v586_v34 }
 0x10b   : > { %v3643_v37 = vpop.f32.mrf.mxu0 }
 0x10c   : > { %804 = vst.msk [vmem:[#allocation2 + $0x31] sm:$0xff] %vm745_vm1, %v715_v35  ;;  %v713_v38 = vmax.f32 %v587_v36, 0.0  ;;  %v598_v39 = vadd.f32 %v3643_v37, %v4770_v29  ;;  %v4369_v35 = vld [vmem:[%s5802_s3] sm:$0xff]  }
 0x10d   : > { %v589_v41 = vpop.f32.mrf.mxu0  ;;  %3479 = vmatpush3.bf16.msra.mxu0 %v4369_v35  ;;  %3799 = vmatpush3.bf16.msra.mxu1 %v4369_v35 }
 0x10e   : > { %802 = vst.msk [vmem:[#allocation2 + $0x19] sm:$0xff] %vm745_vm1, %v713_v38  ;;  %v716_v43 = vmax.f32 %v598_v39, 0.0  ;;  %v590_v44 = vadd.f32 %v4770_v29, %v589_v41 }
 0x10f   : > { %v3646_v45 = vpop.f32.mrf.mxu0 }
 0x110   : > { %805 = vst.msk [vmem:[#allocation2 + $0x39] sm:$0xff] %vm745_vm1, %v716_v43  ;;  %v714_v46 = vmax.f32 %v590_v44, 0.0  ;;  %v611_v47 = vadd.f32 %v3646_v45, %v4770_v29  ;;  %v4869_v43 = vld [vmem:[%s5802_s3 + $0x88] sm:$0xff]  }
 0x111   : > { %v602_v49 = vpop.f32.mrf.mxu0  ;;  %3672 = vmatprep.subr.bf16.mxu0 %v4869_v43 }
 0x112   : > { %803 = vst.msk [vmem:[#allocation2 + $0x21] sm:$0xff] %vm745_vm1, %v714_v46  ;;  %v719_v51 = vmax.f32 %v611_v47, 0.0  ;;  %v603_v52 = vadd.f32 %v4770_v29, %v602_v49 }
 0x113   : > { %v3647_v53 = vpop.f32.mrf.mxu0  ;;  %v4809_v60 = vld [vmem:[#allocation2 + $0x30] sm:$0xff] }
 0x114   : > { %808 = vst.msk [vmem:[#allocation2 + $0x61] sm:$0xff] %vm745_vm1, %v719_v51  ;;  %v717_v54 = vmax.f32 %v603_v52, 0.0  ;;  %v614_v55 = vadd.f32 %v3647_v53, %v4770_v29  ;;  %v870_v12 = vld [vmem:[#allocation2 + $0x31] sm:$0xff] }
 0x115   : > { %v605_v57 = vpop.f32.mrf.mxu0  ;;  %v4858_v36 = vld [vmem:[#allocation2 + $0x19] sm:$0xff] }
 0x116   : > { %806 = vst.msk [vmem:[#allocation2 + $0x49] sm:$0xff] %vm745_vm1, %v717_v54  ;;  %v720_v59 = vmax.f32 %v614_v55, 0.0  ;;  %v606_v61 = vadd.f32 %v4770_v29, %v605_v57  ;;  %v4877_v48 = vld [vmem:[#allocation2 + $0x18] sm:$0xff] }
 0x117   : > { %v996_v62 = vld [vmem:[#allocation2 + $0x32] sm:$0xff]  ;;  %v997_v63 = vld [vmem:[#allocation2 + $0x3a] sm:$0xff]  ;;  %v3650_v1 = vpop.f32.mrf.mxu0 }
 0x118   : > { %v4812_v0 = vld [vmem:[#allocation2 + $0x38] sm:$0xff]  ;;  %809 = vst.msk [vmem:[#allocation2 + $0x69] sm:$0xff] %vm745_vm1, %v720_v59  ;;  %v3864_v2 = vpack.i.bf16 %v997_v63, %v996_v62  ;;  %v718_v4 = vmax.f32 %v606_v61, 0.0  ;;  %v627_v5 = vadd.f32 %v3650_v1, %v4770_v29 }
 0x119   : > { %v3869_v3 = vpack.i.bf16 %v4812_v0, %v4809_v60  ;;  %v871_v7 = vld [vmem:[#allocation2 + $0x39] sm:$0xff]  ;;  %v618_v8 = vpop.f32.mrf.mxu0  ;;  %v901_v27 = vld [vmem:[#allocation2 + $0x22] sm:$0xff] }
 0x11a   : > { %3865 = vrot.lane.b32.xlu0 %v3864_v2, %s4498_s18  ;;  %807 = vst.msk [vmem:[#allocation2 + $0x51] sm:$0xff] %vm745_vm1, %v718_v4  ;;  %v723_v9 = vmax.f32 %v627_v5, 0.0  ;;  %v619_v10 = vadd.f32 %v4770_v29, %v618_v8  ;;  %v3874_v14 = vpack.i.bf16 %v871_v7, %v870_v12  ;;  %v900_v23 = vld [vmem:[#allocation2 + $0x1a] sm:$0xff] }
 0x11b   : > { %3870 = vrot.lane.b32.xlu1 %v3869_v3, %s4500_s16  ;;  %v3651_v13 = vpop.f32.mrf.mxu0  ;;  %v4845_v28 = vld [vmem:[#allocation2 + $0x21] sm:$0xff]  ;;  %v3899_v39 = vpack.i.bf16 %v901_v27, %v900_v23 }
 0x11c   : > { %812 = vst.msk [vmem:[#allocation2 + $0x91] sm:$0xff] %vm745_vm1, %v723_v9  ;;  %v721_v15 = vmax.f32 %v619_v10, 0.0  ;;  %v630_v16 = vadd.f32 %v3651_v13, %v4770_v29  ;;  %v3894_v40 = vpack.i.bf16 %v4845_v28, %v4858_v36  ;;  %v4871_v44 = vld [vmem:[#allocation2 + $0x20] sm:$0xff] }
 0x11d   : > { %v621_v18 = vpop.f32.mrf.mxu0  ;;  %v3909_v50 = vpack.i.bf16 %v4871_v44, %v4877_v48  ;;  %v4884_v53 = vld [vmem:[#allocation2 + $0x60] sm:$0xff]  ;;  %v1061_v26 = vld [vmem:[#allocation2 + $0x49] sm:$0xff] }
 0x11e   : > { %3885 = vrot.lane.b32.xlu0 %v3869_v3, %s4499_s26  ;;  %810 = vst.msk [vmem:[#allocation2 + $0x79] sm:$0xff] %vm745_vm1, %v721_v15  ;;  %v724_v20 = vmax.f32 %v630_v16, 0.0  ;;  %v622_v21 = vadd.f32 %v4770_v29, %v621_v18  ;;  %v4902_v3 = vld [vmem:[#allocation2 + $0x61] sm:$0xff] }
 0x11f   : > { %3875 = vrot.lane.b32.xlu1 %v3874_v14, %s4498_s18  ;;  %v3654_v22 = vpop.f32.mrf.mxu0  ;;  %v4886_v54 = vld [vmem:[#allocation2 + $0x68] sm:$0xff] }
 0x120   : > { %813 = vst.msk [vmem:[#allocation2 + $0x99] sm:$0xff] %vm745_vm1, %v724_v20  ;;  %v722_v24 = vmax.f32 %v622_v21, 0.0  ;;  %v643_v25 = vadd.f32 %v3654_v22, %v4770_v29  ;;  %v3929_v63 = vpack.i.bf16 %v4886_v54, %v4884_v53  ;;  %v4904_v4 = vld [vmem:[#allocation2 + $0x69] sm:$0xff] }
 0x121   : > { %v4847_v30 = vld [vmem:[#allocation2 + $0x4a] sm:$0xff]  ;;  %v634_v31 = vpop.f32.mrf.mxu0  ;;  %v4852_v32 = vld [vmem:[#allocation2 + $0x52] sm:$0xff]  ;;  %v3934_v9 = vpack.i.bf16 %v4904_v4, %v4902_v3  ;;  %v906_v12 = vld [vmem:[#allocation2 + $0x62] sm:$0xff] }
 0x122   : > { %3890 = vrot.lane.b32.xlu0 %v3874_v14, %s4500_s16  ;;  %811 = vst.msk [vmem:[#allocation2 + $0x81] sm:$0xff] %vm745_vm1, %v722_v24  ;;  %v727_v33 = vmax.f32 %v643_v25, 0.0  ;;  %v635_v34 = vadd.f32 %v4770_v29, %v634_v31  ;;  %v2089_v38 = vpack.c.bf16 %v4852_v32, %v4847_v30  ;;  %v907_v13 = vld [vmem:[#allocation2 + $0x6a] sm:$0xff] }
 0x123   : > { %3880 = vrot.lane.b32.xlu1 %v3864_v2, %s4499_s26  ;;  %v3655_v37 = vpop.f32.mrf.mxu0  ;;  %v3939_v21 = vpack.i.bf16 %v907_v13, %v906_v12  ;;  %v1029_v22 = vld [vmem:[#allocation2 + $0x48] sm:$0xff]  ;;  %v1030_v25 = vld [vmem:[#allocation2 + $0x50] sm:$0xff] }
 0x124   : > { %816 = vst.msk [vmem:[#allocation2 + $0xc1] sm:$0xff] %vm745_vm1, %v727_v33  ;;  %v725_v41 = vmax.f32 %v635_v34, 0.0  ;;  %v646_v42 = vadd.f32 %v3655_v37, %v4770_v29  ;;  %v1062_v27 = vld [vmem:[#allocation2 + $0x51] sm:$0xff] }
 0x125   : > { %v637_v45 = vpop.f32.mrf.mxu0  ;;  %v1067_v12 = vld [vmem:[#allocation2 + $0x91] sm:$0xff] }
 0x126   : > { %3895 = vrot.lane.b32.xlu0 %v3894_v40, %s4498_s18  ;;  %814 = vst.msk [vmem:[#allocation2 + $0xa9] sm:$0xff] %vm745_vm1, %v725_v41  ;;  %v728_v46 = vmax.f32 %v646_v42, 0.0  ;;  %v638_v47 = vadd.f32 %v4770_v29, %v637_v45  ;;  %v3949_v40 = vpack.i.bf16 %v1062_v27, %v1061_v26 }
 0x127   : > { %3900 = vrot.lane.b32.xlu1 %v3899_v39, %s4499_s26  ;;  %v3658_v49 = vpop.f32.mrf.mxu0  ;;  %v1068_v13 = vld [vmem:[#allocation2 + $0x99] sm:$0xff] }
 0x128   : > { %817 = vst.msk [vmem:[#allocation2 + $0xc9] sm:$0xff] %vm745_vm1, %v728_v46  ;;  %v726_v51 = vmax.f32 %v638_v47, 0.0  ;;  %v659_v52 = vadd.f32 %v3658_v49, %v4770_v29 }
 0x129   : > { %v4888_v55 = vld [vmem:[#allocation2 + $0x7a] sm:$0xff]  ;;  %v650_v56 = vpop.f32.mrf.mxu0  ;;  %v4893_v57 = vld [vmem:[#allocation2 + $0x82] sm:$0xff] }
 0x12a   : > { %3905 = vrot.lane.b32.xlu0 %v3899_v39, %s4498_s18  ;;  %815 = vst.msk [vmem:[#allocation2 + $0xb1] sm:$0xff] %vm745_vm1, %v726_v51  ;;  %v731_v58 = vmax.f32 %v659_v52, 0.0  ;;  %v651_v59 = vadd.f32 %v4770_v29, %v650_v56  ;;  %v2095_v62 = vpack.c.bf16 %v4893_v57, %v4888_v55  ;;  %v3944_v39 = vpack.i.bf16 %v1030_v25, %v1029_v22  ;;  %v1005_v25 = vld [vmem:[#allocation2 + $0x9a] sm:$0xff] }
 0x12b   : > { %3910 = vrot.lane.b32.xlu1 %v3909_v50, %s4500_s16  ;;  %v3659_v61 = vpop.f32.mrf.mxu0 }
 0x12c   : > { %820 = vst.msk [vmem:[#allocation2 + $0xf1] sm:$0xff] %vm745_vm1, %v731_v58  ;;  %v729_v1 = vmax.f32 %v651_v59, 0.0  ;;  %v662_v2 = vadd.f32 %v3659_v61, %v4770_v29  ;;  %v3954_v59 = vpack.i.bf16 %v4852_v32, %v4847_v30 }
 0x12d   : > { %v653_v5 = vpop.f32.mrf.mxu0 }
 0x12e   : > { %3915 = vrot.lane.b32.xlu0 %v3929_v63, %s4499_s26  ;;  %818 = vst.msk [vmem:[#allocation2 + $0xd9] sm:$0xff] %vm745_vm1, %v729_v1  ;;  %v732_v6 = vmax.f32 %v662_v2, 0.0  ;;  %v654_v7 = vadd.f32 %v4770_v29, %v653_v5  ;;  %v1035_v1 = vld [vmem:[#allocation2 + $0x90] sm:$0xff]  ;;  %v1036_v2 = vld [vmem:[#allocation2 + $0x98] sm:$0xff] }
 0x12f   : > { %3930 = vrot.lane.b32.xlu1 %v3929_v63, %s4500_s16  ;;  %v3662_v8 = vpop.f32.mrf.mxu0 }
 0x130   : > { %821 = vst.msk [vmem:[#allocation2 + $0xf9] sm:$0xff] %vm745_vm1, %v732_v6  ;;  %v730_v10 = vmax.f32 %v654_v7, 0.0  ;;  %v675_v11 = vadd.f32 %v3662_v8, %v4770_v29 }
 0x131   : > { %v4914_v14 = vld [vmem:[#allocation2 + $0xaa] sm:$0xff]  ;;  %v666_v15 = vpop.f32.mrf.mxu0  ;;  %v4919_v16 = vld [vmem:[#allocation2 + $0xb2] sm:$0xff] }
 0x132   : > { %3920 = vrot.lane.b32.xlu0 %v3934_v9, %s4500_s16  ;;  %819 = vst.msk [vmem:[#allocation2 + $0xe1] sm:$0xff] %vm745_vm1, %v730_v10  ;;  %v735_v17 = vmax.f32 %v675_v11, 0.0  ;;  %v667_v18 = vadd.f32 %v4770_v29, %v666_v15  ;;  %v2101_v20 = vpack.c.bf16 %v4919_v16, %v4914_v14 }
 0x133   : > { %3935 = vrot.lane.b32.xlu1 %v3934_v9, %s4498_s18  ;;  %v3663_v19 = vpop.f32.mrf.mxu0  ;;  %v3974_v9 = vpack.i.bf16 %v1036_v2, %v1035_v1  ;;  %v1008_v1 = vld [vmem:[#allocation2 + $0xc2] sm:$0xff]  ;;  %v1009_v2 = vld [vmem:[#allocation2 + $0xca] sm:$0xff] }
 0x134   : > { %824 = vst.msk [vmem:[#allocation2 + $0x121] sm:$0xff] %vm745_vm1, %v735_v17  ;;  %v733_v23 = vmax.f32 %v667_v18, 0.0  ;;  %v678_v24 = vadd.f32 %v3663_v19, %v4770_v29 }
 0x135   : > { %v669_v31 = vpop.f32.mrf.mxu0 }
 0x136   : > { %3925 = vrot.lane.b32.xlu0 %v3939_v21, %s4498_s18  ;;  %822 = vst.msk [vmem:[#allocation2 + $0x109] sm:$0xff] %vm745_vm1, %v733_v23  ;;  %v736_v33 = vmax.f32 %v678_v24, 0.0  ;;  %v670_v34 = vadd.f32 %v4770_v29, %v669_v31  ;;  %v1004_v24 = vld [vmem:[#allocation2 + $0x92] sm:$0xff] }
 0x137   : > { %3940 = vrot.lane.b32.xlu1 %v3939_v21, %s4499_s26  ;;  %v4930_v35 = vld [vmem:[#allocation2 + $0xf2] sm:$0xff]  ;;  %v3666_v37 = vpop.f32.mrf.mxu0  ;;  %v4933_v42 = vld [vmem:[#allocation2 + $0xfa] sm:$0xff]  ;;  %v3979_v21 = vpack.i.bf16 %v1068_v13, %v1067_v12  ;;  %v4074_v12 = vpack.i.bf16 %v4919_v16, %v4914_v14 }
 0x138   : > { %825 = vst.msk [vmem:[#allocation2 + $0x129] sm:$0xff] %vm745_vm1, %v736_v33  ;;  %v734_v41 = vmax.f32 %v670_v34, 0.0  ;;  %v691_v45 = vadd.f32 %v3666_v37, %v4770_v29  ;;  %v2110_v49 = vpack.c.bf16 %v4933_v42, %v4930_v35  ;;  %v3984_v33 = vpack.i.bf16 %v1005_v25, %v1004_v24  ;;  %v1033_v37 = vld [vmem:[#allocation2 + $0x78] sm:$0xff]  ;;  %v1043_v13 = vld [vmem:[#allocation2 + $0xf0] sm:$0xff] }
 0x139   : > { %v4936_v46 = vld [vmem:[#allocation2 + $0xda] sm:$0xff]  ;;  %v682_v47 = vpop.f32.mrf.mxu0  ;;  %v4943_v50 = vld [vmem:[#allocation2 + $0xe2] sm:$0xff] }
 0x13a   : > { %3950 = vrot.lane.b32.xlu0 %v3949_v40, %s4500_s16  ;;  %823 = vst.msk [vmem:[#allocation2 + $0x111] sm:$0xff] %vm745_vm1, %v734_v41  ;;  %v739_v51 = vmax.f32 %v691_v45, 0.0  ;;  %v683_v52 = vadd.f32 %v4770_v29, %v682_v47  ;;  %v2107_v58 = vpack.c.bf16 %v4943_v50, %v4936_v46  ;;  %v1065_v41 = vld [vmem:[#allocation2 + $0x79] sm:$0xff]  ;;  %v1066_v45 = vld [vmem:[#allocation2 + $0x81] sm:$0xff]  ;;  %v4014_v47 = vpack.i.bf16 %v4893_v57, %v4888_v55 }
 0x13b   : > { %3945 = vrot.lane.b32.xlu1 %v3944_v39, %s4499_s26  ;;  %v3667_v56 = vpop.f32.mrf.mxu0  ;;  %v1042_v24 = vld [vmem:[#allocation2 + $0xe0] sm:$0xff] }
 0x13c   : > { %828 = vst.msk [vmem:[#allocation2 + $0x151] sm:$0xff] %vm745_vm1, %v739_v51  ;;  %v737_v61 = vmax.f32 %v683_v52, 0.0  ;;  %v694_v63 = vadd.f32 %v3667_v56, %v4770_v29  ;;  %v1039_v51 = vld [vmem:[#allocation2 + $0xc0] sm:$0xff]  ;;  %v1040_v52 = vld [vmem:[#allocation2 + $0xc8] sm:$0xff] }
 0x13d   : > { %v685_v5 = vpop.f32.mrf.mxu0  ;;  %v4034_v56 = vpack.i.bf16 %v1040_v52, %v1039_v51 }
 0x13e   : > { %3955 = vrot.lane.b32.xlu0 %v3954_v59, %s4498_s18  ;;  %826 = vst.msk [vmem:[#allocation2 + $0x139] sm:$0xff] %vm745_vm1, %v737_v61  ;;  %v740_v6 = vmax.f32 %v694_v63, 0.0  ;;  %v686_v7 = vadd.f32 %v4770_v29, %v685_v5  ;;  %v1072_v61 = vld [vmem:[#allocation2 + $0xc9] sm:$0xff]  ;;  %v4044_v5 = vpack.i.bf16 %v1009_v2, %v1008_v1 }
 0x13f   : > { %3960 = vrot.lane.b32.xlu1 %v3944_v39, %s4500_s16  ;;  %v3670_v8 = vpop.f32.mrf.mxu0  ;;  %v1034_v39 = vld [vmem:[#allocation2 + $0x80] sm:$0xff]  ;;  %v1045_v2 = vld [vmem:[#allocation2 + $0x108] sm:$0xff] }
 0x140   : > { %829 = vst.msk [vmem:[#allocation2 + $0x159] sm:$0xff] %vm745_vm1, %v740_v6  ;;  %v738_v10 = vmax.f32 %v686_v7, 0.0  ;;  %v707_v11 = vadd.f32 %v3670_v8, %v4770_v29  ;;  %v1037_v6 = vld [vmem:[#allocation2 + $0xa8] sm:$0xff]  ;;  %v1038_v7 = vld [vmem:[#allocation2 + $0xb0] sm:$0xff] }
 0x141   : > { %v698_v15 = vpop.f32.mrf.mxu0  ;;  %v4064_v8 = vpack.i.bf16 %v1038_v7, %v1037_v6 }
 0x142   : > { %3975 = vrot.lane.b32.xlu0 %v3974_v9, %s4499_s26  ;;  %827 = vst.msk [vmem:[#allocation2 + $0x141] sm:$0xff] %vm745_vm1, %v738_v10  ;;  %v743_v17 = vmax.f32 %v707_v11, 0.0  ;;  %v699_v18 = vadd.f32 %v4770_v29, %v698_v15  ;;  %v1070_v10 = vld [vmem:[#allocation2 + $0xb1] sm:$0xff] }
 0x143   : > { %3965 = vrot.lane.b32.xlu1 %v3949_v40, %s4498_s18  ;;  %v3671_v19 = vpop.f32.mrf.mxu0  ;;  %v4004_v40 = vpack.i.bf16 %v1034_v39, %v1033_v37  ;;  %v1044_v15 = vld [vmem:[#allocation2 + $0xf8] sm:$0xff]  ;;  %v1047_v37 = vld [vmem:[#allocation2 + $0x120] sm:$0xff]  ;;  %v1048_v39 = vld [vmem:[#allocation2 + $0x128] sm:$0xff] }
 0x144   : > { %832 = vst.msk [vmem:[#allocation2 + $0x181] sm:$0xff] %vm745_vm1, %v743_v17  ;;  %v741_v22 = vmax.f32 %v699_v18, 0.0  ;;  %v710_v23 = vadd.f32 %v3671_v19, %v4770_v29  ;;  %v4094_v17 = vpack.i.bf16 %v1044_v15, %v1043_v13  ;;  %v1075_v18 = vld [vmem:[#allocation2 + $0xf1] sm:$0xff]  ;;  %v1076_v19 = vld [vmem:[#allocation2 + $0xf9] sm:$0xff]  ;;  %v835_v13 = vld [vmem:[#allocation2 + $0x8] sm:$0xff] }
 0x145   : > { %v701_v26 = vpop.f32.mrf.mxu0  ;;  %v834_v15 = vld [vmem:[#allocation2] sm:$0xff] }
 0x146   : > { %3980 = vrot.lane.b32.xlu0 %v3979_v21, %s4500_s16  ;;  %830 = vst.msk [vmem:[#allocation2 + $0x169] sm:$0xff] %vm745_vm1, %v741_v22  ;;  %v744_v27 = vmax.f32 %v710_v23, 0.0  ;;  %v702_v31 = vadd.f32 %v4770_v29, %v701_v26  ;;  %v4009_v29 = vpack.i.bf16 %v1066_v45, %v1065_v41  ;;  %v4104_v22 = vpack.i.bf16 %v4933_v42, %v4930_v35  ;;  %v1041_v23 = vld [vmem:[#allocation2 + $0xd8] sm:$0xff]  ;;  %v1079_v45 = vld [vmem:[#allocation2 + $0x121] sm:$0xff] }
 0x147   : > { %3970 = vrot.lane.b32.xlu1 %v3954_v59, %s4499_s26  ;;  %v1071_v59 = vld [vmem:[#allocation2 + $0xc1] sm:$0xff]  ;;  %v4124_v25 = vpack.i.bf16 %v1042_v24, %v1041_v23  ;;  %v1073_v26 = vld [vmem:[#allocation2 + $0xd9] sm:$0xff]  ;;  %v4154_v41 = vpack.i.bf16 %v1048_v39, %v1047_v37 }
 0x148   : > { %833 = vst.msk [vmem:[#allocation2 + $0x189] sm:$0xff] %vm745_vm1, %v744_v27  ;;  %v742_v34 = vmax.f32 %v702_v31, 0.0  ;;  %v4039_v63 = vpack.i.bf16 %v1072_v61, %v1071_v59  ;;  %v1074_v27 = vld [vmem:[#allocation2 + $0xe1] sm:$0xff]  ;;  %v5018_v59 = vld [vmem:[#allocation2 + $0x12a] sm:$0xff]  ;;  %v1052_v37 = vld [vmem:[#allocation2 + $0x158] sm:$0xff] }
 0x149   : > { %v4129_v31 = vpack.i.bf16 %v1074_v27, %v1073_v26 }
 0x14a   : > { %3985 = vrot.lane.b32.xlu0 %v3984_v33, %s4498_s18  ;;  %831 = vst.msk [vmem:[#allocation2 + $0x171] sm:$0xff] %vm745_vm1, %v742_v34  ;;  %v4134_v34 = vpack.i.bf16 %v4943_v50, %v4936_v46 }
 0x14b   : > { %3990 = vrot.lane.b32.xlu1 %v3974_v9, %s4500_s16  ;;  %v1069_v9 = vld [vmem:[#allocation2 + $0xa9] sm:$0xff]  ;;  %v1087_v55 = vld [vmem:[#allocation2 + $0x181] sm:$0xff] }
 0x14c   : > { %v4069_v11 = vpack.i.bf16 %v1070_v10, %v1069_v9  ;;  %v1077_v9 = vld [vmem:[#allocation2 + $0x109] sm:$0xff]  ;;  %v1078_v10 = vld [vmem:[#allocation2 + $0x111] sm:$0xff] }
 0x14e   : > { %4005 = vrot.lane.b32.xlu0 %v4004_v40, %s4499_s26 }
 0x14f   : > { %3995 = vrot.lane.b32.xlu1 %v3979_v21, %s4498_s18  ;;  %v4099_v21 = vpack.i.bf16 %v1076_v19, %v1075_v18  ;;  %v4189_v19 = vpack.i.bf16 %v1078_v10, %v1077_v9  ;;  %v1088_v57 = vld [vmem:[#allocation2 + $0x189] sm:$0xff] }
 0x151   : > { %v5188_v14 = vld [vmem:[#allocation2 + $0x171] sm:$0xff] }
 0x152   : > { %4010 = vrot.lane.b32.xlu0 %v4009_v29, %s4500_s16 }
 0x153   : > { %4000 = vrot.lane.b32.xlu1 %v3984_v33, %s4499_s26  ;;  %v3856_v33 = vpop.permute.xlu1 %3855 }
 0x156   : > { %4015 = vrot.lane.b32.xlu0 %v4014_v47, %s4498_s18 }
 0x157   : > { %4020 = vrot.lane.b32.xlu1 %v4004_v40, %s4500_s16  ;;  %v3861_v40 = vpop.permute.xlu1 %3860 }
 0x158   : > { %v3863_v23 = vunpack.i.h.bf16 %v3861_v40  ;;  %v3862_v24 = vunpack.i.l.bf16 %v3861_v40 }
 0x15a   : > { %4035 = vrot.lane.b32.xlu0 %v4034_v56, %s4499_s26 }
 0x15b   : > { %4025 = vrot.lane.b32.xlu1 %v4009_v29, %s4498_s18  ;;  %v1080_v29 = vld [vmem:[#allocation2 + $0x129] sm:$0xff] }
 0x15c   : > { %v4159_v52 = vpack.i.bf16 %v1080_v29, %v1079_v45 }
 0x15e   : > { %4040 = vrot.lane.b32.xlu0 %v4039_v63, %s4500_s16 }
 0x15f   : > { %4030 = vrot.lane.b32.xlu1 %v4014_v47, %s4499_s26 }
 0x162   : > { %4045 = vrot.lane.b32.xlu0 %v4044_v5, %s4498_s18 }
 0x163   : > { %4050 = vrot.lane.b32.xlu1 %v4034_v56, %s4500_s16  ;;  %v5016_v56 = vld [vmem:[#allocation2 + $0x122] sm:$0xff] }
 0x164   : > { %v4164_v1 = vpack.i.bf16 %v5018_v59, %v5016_v56 }
 0x166   : > { %4065 = vrot.lane.b32.xlu0 %v4064_v8, %s4499_s26 }
 0x167   : > { %4055 = vrot.lane.b32.xlu1 %v4039_v63, %s4498_s18 }
 0x16a   : > { %4070 = vrot.lane.b32.xlu0 %v4069_v11, %s4500_s16 }
 0x16b   : > { %4060 = vrot.lane.b32.xlu1 %v4044_v5, %s4499_s26  ;;  %v1046_v5 = vld [vmem:[#allocation2 + $0x110] sm:$0xff] }
 0x16e   : > { %4075 = vrot.lane.b32.xlu0 %v4074_v12, %s4498_s18 }
 0x16f   : > { %4080 = vrot.lane.b32.xlu1 %v4064_v8, %s4500_s16  ;;  %v4184_v8 = vpack.i.bf16 %v1046_v5, %v1045_v2 }
 0x172   : > { %4095 = vrot.lane.b32.xlu0 %v4094_v17, %s4499_s26 }
 0x173   : > { %4085 = vrot.lane.b32.xlu1 %v4069_v11, %s4498_s18  ;;  %v3858_v11 = vunpack.i.h.bf16 %v3856_v33 }
 0x176   : > { %4100 = vrot.lane.b32.xlu0 %v4099_v21, %s4500_s16 }
 0x177   : > { %4090 = vrot.lane.b32.xlu1 %v4074_v12, %s4499_s26  ;;  %v3857_v12 = vunpack.i.l.bf16 %v3856_v33 }
 0x179   : > { %v1891_v26 = vsel %vm745_vm1, %v834_v15, %v3857_v12 }
 0x17a   : > { %4105 = vrot.lane.b32.xlu0 %v4104_v22, %s4498_s18  ;;  %v1923_v40 = vsel %vm503_vm0, %v1891_v26, %v3862_v24 }
 0x17b   : > { %4110 = vrot.lane.b32.xlu1 %v4094_v17, %s4500_s16 }
 0x17e   : > { %4125 = vrot.lane.b32.xlu0 %v4124_v25, %s4499_s26 }
 0x17f   : > { %4115 = vrot.lane.b32.xlu1 %v4099_v21, %s4498_s18  ;;  %v5036_v21 = vld [vmem:[#allocation2 + $0x10a] sm:$0xff] }
 0x182   : > { %4130 = vrot.lane.b32.xlu0 %v4129_v31, %s4500_s16 }
 0x183   : > { %4120 = vrot.lane.b32.xlu1 %v4104_v22, %s4499_s26  ;;  %v5038_v22 = vld [vmem:[#allocation2 + $0x112] sm:$0xff] }
 0x184   : > { %v4194_v33 = vpack.i.bf16 %v5038_v22, %v5036_v21 }
 0x186   : > { %4135 = vrot.lane.b32.xlu0 %v4134_v34, %s4498_s18 }
 0x187   : > { %4140 = vrot.lane.b32.xlu1 %v4124_v25, %s4500_s16  ;;  %v1892_v25 = vsel %vm745_vm1, %v835_v13, %v3858_v11 }
 0x18a   : > { %4155 = vrot.lane.b32.xlu0 %v4154_v41, %s4499_s26 }
 0x18b   : > { %4145 = vrot.lane.b32.xlu1 %v4129_v31, %s4498_s18 }
 0x18c   : > { %v5012_v47 = vpop.permute.xlu0 %3865 }
 0x18d   : > { %v5014_v51 = vpop.permute.xlu1 %3870 }
 0x18e   : > { %4160 = vrot.lane.b32.xlu0 %v4159_v52, %s4500_s16 }
 0x18f   : > { %4150 = vrot.lane.b32.xlu1 %v4134_v34, %s4499_s26  ;;  %v1051_v34 = vld [vmem:[#allocation2 + $0x150] sm:$0xff] }
 0x190   : > { %v3886_v61 = vpop.permute.xlu0 %3885  ;;  %v4214_v10 = vpack.i.bf16 %v1052_v37, %v1051_v34 }
 0x191   : > { %v5022_v63 = vpop.permute.xlu1 %3875  ;;  %v3887_v2 = vunpack.i.l.bf16 %v3886_v61 }
 0x192   : > { %4165 = vrot.lane.b32.xlu0 %v4164_v1, %s4498_s18 }
 0x193   : > { %4170 = vrot.lane.b32.xlu1 %v4154_v41, %s4500_s16 }
 0x194   : > { %v3891_v6 = vpop.permute.xlu0 %3890 }
 0x195   : > { %v5028_v7 = vpop.permute.xlu1 %3880  ;;  %v3893_v11 = vunpack.i.h.bf16 %v3891_v6  ;;  %v3892_v12 = vunpack.i.l.bf16 %v3891_v6  ;;  %v1083_v6 = vld [vmem:[#allocation2 + $0x151] sm:$0xff] }
 0x196   : > { %4185 = vrot.lane.b32.xlu0 %v4184_v8, %s4499_s26 }
 0x197   : > { %4175 = vrot.lane.b32.xlu1 %v4159_v52, %s4498_s18  ;;  %v1924_v52 = vsel %vm503_vm0, %v1892_v25, %v3863_v23  ;;  %v1084_v25 = vld [vmem:[#allocation2 + $0x159] sm:$0xff] }
 0x198   : > { %v5034_v18 = vpop.permute.xlu0 %3895 }
 0x199   : > { %v5032_v17 = vpop.permute.xlu1 %3900  ;;  %v3897_v34 = vunpack.i.l.bf16 %v5034_v18 }
 0x19a   : > { %4190 = vrot.lane.b32.xlu0 %v4189_v19, %s4500_s16 }
 0x19b   : > { %4180 = vrot.lane.b32.xlu1 %v4164_v1, %s4499_s26  ;;  %v3888_v1 = vunpack.i.h.bf16 %v3886_v61 }
 0x19c   : > { %v3906_v31 = vpop.permute.xlu0 %3905 }
 0x19d   : > { %v3911_v27 = vpop.permute.xlu1 %3910  ;;  %v3908_v45 = vunpack.i.h.bf16 %v3906_v31  ;;  %v3907_v29 = vunpack.i.l.bf16 %v3906_v31  ;;  %v1092_v31 = vld [vmem:[#allocation2 + $0x3a] sm:$0xff] }
 0x19e   : > { %v3913_v39 = vunpack.i.h.bf16 %v3911_v27  ;;  %v3912_v41 = vunpack.i.l.bf16 %v3911_v27  ;;  %4195 = vrot.lane.b32.xlu0 %v4194_v33, %s4498_s18  ;;  %v1091_v27 = vld [vmem:[#allocation2 + $0x32] sm:$0xff] }
 0x19f   : > { %4200 = vrot.lane.b32.xlu1 %v4184_v8, %s4500_s16  ;;  %v1989_v5 = vsel %vm745_vm1, %v4845_v28, %v3908_v45  ;;  %v1988_v9 = vsel %vm745_vm1, %v4858_v36, %v3907_v29  ;;  %v4219_v29 = vpack.i.bf16 %v1084_v25, %v1083_v6  ;;  %v3873_v6 = vunpack.i.h.bf16 %v5014_v51 }
 0x1a0   : > { %v5056_v15 = vpop.permute.xlu0 %3915  ;;  %v2020_v61 = vsel %vm503_vm0, %v1988_v9, %v3887_v2  ;;  %v2021_v8 = vsel %vm503_vm0, %v1989_v5, %v3888_v1  ;;  %v1957_v23 = vsel %vm1955_vm3, %v1924_v52, %v3913_v39  ;;  %v1956_v24 = vsel %vm1955_vm3, %v1923_v40, %v3912_v41  ;;  %v5076_v52 = vld [vmem:[#allocation2 + $0x152] sm:$0xff]  ;;  %v5078_v1 = vld [vmem:[#allocation2 + $0x15a] sm:$0xff] }
 0x1a1   : > { %v5054_v13 = vpop.permute.xlu1 %3930  ;;  %v2052_v28 = vsel %vm1955_vm3, %v2020_v61, %v3892_v12  ;;  %v2053_v36 = vsel %vm1955_vm3, %v2021_v8, %v3893_v11  ;;  %v2084_v37 = vpack.c.bf16 %v1957_v23, %v1956_v24  ;;  %v3898_v41 = vunpack.i.h.bf16 %v5034_v18  ;;  %v1095_v11 = vld [vmem:[#allocation2 + $0x62] sm:$0xff]  ;;  %v1096_v12 = vld [vmem:[#allocation2 + $0x6a] sm:$0xff] }
 0x1a2   : > { %4215 = vrot.lane.b32.xlu0 %v4214_v10, %s4499_s26  ;;  %v2085_v26 = vpack.c.bf16 %v2053_v36, %v2052_v28  ;;  %v2086_v40 = vpack.c.bf16 %v1092_v31, %v1091_v27  ;;  %v3902_v2 = vunpack.i.l.bf16 %v5032_v17  ;;  %v3903_v5 = vunpack.i.h.bf16 %v5032_v17  ;;  %v1049_v17 = vld [vmem:[#allocation2 + $0x138] sm:$0xff]  ;;  %v1050_v8 = vld [vmem:[#allocation2 + $0x140] sm:$0xff] }
 0x1a3   : > { %4205 = vrot.lane.b32.xlu1 %v4189_v19, %s4498_s18  ;;  %v4371_v19 = vld [vmem:[%s5802_s3 + $0x80] sm:$0xff]   ;;  %v1893_v18 = vsel %vm745_vm1, %v4877_v48, %v3897_v34  ;;  %v1894_v61 = vsel %vm745_vm1, %v4871_v44, %v3898_v41  ;;  %v3868_v48 = vunpack.i.h.bf16 %v5012_v47  ;;  %v3867_v23 = vunpack.i.l.bf16 %v5012_v47 }
 0x1a4   : > { %v5069_v39 = vpop.permute.xlu0 %3920  ;;  %2363 = vmatprep.mubr.bf16.mxu0 %v2085_v26  ;;  %v2092_v24 = vpack.c.bf16 %v1096_v12, %v1095_v11  ;;  %v1081_v28 = vld [vmem:[#allocation2 + $0x139] sm:$0xff]  ;;  %v1082_v36 = vld [vmem:[#allocation2 + $0x141] sm:$0xff]  ;;  %v1925_v44 = vsel %vm503_vm0, %v1893_v18, %v3902_v2  ;;  %v3872_v25 = vunpack.i.l.bf16 %v5014_v51  ;;  %v4239_v31 = vpack.i.bf16 %v1050_v8, %v1049_v17 }
 0x1a5   : > { %v5067_v45 = vpop.permute.xlu1 %3935  ;;  %2364 = vmatmul.mubr.bf16.vlgmr.msra.gmra.mxu0 %v2084_v37  ;;  %v1926_v47 = vsel %vm503_vm0, %v1894_v61, %v3903_v5  ;;  %v965_v11 = vld [vmem:[#allocation2 + $0x39] sm:$0xff]  ;;  %v4244_v12 = vpack.i.bf16 %v1082_v36, %v1081_v28  ;;  %v3878_v61 = vunpack.i.h.bf16 %v5022_v63  ;;  %v3877_v17 = vunpack.i.l.bf16 %v5022_v63  ;;  %v966_v28 = vld [vmem:[#allocation2 + $0x49] sm:$0xff]  ;;  %v967_v36 = vld [vmem:[#allocation2 + $0x51] sm:$0xff] }
 0x1a6   : > { %4220 = vrot.lane.b32.xlu0 %v4219_v29, %s4500_s16  ;;  %3673 = vmatpush3.bf16.msra.mxu0 %v4869_v43  ;;  %v5095_v43 = vpack.i.bf16 %v5078_v1, %v5076_v52  ;;  %v1991_v18 = vsel %vm745_vm1, %v965_v11, %v3868_v48  ;;  %v1958_v51 = vsel %vm1955_vm3, %v1925_v44, %v3872_v25  ;;  %v1099_v25 = vld [vmem:[#allocation2 + $0x92] sm:$0xff]  ;;  %v3917_v63 = vunpack.i.l.bf16 %v5056_v15 }
 0x1a7   : > { %4210 = vrot.lane.b32.xlu1 %v4194_v33, %s4499_s26  ;;  %3676 = vmatprep.mubr.msk.bf16.mxu0 %vm745_vm1, %v2086_v40  ;;  %v964_v40 = vld [vmem:[#allocation2 + $0x31] sm:$0xff] }
 0x1a8   : > { %v5089_v33 = vpop.permute.xlu0 %3925  ;;  %3674 = vmatprep.subr.bf16.mxu0 %v4371_v19  ;;  %v1990_v2 = vsel %vm745_vm1, %v964_v40, %v3867_v23  ;;  %v3882_v23 = vunpack.i.l.bf16 %v5028_v7 }
 0x1a9   : > { %v5087_v9 = vpop.permute.xlu1 %3940  ;;  %v3928_v16 = vunpack.i.h.bf16 %v5089_v33 }
 0x1aa   : > { %4225 = vrot.lane.b32.xlu0 %v5095_v43, %s4498_s18  ;;  %3675 = vmatpush3.bf16.msra.mxu0 %v4371_v19 }
 0x1ab   : > { %4230 = vrot.lane.b32.xlu1 %v4214_v10, %s4500_s16 }
 0x1ac   : > { %v3951_v27 = vpop.permute.xlu0 %3950 }
 0x1ad   : > { %v3946_v26 = vpop.permute.xlu1 %3945  ;;  %v3953_v37 = vunpack.i.h.bf16 %v3951_v27  ;;  %v3952_v41 = vunpack.i.l.bf16 %v3951_v27  ;;  %3677 = vmatmul.mubr.msk.bf16.vlgmr.msra.gmra.mxu0 %vm745_vm1, %v2089_v38  ;;  %v3883_v38 = vunpack.i.h.bf16 %v5028_v7  ;;  %v3923_v7 = vunpack.i.h.bf16 %v5069_v39 }
 0x1ae   : > { %v3948_v34 = vunpack.i.h.bf16 %v3946_v26  ;;  %v3947_v10 = vunpack.i.l.bf16 %v3946_v26  ;;  %4240 = vrot.lane.b32.xlu0 %v4239_v31, %s4499_s26  ;;  %3680 = vmatprep.mubr.msk.bf16.mxu0 %vm745_vm1, %v2092_v24  ;;  %v3918_v26 = vunpack.i.h.bf16 %v5056_v15 }
 0x1af   : > { %4235 = vrot.lane.b32.xlu1 %v4219_v29, %s4498_s18  ;;  %v1959_v29 = vsel %vm1955_vm3, %v1926_v47, %v3873_v6  ;;  %v5128_v47 = vld [vmem:[#allocation2 + $0x13a] sm:$0xff] }
 0x1b0   : > { %v2022_v19 = vsel %vm503_vm0, %v1990_v2, %v3947_v10  ;;  %v2023_v5 = vsel %vm503_vm0, %v1991_v18, %v3948_v34  ;;  %v3956_v48 = vpop.permute.xlu0 %3955  ;;  %v2087_v27 = vpack.c.bf16 %v1959_v29, %v1958_v51  ;;  %v5130_v34 = vld [vmem:[#allocation2 + $0x142] sm:$0xff]  ;;  %v1100_v10 = vld [vmem:[#allocation2 + $0x9a] sm:$0xff]  ;;  %v1896_v29 = vsel %vm745_vm1, %v4812_v0, %v3878_v61 }
 0x1b1   : > { %v3961_v8 = vpop.permute.xlu1 %3960  ;;  %v2054_v30 = vsel %vm1955_vm3, %v2022_v19, %v3952_v41  ;;  %v2055_v32 = vsel %vm1955_vm3, %v2023_v5, %v3953_v37  ;;  %v3958_v44 = vunpack.i.h.bf16 %v3956_v48  ;;  %v3957_v6 = vunpack.i.l.bf16 %v3956_v48 }
 0x1b2   : > { %v2088_v24 = vpack.c.bf16 %v2055_v32, %v2054_v30  ;;  %v3922_v37 = vunpack.i.l.bf16 %v5069_v39  ;;  %4245 = vrot.lane.b32.xlu0 %v4244_v12, %s4500_s16  ;;  %v3963_v15 = vunpack.i.h.bf16 %v3961_v8  ;;  %v3962_v11 = vunpack.i.l.bf16 %v3961_v8  ;;  %v1055_v30 = vld [vmem:[#allocation2 + $0x180] sm:$0xff]  ;;  %v1056_v32 = vld [vmem:[#allocation2 + $0x188] sm:$0xff] }
 0x1b3   : > { %4255 = vrot.lane.b32.xlu1 %v4239_v31, %s4500_s16  ;;  %v1993_v41 = vsel %vm745_vm1, %v967_v36, %v3958_v44  ;;  %v1992_v40 = vsel %vm745_vm1, %v966_v28, %v3957_v6  ;;  %v4249_v39 = vpack.i.bf16 %v5130_v34, %v5128_v47  ;;  %v2098_v19 = vpack.c.bf16 %v1100_v10, %v1099_v25  ;;  %v1104_v44 = vld [vmem:[#allocation2 + $0xca] sm:$0xff] }
 0x1b4   : > { %2371 = vmatprep.mubr.bf16.mxu1 %v2088_v24  ;;  %v5139_v2 = vpop.permute.xlu0 %3975  ;;  %v2024_v18 = vsel %vm503_vm0, %v1992_v40, %v3917_v63  ;;  %v2025_v51 = vsel %vm503_vm0, %v1993_v41, %v3918_v26  ;;  %v1895_v5 = vsel %vm745_vm1, %v4809_v60, %v3877_v17  ;;  %v1928_v36 = vsel %vm503_vm0, %v1896_v29, %v3883_v38  ;;  %v1103_v38 = vld [vmem:[#allocation2 + $0xc2] sm:$0xff]  ;;  %v959_v24 = vld [vmem:[#allocation2 + $0x170] sm:$0xff] }
 0x1b5   : > { %v5137_v31 = vpop.permute.xlu1 %3965  ;;  %2372 = vmatmul.mubr.bf16.vlgmr.msra.gmra.mxu1 %v2087_v27  ;;  %v2056_v8 = vsel %vm1955_vm3, %v2024_v18, %v3922_v37  ;;  %v2057_v48 = vsel %vm1955_vm3, %v2025_v51, %v3923_v7  ;;  %v1927_v28 = vsel %vm503_vm0, %v1895_v5, %v3882_v23  ;;  %3681 = vmatmul.mubr.msk.bf16.gmra.mxu0 %vm745_vm1, %v2095_v62  ;;  %v958_v63 = vld [vmem:[#allocation2 + $0x168] sm:$0xff]  ;;  %v3927_v10 = vunpack.i.l.bf16 %v5089_v33 }
 0x1b6   : > { %4250 = vrot.lane.b32.xlu0 %v4249_v39, %s4498_s18  ;;  %v2091_v60 = vpack.c.bf16 %v2057_v48, %v2056_v8  ;;  %3684 = vmatprep.mubr.msk.bf16.mxu0 %vm745_vm1, %v2098_v19  ;;  %v1960_v61 = vsel %vm1955_vm3, %v1927_v28, %v3962_v11  ;;  %v1961_v17 = vsel %vm1955_vm3, %v1928_v36, %v3963_v15  ;;  %v3968_v7 = vunpack.i.h.bf16 %v5137_v31  ;;  %v5186_v18 = vld [vmem:[#allocation2 + $0x169] sm:$0xff] }
 0x1b7   : > { %4260 = vrot.lane.b32.xlu1 %v4244_v12, %s4498_s18  ;;  %v5164_v23 = vpack.i.bf16 %v1056_v32, %v1055_v30  ;;  %v2090_v62 = vpack.c.bf16 %v1961_v17, %v1960_v61  ;;  %v4279_v26 = vpack.i.bf16 %v1088_v57, %v1087_v55  ;;  %v2104_v27 = vpack.c.bf16 %v1104_v44, %v1103_v38  ;;  %v840_v51 = vld [vmem:[#allocation2 + $0x48] sm:$0xff]  ;;  %v5203_v32 = vld [vmem:[#allocation2 + $0x172] sm:$0xff] }
 0x1b8   : > { %v5160_v12 = vpop.permute.xlu0 %3980  ;;  %2379 = vmatprep.mubr.bf16.mxu1 %v2091_v60  ;;  %v3967_v37 = vunpack.i.l.bf16 %v5137_v31  ;;  %v1994_v19 = vsel %vm745_vm1, %v4902_v3, %v3927_v10  ;;  %v4314_v33 = vpack.i.bf16 %v5188_v14, %v5186_v18  ;;  %v5201_v30 = vld [vmem:[#allocation2 + $0x16a] sm:$0xff]  ;;  %v3932_v61 = vunpack.i.l.bf16 %v5054_v13  ;;  %v971_v10 = vld [vmem:[#allocation2 + $0x81] sm:$0xff] }
 0x1b9   : > { %v3971_v0 = vpop.permute.xlu1 %3970  ;;  %v1995_v17 = vsel %vm745_vm1, %v4904_v4, %v3928_v16  ;;  %v3938_v57 = vunpack.i.h.bf16 %v5067_v45  ;;  %v3937_v38 = vunpack.i.l.bf16 %v5067_v45  ;;  %v3978_v35 = vunpack.i.h.bf16 %v5139_v2 }
 0x1ba   : > { %4275 = vrot.lane.b32.xlu0 %v5164_v23, %s4499_s26  ;;  %v3973_v15 = vunpack.i.h.bf16 %v3971_v0  ;;  %v3972_v11 = vunpack.i.l.bf16 %v3971_v0  ;;  %v1897_v29 = vsel %vm745_vm1, %v840_v51, %v3967_v37  ;;  %v3933_v0 = vunpack.i.h.bf16 %v5054_v13  ;;  %v5233_v37 = vld [vmem:[#allocation2 + $0x182] sm:$0xff] }
 0x1bb   : > { %4265 = vrot.lane.b32.xlu1 %v4249_v39, %s4499_s26  ;;  %v841_v39 = vld [vmem:[#allocation2 + $0x50] sm:$0xff]  ;;  %v4319_v13 = vpack.i.bf16 %v5203_v32, %v5201_v30  ;;  %v3977_v42 = vunpack.i.l.bf16 %v5139_v2 }
 0x1bc   : > { %v5171_v25 = vpop.permute.xlu0 %3985  ;;  %v1898_v5 = vsel %vm745_vm1, %v841_v39, %v3968_v7  ;;  %v1929_v28 = vsel %vm503_vm0, %v1897_v29, %v3972_v11  ;;  %v1058_v11 = vld [vmem:[#allocation2 + $0x1a0] sm:$0xff] }
 0x1bd   : > { %v5169_v6 = vpop.permute.xlu1 %3990  ;;  %2380 = vmatmul.mubr.bf16.gmra.mxu1 %v2090_v62  ;;  %3685 = vmatmul.mubr.msk.bf16.gmra.mxu0 %vm745_vm1, %v2101_v20  ;;  %v1930_v36 = vsel %vm503_vm0, %v1898_v5, %v3973_v15  ;;  %v1962_v50 = vsel %vm1955_vm3, %v1929_v28, %v3932_v61  ;;  %v1057_v15 = vld [vmem:[#allocation2 + $0x198] sm:$0xff] }
 0x1be   : > { %4280 = vrot.lane.b32.xlu0 %v4279_v26, %s4500_s16  ;;  %3688 = vmatprep.mubr.msk.bf16.mxu0 %vm745_vm1, %v2104_v27  ;;  %v970_v27 = vld [vmem:[#allocation2 + $0x79] sm:$0xff]  ;;  %v4304_v28 = vpack.i.bf16 %v1058_v11, %v1057_v15 }
 0x1bf   : > { %4270 = vrot.lane.b32.xlu1 %v5095_v43, %s4499_s26  ;;  %v4309_v43 = vpack.i.bf16 %v959_v24, %v958_v63  ;;  %v3943_v63 = vunpack.i.h.bf16 %v5087_v9  ;;  %v3942_v24 = vunpack.i.l.bf16 %v5087_v9  ;;  %v3982_v9 = vunpack.i.l.bf16 %v5160_v12  ;;  %v1089_v61 = vld [vmem:[#allocation2 + $0x199] sm:$0xff] }
 0x1c0   : > { %v4006_v40 = vpop.permute.xlu0 %4005  ;;  %v973_v15 = vld [vmem:[#allocation2 + $0x99] sm:$0xff] }
 0x1c1   : > { %v5184_v41 = vpop.permute.xlu1 %3995  ;;  %v4007_v20 = vunpack.i.l.bf16 %v4006_v40  ;;  %v4008_v31 = vunpack.i.h.bf16 %v4006_v40 }
 0x1c2   : > { %4285 = vrot.lane.b32.xlu0 %v4309_v43, %s4499_s26  ;;  %v3998_v11 = vunpack.i.h.bf16 %v5184_v41 }
 0x1c3   : > { %4310 = vrot.lane.b32.xlu1 %v4309_v43, %s4500_s16  ;;  %v2026_v55 = vsel %vm503_vm0, %v1994_v19, %v4007_v20  ;;  %v2027_v62 = vsel %vm503_vm0, %v1995_v17, %v4008_v31  ;;  %v5239_v43 = vld [vmem:[#allocation2 + $0x18a] sm:$0xff]  ;;  %v1090_v17 = vld [vmem:[#allocation2 + $0x1a1] sm:$0xff] }
 0x1c4   : > { %v4011_v48 = vpop.permute.xlu0 %4010 }
 0x1c5   : > { %v5197_v8 = vpop.permute.xlu1 %4000  ;;  %v4013_v60 = vunpack.i.h.bf16 %v4011_v48  ;;  %v4012_v3 = vunpack.i.l.bf16 %v4011_v48  ;;  %3689 = vmatmul.mubr.msk.bf16.gmra.mxu0 %vm745_vm1, %v2107_v58  ;;  %v1963_v58 = vsel %vm1955_vm3, %v1930_v36, %v3933_v0  ;;  %v4299_v48 = vpack.i.bf16 %v5239_v43, %v5233_v37 }
 0x1c6   : > { %4290 = vrot.lane.b32.xlu0 %v4314_v33, %s4500_s16  ;;  %3692 = vmatprep.mubr.msk.bf16.mxu0 %vm745_vm1, %v2110_v49  ;;  %v3983_v49 = vunpack.i.h.bf16 %v5160_v12  ;;  %v2093_v51 = vpack.c.bf16 %v1963_v58, %v1962_v50  ;;  %v2113_v12 = vpack.c.bf16 %v5038_v22, %v5036_v21  ;;  %v1900_v36 = vsel %vm745_vm1, %v4886_v54, %v3938_v57 }
 0x1c7   : > { %4315 = vrot.lane.b32.xlu1 %v4314_v33, %s4498_s18  ;;  %v2058_v4 = vsel %vm1955_vm3, %v2026_v55, %v4012_v3  ;;  %v2059_v46 = vsel %vm1955_vm3, %v2027_v62, %v4013_v60  ;;  %v2116_v33 = vpack.c.bf16 %v5018_v59, %v5016_v56  ;;  %v1899_v60 = vsel %vm745_vm1, %v4884_v53, %v3937_v38 }
 0x1c8   : > { %v4016_v26 = vpop.permute.xlu0 %4015  ;;  %v2094_v40 = vpack.c.bf16 %v2059_v46, %v2058_v4  ;;  %v1931_v22 = vsel %vm503_vm0, %v1899_v60, %v3942_v24  ;;  %v1932_v0 = vsel %vm503_vm0, %v1900_v36, %v3943_v63  ;;  %v4324_v57 = vpack.i.bf16 %v1090_v17, %v1089_v61 }
 0x1c9   : > { %v4021_v44 = vpop.permute.xlu1 %4020  ;;  %v4018_v45 = vunpack.i.h.bf16 %v4016_v26  ;;  %v4017_v7 = vunpack.i.l.bf16 %v4016_v26  ;;  %v2119_v4 = vpack.c.bf16 %v5130_v34, %v5128_v47  ;;  %v2122_v26 = vpack.c.bf16 %v5078_v1, %v5076_v52  ;;  %v844_v34 = vld [vmem:[#allocation2 + $0x78] sm:$0xff] }
 0x1ca   : > { %4295 = vrot.lane.b32.xlu0 %v4319_v13, %s4498_s18  ;;  %v4023_v39 = vunpack.i.h.bf16 %v4021_v44  ;;  %v4022_v2 = vunpack.i.l.bf16 %v4021_v44  ;;  %2387 = vmatprep.mubr.bf16.mxu1 %v2094_v40  ;;  %v3988_v24 = vunpack.i.h.bf16 %v5171_v25  ;;  %v3987_v47 = vunpack.i.l.bf16 %v5171_v25  ;;  %v972_v25 = vld [vmem:[#allocation2 + $0x91] sm:$0xff] }
 0x1cb   : > { %4320 = vrot.lane.b32.xlu1 %v4319_v13, %s4499_s26  ;;  %v1997_v16 = vsel %vm745_vm1, %v971_v10, %v4018_v45  ;;  %v1996_v20 = vsel %vm745_vm1, %v970_v27, %v4017_v7  ;;  %2388 = vmatmul.mubr.bf16.gmra.mxu1 %v2093_v51  ;;  %v845_v27 = vld [vmem:[#allocation2 + $0x80] sm:$0xff]  ;;  %v3992_v40 = vunpack.i.l.bf16 %v5169_v6 }
 0x1cc   : > { %v5245_v19 = vpop.permute.xlu0 %4035  ;;  %v2028_v5 = vsel %vm503_vm0, %v1996_v20, %v3977_v42  ;;  %v2029_v29 = vsel %vm503_vm0, %v1997_v16, %v3978_v35  ;;  %v1964_v59 = vsel %vm1955_vm3, %v1931_v22, %v4022_v2  ;;  %v2128_v42 = vpack.c.bf16 %v5239_v43, %v5233_v37 }
 0x1cd   : > { %v4026_v31 = vpop.permute.xlu1 %4025  ;;  %v2060_v3 = vsel %vm1955_vm3, %v2028_v5, %v3982_v9  ;;  %v2061_v21 = vsel %vm1955_vm3, %v2029_v29, %v3983_v49  ;;  %3693 = vmatmul.mubr.msk.bf16.gmra.mxu0 %vm745_vm1, %v2113_v12  ;;  %v3993_v49 = vunpack.i.h.bf16 %v5169_v6  ;;  %v2125_v20 = vpack.c.bf16 %v5203_v32, %v5201_v30  ;;  %v847_v29 = vld [vmem:[#allocation2 + $0x98] sm:$0xff] }
 0x1ce   : > { %4300 = vrot.lane.b32.xlu0 %v4299_v48, %s4498_s18  ;;  %v2097_v56 = vpack.c.bf16 %v2061_v21, %v2060_v3  ;;  %3696 = vmatprep.mubr.msk.bf16.mxu0 %vm745_vm1, %v2116_v33  ;;  %v4028_v38 = vunpack.i.h.bf16 %v4026_v31  ;;  %v4027_v44 = vunpack.i.l.bf16 %v4026_v31  ;;  %v1999_v51 = vsel %vm745_vm1, %v973_v15, %v3988_v24  ;;  %v1121_v3 = vld [vmem:[#allocation2 + $0x19a] sm:$0xff]  ;;  %v1122_v21 = vld [vmem:[#allocation2 + $0x1a2] sm:$0xff]  ;;  %s3230_s18 = scalar_lea.sflag [#allocation5], %s4651_s11 }
 0x1cf   : > { %4330 = vrot.lane.b32.xlu1 %v5164_v23, %s4500_s16  ;;  %v1965_v23 = vsel %vm1955_vm3, %v1932_v0, %v4023_v39  ;;  %v1998_v39 = vsel %vm745_vm1, %v972_v25, %v3987_v47  ;;  %v3997_v12 = vunpack.i.l.bf16 %v5184_v41  ;;  %v1904_v48 = vsel %vm745_vm1, %v847_v29, %v3998_v11 }
 0x1d0   : > { %v5268_v53 = vpop.permute.xlu0 %4040  ;;  %2395 = vmatprep.mubr.bf16.mxu1 %v2097_v56  ;;  %v2096_v55 = vpack.c.bf16 %v1965_v23, %v1964_v59  ;;  %v1902_v10 = vsel %vm745_vm1, %v845_v27, %v4028_v38  ;;  %v1901_v52 = vsel %vm745_vm1, %v844_v34, %v4027_v44  ;;  %v4003_v33 = vunpack.i.h.bf16 %v5197_v8 }
 0x1d1   : > { %v4031_v54 = vpop.permute.xlu1 %4030  ;;  %v4002_v22 = vunpack.i.l.bf16 %v5197_v8  ;;  %v4038_v59 = vunpack.i.h.bf16 %v5245_v19  ;;  %v4037_v23 = vunpack.i.l.bf16 %v5245_v19  ;;  %v2131_v8 = vpack.c.bf16 %v1122_v21, %v1121_v3 }
 0x1d2   : > { %4305 = vrot.lane.b32.xlu0 %v4304_v28, %s4499_s26  ;;  %v4033_v46 = vunpack.i.h.bf16 %v4031_v54  ;;  %v4032_v50 = vunpack.i.l.bf16 %v4031_v54  ;;  %v846_v54 = vld [vmem:[#allocation2 + $0x90] sm:$0xff]  ;;  %v1936_v34 = vsel %vm503_vm0, %v1904_v48, %v4003_v33  ;;  %v976_v48 = vld [vmem:[#allocation2 + $0xc1] sm:$0xff]  ;;  %s4428_s26 = scalar_lea.vmem %s5754_s23, 4096 }
 0x1d3   : > { %2396 = vmatmul.mubr.bf16.gmra.mxu1 %v2096_v55  ;;  %v974_v55 = vld [vmem:[#allocation2 + $0xa9] sm:$0xff]  ;;  %p4429_p11 = scmp.ne.s32.totalorder %s5754_s23, %s4428_s26 }
 0x1d4   : > { %v5275_v13 = vpop.permute.xlu0 %4045  ;;  %v1933_v7 = vsel %vm503_vm0, %v1901_v52, %v4032_v50  ;;  %v1934_v35 = vsel %vm503_vm0, %v1902_v10, %v4033_v46  ;;  %v4042_v46 = vunpack.i.l.bf16 %v5268_v53  ;;  %v977_v33 = vld [vmem:[#allocation2 + $0xc9] sm:$0xff] }
 0x1d5   : > { %v5273_v62 = vpop.permute.xlu1 %4050  ;;  %3697 = vmatmul.mubr.msk.bf16.gmra.mxu0 %vm745_vm1, %v2119_v4  ;;  %v1966_v31 = vsel %vm1955_vm3, %v1933_v7, %v3992_v40  ;;  %v1967_v5 = vsel %vm1955_vm3, %v1934_v35, %v3993_v49  ;;  %v1903_v4 = vsel %vm745_vm1, %v846_v54, %v3997_v12  ;;  %p4430_p13 = pnand %p4429_p11, %p5820_p12 }
 0x1d6   : > { %4325 = vrot.lane.b32.xlu0 %v4324_v57, %s4500_s16  ;;  %3700 = vmatprep.mubr.msk.bf16.mxu0 %vm745_vm1, %v2122_v26  ;;  %v2099_v56 = vpack.c.bf16 %v1967_v5, %v1966_v31  ;;  %v975_v57 = vld [vmem:[#allocation2 + $0xb1] sm:$0xff]  ;;  %v4043_v26 = vunpack.i.h.bf16 %v5268_v53  ;;  %v1935_v47 = vsel %vm503_vm0, %v1903_v4, %v4002_v22 }
 0x1d7   : > { %p4431_p4 = pneg %p4430_p13 }
 0x1d8   : > { %v4066_v63 = vpop.permute.xlu0 %4065 }
 0x1d9   : > { %v5284_v58 = vpop.permute.xlu1 %4055  ;;  %v4068_v1 = vunpack.i.h.bf16 %v4066_v63  ;;  %v4067_v45 = vunpack.i.l.bf16 %v4066_v63 }
 0x1da   : > { %v4058_v54 = vunpack.i.h.bf16 %v5284_v58 }
 0x1db   : > { %v2030_v43 = vsel %vm503_vm0, %v1998_v39, %v4067_v45  ;;  %v2031_v6 = vsel %vm503_vm0, %v1999_v51, %v4068_v1  ;;  %v4048_v51 = vunpack.i.h.bf16 %v5275_v13  ;;  %v4047_v39 = vunpack.i.l.bf16 %v5275_v13 }
 0x1dc   : > { %v4071_v16 = vpop.permute.xlu0 %4070 }
 0x1dd   : > { %v5297_v9 = vpop.permute.xlu1 %4060  ;;  %v4073_v2 = vunpack.i.h.bf16 %v4071_v16  ;;  %v4072_v37 = vunpack.i.l.bf16 %v4071_v16  ;;  %3701 = vmatmul.mubr.msk.bf16.gmra.mxu0 %vm745_vm1, %v2125_v20  ;;  %v2002_v3 = vsel %vm745_vm1, %v976_v48, %v4047_v39 }
 0x1de   : > { %3704 = vmatprep.mubr.msk.bf16.mxu0 %vm745_vm1, %v2128_v42 }
 0x1df   : > { %v2062_v30 = vsel %vm1955_vm3, %v2030_v43, %v4072_v37  ;;  %v2063_v32 = vsel %vm1955_vm3, %v2031_v6, %v4073_v2  ;;  %v848_v2 = vld [vmem:[#allocation2 + $0xa8] sm:$0xff]  ;;  %v849_v37 = vld [vmem:[#allocation2 + $0xb0] sm:$0xff] }
 0x1e0   : > { %v4076_v36 = vpop.permute.xlu0 %4075  ;;  %v2100_v60 = vpack.c.bf16 %v2063_v32, %v2062_v30  ;;  %v4053_v30 = vunpack.i.h.bf16 %v5273_v62  ;;  %v4052_v32 = vunpack.i.l.bf16 %v5273_v62 }
 0x1e1   : > { %v4081_v28 = vpop.permute.xlu1 %4080  ;;  %v4078_v41 = vunpack.i.h.bf16 %v4076_v36  ;;  %v4077_v0 = vunpack.i.l.bf16 %v4076_v36  ;;  %v4372_v36 = vld [vmem:[%s5806_s7 + $0x18] sm:$0xff]  }
 0x1e2   : > { %v4083_v61 = vunpack.i.h.bf16 %v4081_v28  ;;  %v4082_v17 = vunpack.i.l.bf16 %v4081_v28  ;;  %2403 = vmatprep.mubr.bf16.mxu1 %v2100_v60  ;;  %v2003_v60 = vsel %vm745_vm1, %v977_v33, %v4048_v51  ;;  %3744 = vmatprep.subr.bf16.mxu1 %v4372_v36 }
 0x1e3   : > { %v2001_v38 = vsel %vm745_vm1, %v975_v57, %v4078_v41  ;;  %v2000_v44 = vsel %vm745_vm1, %v974_v55, %v4077_v0  ;;  %2404 = vmatmul.mubr.bf16.gmra.mxu1 %v2099_v56 }
 0x1e4   : > { %v5322_v63 = vpop.permute.xlu0 %4095  ;;  %v2032_v19 = vsel %vm503_vm0, %v2000_v44, %v4037_v23  ;;  %v2033_v24 = vsel %vm503_vm0, %v2001_v38, %v4038_v59  ;;  %v1968_v52 = vsel %vm1955_vm3, %v1935_v47, %v4082_v17  ;;  %v1969_v1 = vsel %vm1955_vm3, %v1936_v34, %v4083_v61  ;;  %3745 = vmatpush3.bf16.msra.mxu1 %v4372_v36  ;;  %v850_v38 = vld [vmem:[#allocation2 + $0xc0] sm:$0xff] }
 0x1e5   : > { %v4086_v50 = vpop.permute.xlu1 %4085  ;;  %v2064_v27 = vsel %vm1955_vm3, %v2032_v19, %v4042_v46  ;;  %v2065_v10 = vsel %vm1955_vm3, %v2033_v24, %v4043_v26  ;;  %3705 = vmatmul.mubr.msk.bf16.gmra.mxu0 %vm745_vm1, %v2131_v8  ;;  %v2102_v35 = vpack.c.bf16 %v1969_v1, %v1968_v52  ;;  %v4057_v59 = vunpack.i.l.bf16 %v5284_v58  ;;  %v978_v34 = vld [vmem:[#allocation2 + $0xd9] sm:$0xff] }
 0x1e6   : > { %v2103_v53 = vpack.c.bf16 %v2065_v10, %v2064_v27  ;;  %v4088_v40 = vunpack.i.h.bf16 %v4086_v50  ;;  %v4087_v25 = vunpack.i.l.bf16 %v4086_v50  ;;  %v4063_v17 = vunpack.i.h.bf16 %v5297_v9  ;;  %v851_v50 = vld [vmem:[#allocation2 + $0xc8] sm:$0xff] }
 0x1e7   : > { %v4062_v44 = vunpack.i.l.bf16 %v5297_v9  ;;  %v4098_v19 = vunpack.i.h.bf16 %v5322_v63  ;;  %v4097_v58 = vunpack.i.l.bf16 %v5322_v63  ;;  %v979_v27 = vld [vmem:[#allocation2 + $0xe1] sm:$0xff]  ;;  %v1908_v10 = vsel %vm745_vm1, %v851_v50, %v4058_v54 }
 0x1e8   : > { %v5333_v7 = vpop.permute.xlu0 %4100  ;;  %2411 = vmatprep.mubr.bf16.mxu1 %v2103_v53  ;;  %v1906_v43 = vsel %vm745_vm1, %v849_v37, %v4088_v40  ;;  %v1905_v6 = vsel %vm745_vm1, %v848_v2, %v4087_v25  ;;  %v1907_v52 = vsel %vm745_vm1, %v850_v38, %v4057_v59  ;;  %v4373_v53 = vld [vmem:[%s5806_s7 + $0x10] sm:$0xff]   ;;  %v981_v38 = vld [vmem:[#allocation2 + $0xf9] sm:$0xff] }
 0x1e9   : > { %v4091_v45 = vpop.permute.xlu1 %4090  ;;  %v4103_v63 = vunpack.i.h.bf16 %v5333_v7  ;;  %3746 = vmatprep.subr.bf16.mxu1 %v4373_v53 }
 0x1ea   : > { %v4093_v15 = vunpack.i.h.bf16 %v4091_v45  ;;  %v4092_v11 = vunpack.i.l.bf16 %v4091_v45  ;;  %v4102_v45 = vunpack.i.l.bf16 %v5333_v7  ;;  %3747 = vmatpush3.bf16.msra.mxu1 %v4373_v53 }
 0x1eb   : > { %2412 = vmatmul.mubr.bf16.gmra.mxu1 %v2102_v35 }
 0x1ec   : > { %v5337_v49 = vpop.permute.xlu0 %4105  ;;  %v1937_v29 = vsel %vm503_vm0, %v1905_v6, %v4092_v11  ;;  %v1938_v12 = vsel %vm503_vm0, %v1906_v43, %v4093_v15  ;;  %v1939_v11 = vsel %vm503_vm0, %v1907_v52, %v4062_v44  ;;  %v4374_v43 = vld [vmem:[%s5804_s5 + $0x8] sm:$0xff]  }
 0x1ed   : > { %v5335_v42 = vpop.permute.xlu1 %4110  ;;  %v1970_v62 = vsel %vm1955_vm3, %v1937_v29, %v4052_v32  ;;  %v1971_v56 = vsel %vm1955_vm3, %v1938_v12, %v4053_v30  ;;  %v4375_v6 = vld [vmem:[%s5806_s7 + $0x8] sm:$0xff]   ;;  %3708 = vmatprep.subr.bf16.mxu0 %v4374_v43  ;;  %v4376_v12 = vld [vmem:[%s5804_s5] sm:$0xff]  }
 0x1ee   : > { %v2105_v46 = vpack.c.bf16 %v1971_v56, %v1970_v62  ;;  %3748 = vmatprep.subr.bf16.mxu1 %v4375_v6  ;;  %3709 = vmatpush3.bf16.msra.mxu0 %v4374_v43  ;;  %v4377_v30 = vld [vmem:[%s5806_s7] sm:$0xff]  }
 0x1ef   : > { %3749 = vmatpush3.bf16.msra.mxu1 %v4375_v6  ;;  %3710 = vmatprep.subr.bf16.mxu0 %v4376_v12  ;;  %v853_v62 = vld [vmem:[#allocation2 + $0xe0] sm:$0xff] }
 0x1f0   : > { %v4126_v20 = vpop.permute.xlu0 %4125  ;;  %3750 = vmatprep.subr.bf16.mxu1 %v4377_v30 }
 0x1f1   : > { %v5339_v16 = vpop.permute.xlu1 %4115  ;;  %v4128_v31 = vunpack.i.h.bf16 %v4126_v20  ;;  %v4127_v5 = vunpack.i.l.bf16 %v4126_v20  ;;  %v1940_v20 = vsel %vm503_vm0, %v1908_v10, %v4063_v17 }
 0x1f2   : > { %3711 = vmatpush3.bf16.msra.mxu0 %v4376_v12 }
 0x1f3   : > { %v2034_v41 = vsel %vm503_vm0, %v2002_v3, %v4127_v5  ;;  %v2035_v0 = vsel %vm503_vm0, %v2003_v60, %v4128_v31  ;;  %3751 = vmatpush3.bf16.msra.mxu1 %v4377_v30 }
 0x1f4   : > { %v4131_v13 = vpop.permute.xlu0 %4130 }
 0x1f5   : > { %v5349_v28 = vpop.permute.xlu1 %4120  ;;  %v4133_v21 = vunpack.i.h.bf16 %v4131_v13  ;;  %v4132_v22 = vunpack.i.l.bf16 %v4131_v13 }
 0x1f6   : > { %v4123_v52 = vunpack.i.h.bf16 %v5349_v28 }
 0x1f7   : > { %v2066_v23 = vsel %vm1955_vm3, %v2034_v41, %v4132_v22  ;;  %v2067_v61 = vsel %vm1955_vm3, %v2035_v0, %v4133_v21  ;;  %v4108_v22 = vunpack.i.h.bf16 %v5337_v49  ;;  %v4107_v41 = vunpack.i.l.bf16 %v5337_v49  ;;  %v852_v0 = vld [vmem:[#allocation2 + $0xd8] sm:$0xff] }
 0x1f8   : > { %v4136_v57 = vpop.permute.xlu0 %4135  ;;  %v2106_v4 = vpack.c.bf16 %v2067_v61, %v2066_v23 }
 0x1f9   : > { %v4141_v55 = vpop.permute.xlu1 %4140  ;;  %v4138_v8 = vunpack.i.h.bf16 %v4136_v57  ;;  %v4137_v26 = vunpack.i.l.bf16 %v4136_v57  ;;  %v4112_v57 = vunpack.i.l.bf16 %v5335_v42 }
 0x1fa   : > { %v4143_v24 = vunpack.i.h.bf16 %v4141_v55  ;;  %v4142_v47 = vunpack.i.l.bf16 %v4141_v55  ;;  %2419 = vmatprep.mubr.bf16.mxu1 %v2106_v4  ;;  %v4113_v55 = vunpack.i.h.bf16 %v5335_v42  ;;  %v980_v4 = vld [vmem:[#allocation2 + $0xf1] sm:$0xff]  ;;  %v4118_v42 = vunpack.i.h.bf16 %v5339_v16 }
 0x1fb   : > { %v2005_v1 = vsel %vm745_vm1, %v979_v27, %v4138_v8  ;;  %v2004_v9 = vsel %vm745_vm1, %v978_v34, %v4137_v26  ;;  %2420 = vmatmul.mubr.bf16.gmra.mxu1 %v2105_v46  ;;  %v2007_v8 = vsel %vm745_vm1, %v981_v38, %v4108_v22  ;;  %v2006_v26 = vsel %vm745_vm1, %v980_v4, %v4107_v41 }
 0x1fc   : > { %v5377_v40 = vpop.permute.xlu0 %4155  ;;  %v2036_v25 = vsel %vm503_vm0, %v2004_v9, %v4097_v58  ;;  %v2037_v15 = vsel %vm503_vm0, %v2005_v1, %v4098_v19  ;;  %v1972_v2 = vsel %vm1955_vm3, %v1939_v11, %v4142_v47  ;;  %v1973_v7 = vsel %vm1955_vm3, %v1940_v20, %v4143_v24  ;;  %v855_v11 = vld [vmem:[#allocation2 + $0xf8] sm:$0xff] }
 0x1fd   : > { %v4146_v35 = vpop.permute.xlu1 %4145  ;;  %v2068_v51 = vsel %vm1955_vm3, %v2036_v25, %v4102_v45  ;;  %v2069_v39 = vsel %vm1955_vm3, %v2037_v15, %v4103_v63  ;;  %v2108_v29 = vpack.c.bf16 %v1973_v7, %v1972_v2  ;;  %v4117_v34 = vunpack.i.l.bf16 %v5339_v16  ;;  %v854_v63 = vld [vmem:[#allocation2 + $0xf0] sm:$0xff] }
 0x1fe   : > { %v2109_v37 = vpack.c.bf16 %v2069_v39, %v2068_v51  ;;  %v4148_v33 = vunpack.i.h.bf16 %v4146_v35  ;;  %v4147_v13 = vunpack.i.l.bf16 %v4146_v35  ;;  %v4122_v45 = vunpack.i.l.bf16 %v5349_v28  ;;  %v982_v2 = vld [vmem:[#allocation2 + $0x109] sm:$0xff]  ;;  %v983_v7 = vld [vmem:[#allocation2 + $0x111] sm:$0xff] }
 0x1ff   : > { %v4158_v20 = vunpack.i.h.bf16 %v5377_v40  ;;  %v4157_v16 = vunpack.i.l.bf16 %v5377_v40  ;;  %v1911_v43 = vsel %vm745_vm1, %v854_v63, %v4117_v34 }
 0x200   : > { %v5393_v5 = vpop.permute.xlu0 %4160  ;;  %2427 = vmatprep.mubr.bf16.mxu1 %v2109_v37  ;;  %v1910_v56 = vsel %vm745_vm1, %v853_v62, %v4148_v33  ;;  %v1909_v54 = vsel %vm745_vm1, %v852_v0, %v4147_v13  ;;  %v1912_v37 = vsel %vm745_vm1, %v855_v11, %v4118_v42  ;;  %v1943_v13 = vsel %vm503_vm0, %v1911_v43, %v4122_v45 }
 0x201   : > { %v4151_v31 = vpop.permute.xlu1 %4150 }
 0x202   : > { %v4153_v36 = vunpack.i.h.bf16 %v4151_v31  ;;  %v4152_v60 = vunpack.i.l.bf16 %v4151_v31  ;;  %v4163_v31 = vunpack.i.h.bf16 %v5393_v5 }
 0x203   : > { %2428 = vmatmul.mubr.bf16.gmra.mxu1 %v2108_v29  ;;  %v4162_v29 = vunpack.i.l.bf16 %v5393_v5 }
 0x204   : > { %v5403_v48 = vpop.permute.xlu0 %4165  ;;  %v1941_v61 = vsel %vm503_vm0, %v1909_v54, %v4152_v60  ;;  %v1942_v17 = vsel %vm503_vm0, %v1910_v56, %v4153_v36  ;;  %v1944_v36 = vsel %vm503_vm0, %v1912_v37, %v4123_v52  ;;  %v985_v52 = vld [vmem:[#allocation2 + $0x129] sm:$0xff] }
 0x205   : > { %v5401_v32 = vpop.permute.xlu1 %4170  ;;  %v1974_v24 = vsel %vm1955_vm3, %v1941_v61, %v4112_v57  ;;  %v1975_v47 = vsel %vm1955_vm3, %v1942_v17, %v4113_v55  ;;  %v4168_v38 = vunpack.i.h.bf16 %v5403_v48 }
 0x206   : > { %v2111_v15 = vpack.c.bf16 %v1975_v47, %v1974_v24  ;;  %v4173_v34 = vunpack.i.h.bf16 %v5401_v32 }
 0x208   : > { %v4186_v21 = vpop.permute.xlu0 %4185 }
 0x209   : > { %v5405_v3 = vpop.permute.xlu1 %4175  ;;  %v4188_v59 = vunpack.i.h.bf16 %v4186_v21  ;;  %v4187_v23 = vunpack.i.l.bf16 %v4186_v21 }
 0x20b   : > { %v2038_v19 = vsel %vm503_vm0, %v2006_v26, %v4187_v23  ;;  %v2039_v58 = vsel %vm503_vm0, %v2007_v8, %v4188_v59  ;;  %v856_v8 = vld [vmem:[#allocation2 + $0x108] sm:$0xff]  ;;  %v857_v26 = vld [vmem:[#allocation2 + $0x110] sm:$0xff] }
 0x20c   : > { %v4191_v49 = vpop.permute.xlu0 %4190 }
 0x20d   : > { %v5415_v44 = vpop.permute.xlu1 %4180  ;;  %v4193_v46 = vunpack.i.h.bf16 %v4191_v49  ;;  %v4192_v50 = vunpack.i.l.bf16 %v4191_v49  ;;  %v4167_v49 = vunpack.i.l.bf16 %v5403_v48 }
 0x20e   : > { %v4182_v37 = vunpack.i.l.bf16 %v5415_v44 }
 0x20f   : > { %v2070_v27 = vsel %vm1955_vm3, %v2038_v19, %v4192_v50  ;;  %v2071_v10 = vsel %vm1955_vm3, %v2039_v58, %v4193_v46 }
 0x210   : > { %v4196_v9 = vpop.permute.xlu0 %4195  ;;  %v2112_v53 = vpack.c.bf16 %v2071_v10, %v2070_v27  ;;  %v4172_v27 = vunpack.i.l.bf16 %v5401_v32  ;;  %v984_v10 = vld [vmem:[#allocation2 + $0x121] sm:$0xff] }
 0x211   : > { %v4201_v1 = vpop.permute.xlu1 %4200  ;;  %v4198_v35 = vunpack.i.h.bf16 %v4196_v9  ;;  %v4197_v25 = vunpack.i.l.bf16 %v4196_v9  ;;  %v2010_v9 = vsel %vm745_vm1, %v984_v10, %v4167_v49  ;;  %v860_v10 = vld [vmem:[#allocation2 + $0x138] sm:$0xff] }
 0x212   : > { %v4203_v51 = vunpack.i.h.bf16 %v4201_v1  ;;  %v4202_v39 = vunpack.i.l.bf16 %v4201_v1  ;;  %2435 = vmatprep.mubr.bf16.mxu1 %v2112_v53  ;;  %v2011_v1 = vsel %vm745_vm1, %v985_v52, %v4168_v38  ;;  %v861_v52 = vld [vmem:[#allocation2 + $0x140] sm:$0xff] }
 0x213   : > { %v2009_v6 = vsel %vm745_vm1, %v983_v7, %v4198_v35  ;;  %v2008_v28 = vsel %vm745_vm1, %v982_v2, %v4197_v25  ;;  %2436 = vmatmul.mubr.bf16.gmra.mxu1 %v2111_v15 }
 0x214   : > { %v5437_v40 = vpop.permute.xlu0 %4215  ;;  %v2040_v30 = vsel %vm503_vm0, %v2008_v28, %v4157_v16  ;;  %v2041_v33 = vsel %vm503_vm0, %v2009_v6, %v4158_v20  ;;  %v1976_v22 = vsel %vm1955_vm3, %v1943_v13, %v4202_v39  ;;  %v1977_v41 = vsel %vm1955_vm3, %v1944_v36, %v4203_v51  ;;  %v859_v13 = vld [vmem:[#allocation2 + $0x128] sm:$0xff] }
 0x215   : > { %v4206_v12 = vpop.permute.xlu1 %4205  ;;  %v2072_v60 = vsel %vm1955_vm3, %v2040_v30, %v4162_v29  ;;  %v2073_v21 = vsel %vm1955_vm3, %v2041_v33, %v4163_v31  ;;  %v2114_v56 = vpack.c.bf16 %v1977_v41, %v1976_v22  ;;  %v4178_v16 = vunpack.i.h.bf16 %v5405_v3  ;;  %v858_v33 = vld [vmem:[#allocation2 + $0x120] sm:$0xff] }
 0x216   : > { %v2115_v5 = vpack.c.bf16 %v2073_v21, %v2072_v60  ;;  %v4208_v23 = vunpack.i.h.bf16 %v4206_v12  ;;  %v4207_v61 = vunpack.i.l.bf16 %v4206_v12  ;;  %v4177_v51 = vunpack.i.l.bf16 %v5405_v3  ;;  %v4378_v60 = vld [vmem:[#allocation2 + $0x141] sm:$0xff] }
 0x217   : > { %v4183_v39 = vunpack.i.h.bf16 %v5415_v44  ;;  %v4218_v31 = vunpack.i.h.bf16 %v5437_v40  ;;  %v4217_v29 = vunpack.i.l.bf16 %v5437_v40  ;;  %v4379_v44 = vld [vmem:[#allocation2 + $0x139] sm:$0xff] }
 0x218   : > { %v5447_v62 = vpop.permute.xlu0 %4220  ;;  %2443 = vmatprep.mubr.bf16.mxu1 %v2115_v5  ;;  %v1914_v46 = vsel %vm745_vm1, %v857_v26, %v4208_v23  ;;  %v1913_v50 = vsel %vm745_vm1, %v856_v8, %v4207_v61  ;;  %v1916_v5 = vsel %vm745_vm1, %v859_v13, %v4178_v16  ;;  %v1915_v40 = vsel %vm745_vm1, %v858_v33, %v4177_v51 }
 0x219   : > { %v4211_v0 = vpop.permute.xlu1 %4210  ;;  %v4223_v3 = vunpack.i.h.bf16 %v5447_v62  ;;  %v4222_v36 = vunpack.i.l.bf16 %v5447_v62  ;;  %v1947_v62 = vsel %vm503_vm0, %v1915_v40, %v4182_v37  ;;  %v1948_v61 = vsel %vm503_vm0, %v1916_v5, %v4183_v39  ;;  %v863_v5 = vld [vmem:[#allocation2 + $0x158] sm:$0xff] }
 0x21a   : > { %v4213_v17 = vunpack.i.h.bf16 %v4211_v0  ;;  %v4212_v55 = vunpack.i.l.bf16 %v4211_v0 }
 0x21b   : > { %2444 = vmatmul.mubr.bf16.gmra.mxu1 %v2114_v56 }
 0x21c   : > { %v5451_v59 = vpop.permute.xlu0 %4225  ;;  %v1945_v24 = vsel %vm503_vm0, %v1913_v50, %v4212_v55  ;;  %v1946_v47 = vsel %vm503_vm0, %v1914_v46, %v4213_v17 }
 0x21d   : > { %v5449_v54 = vpop.permute.xlu1 %4230  ;;  %v1978_v25 = vsel %vm1955_vm3, %v1945_v24, %v4172_v27  ;;  %v1979_v15 = vsel %vm1955_vm3, %v1946_v47, %v4173_v34  ;;  %v4228_v34 = vunpack.i.h.bf16 %v5451_v59  ;;  %v4227_v27 = vunpack.i.l.bf16 %v5451_v59  ;;  %v989_v59 = vld [vmem:[#allocation2 + $0x159] sm:$0xff] }
 0x21e   : > { %v2117_v28 = vpack.c.bf16 %v1979_v15, %v1978_v25  ;;  %v4233_v25 = vunpack.i.h.bf16 %v5449_v54  ;;  %v4232_v15 = vunpack.i.l.bf16 %v5449_v54 }
 0x220   : > { %v4241_v4 = vpop.permute.xlu0 %4240 }
 0x221   : > { %v5453_v57 = vpop.permute.xlu1 %4235  ;;  %v4243_v19 = vunpack.i.h.bf16 %v4241_v4  ;;  %v4242_v58 = vunpack.i.l.bf16 %v4241_v4 }
 0x223   : > { %v2042_v45 = vsel %vm503_vm0, %v2010_v9, %v4242_v58  ;;  %v2043_v35 = vsel %vm503_vm0, %v2011_v1, %v4243_v19 }
 0x224   : > { %v4246_v48 = vpop.permute.xlu0 %4245 }
 0x225   : > { %v4256_v42 = vpop.permute.xlu1 %4255  ;;  %v4248_v53 = vunpack.i.h.bf16 %v4246_v48  ;;  %v4247_v63 = vunpack.i.l.bf16 %v4246_v48 }
 0x226   : > { %v4258_v12 = vunpack.i.h.bf16 %v4256_v42  ;;  %v4257_v30 = vunpack.i.l.bf16 %v4256_v42 }
 0x227   : > { %v2074_v32 = vsel %vm1955_vm3, %v2042_v45, %v4247_v63  ;;  %v2075_v20 = vsel %vm1955_vm3, %v2043_v35, %v4248_v53 }
 0x228   : > { %v4251_v2 = vpop.permute.xlu0 %4250  ;;  %v2118_v7 = vpack.c.bf16 %v2075_v20, %v2074_v32  ;;  %v1980_v38 = vsel %vm1955_vm3, %v1947_v62, %v4257_v30  ;;  %v1981_v49 = vsel %vm1955_vm3, %v1948_v61, %v4258_v12  ;;  %v2015_v20 = vsel %vm745_vm1, %v989_v59, %v4228_v34  ;;  %v4382_v59 = vld [vmem:[#allocation2 + $0x189] sm:$0xff] }
 0x229   : > { %v4261_v11 = vpop.permute.xlu1 %4260  ;;  %v4253_v43 = vunpack.i.h.bf16 %v4251_v2  ;;  %v4252_v6 = vunpack.i.l.bf16 %v4251_v2  ;;  %v2120_v46 = vpack.c.bf16 %v1981_v49, %v1980_v38 }
 0x22a   : > { %2451 = vmatprep.mubr.bf16.mxu1 %v2118_v7  ;;  %v4263_v50 = vunpack.i.h.bf16 %v4261_v11  ;;  %v4262_v19 = vunpack.i.l.bf16 %v4261_v11  ;;  %v988_v11 = vld [vmem:[#allocation2 + $0x151] sm:$0xff] }
 0x22b   : > { %v2013_v21 = vsel %vm745_vm1, %v4378_v60, %v4253_v43  ;;  %v2012_v22 = vsel %vm745_vm1, %v4379_v44, %v4252_v6  ;;  %2452 = vmatmul.mubr.bf16.gmra.mxu1 %v2117_v28  ;;  %v2014_v16 = vsel %vm745_vm1, %v988_v11, %v4227_v27  ;;  %v4238_v28 = vunpack.i.h.bf16 %v5453_v57 }
 0x22c   : > { %v5483_v0 = vpop.permute.xlu0 %4275  ;;  %v2044_v56 = vsel %vm503_vm0, %v2012_v22, %v4217_v29  ;;  %v2045_v23 = vsel %vm503_vm0, %v2013_v21, %v4218_v31  ;;  %v1918_v48 = vsel %vm745_vm1, %v861_v52, %v4263_v50  ;;  %v1917_v1 = vsel %vm745_vm1, %v860_v10, %v4262_v19 }
 0x22d   : > { %v4266_v41 = vpop.permute.xlu1 %4265  ;;  %v2076_v17 = vsel %vm1955_vm3, %v2044_v56, %v4222_v36  ;;  %v2077_v55 = vsel %vm1955_vm3, %v2045_v23, %v4223_v3  ;;  %v4237_v31 = vunpack.i.l.bf16 %v5453_v57  ;;  %v4278_v21 = vunpack.i.h.bf16 %v5483_v0  ;;  %v862_v57 = vld [vmem:[#allocation2 + $0x150] sm:$0xff] }
 0x22e   : > { %v2121_v4 = vpack.c.bf16 %v2077_v55, %v2076_v17  ;;  %v4268_v58 = vunpack.i.h.bf16 %v4266_v41  ;;  %v4267_v24 = vunpack.i.l.bf16 %v4266_v41  ;;  %v4277_v44 = vunpack.i.l.bf16 %v5483_v0 }
 0x22f   : > { %v1920_v0 = vsel %vm745_vm1, %v863_v5, %v4238_v28  ;;  %v1919_v61 = vsel %vm745_vm1, %v862_v57, %v4237_v31  ;;  %v5572_v5 = vld [vmem:[%s5803_s4] ss:$0 sm:$0xff] }
 0x230   : > { %v5495_v26 = vpop.permute.xlu0 %4280  ;;  %2459 = vmatprep.mubr.bf16.mxu1 %v2121_v4  ;;  %v1949_v63 = vsel %vm503_vm0, %v1917_v1, %v4267_v24  ;;  %v1950_v45 = vsel %vm503_vm0, %v1918_v48, %v4268_v58 }
 0x231   : > { %v5493_v8 = vpop.permute.xlu1 %4270  ;;  %v1982_v37 = vsel %vm1955_vm3, %v1949_v63, %v4232_v15  ;;  %v1983_v43 = vsel %vm1955_vm3, %v1950_v45, %v4233_v25  ;;  %v4283_v40 = vunpack.i.h.bf16 %v5495_v26  ;;  %v4282_v56 = vunpack.i.l.bf16 %v5495_v26  ;;  %v4381_v45 = vld [vmem:[#allocation2 + $0x168] sm:$0xff] }
 0x232   : > { %v4273_v29 = vunpack.i.h.bf16 %v5493_v8  ;;  %v4272_v33 = vunpack.i.l.bf16 %v5493_v8  ;;  %v2123_v60 = vpack.c.bf16 %v1983_v43, %v1982_v37 }
 0x233   : > { %2460 = vmatmul.mubr.bf16.gmra.mxu1 %v2120_v46 }
 0x234   : > { %v4286_v42 = vpop.permute.xlu0 %4285  ;;  %v1951_v38 = vsel %vm503_vm0, %v1919_v61, %v4272_v33  ;;  %v1952_v49 = vsel %vm503_vm0, %v1920_v0, %v4273_v29  ;;  %v4384_v29 = vld [vmem:[%s4655_s27] sm:$0xff]   ;;  %v4387_v33 = vld [vmem:[%s4655_s27 + $0x18] sm:$0xff]  }
 0x235   : > { %v5497_v47 = vpop.permute.xlu1 %4310  ;;  %v4288_v9 = vunpack.i.h.bf16 %v4286_v42  ;;  %v4287_v53 = vunpack.i.l.bf16 %v4286_v42 }
 0x236   : > { %v4313_v22 = vunpack.i.h.bf16 %v5497_v47  ;;  %v4312_v41 = vunpack.i.l.bf16 %v5497_v47 }
 0x237   : > { %v2046_v2 = vsel %vm503_vm0, %v2014_v16, %v4287_v53  ;;  %v2047_v7 = vsel %vm503_vm0, %v2015_v20, %v4288_v9  ;;  %v4380_v53 = vld [vmem:[#allocation2 + $0x170] sm:$0xff]  ;;  %v4383_v20 = vld [vmem:[#allocation2 + $0x181] sm:$0xff] }
 0x238   : > { %v4291_v32 = vpop.permute.xlu0 %4290  ;;  %v1985_v46 = vsel %vm1955_vm3, %v1952_v49, %v4313_v22 }
 0x239   : > { %v5505_v35 = vpop.permute.xlu1 %4315  ;;  %v4293_v51 = vunpack.i.h.bf16 %v4291_v32  ;;  %v4292_v39 = vunpack.i.l.bf16 %v4291_v32 }
 0x23a   : > { %v4318_v50 = vunpack.i.h.bf16 %v5505_v35  ;;  %v4317_v19 = vunpack.i.l.bf16 %v5505_v35 }
 0x23b   : > { %v2078_v6 = vsel %vm1955_vm3, %v2046_v2, %v4292_v39  ;;  %v2079_v54 = vsel %vm1955_vm3, %v2047_v7, %v4293_v51 }
 0x23c   : > { %v4296_v12 = vpop.permute.xlu0 %4295  ;;  %v2124_v30 = vpack.c.bf16 %v2079_v54, %v2078_v6  ;;  %v1922_v63 = vsel %vm745_vm1, %v4380_v53, %v4318_v50  ;;  %v1921_v25 = vsel %vm745_vm1, %v4381_v45, %v4317_v19  ;;  %v4394_v19 = vld [vmem:[%s4655_s27 + $0x50] sm:$0xff]  }
 0x23d   : > { %v4321_v13 = vpop.permute.xlu1 %4320  ;;  %v4298_v3 = vunpack.i.h.bf16 %v4296_v12  ;;  %v4297_v36 = vunpack.i.l.bf16 %v4296_v12  ;;  %v4385_v12 = vld [vmem:[%s4655_s27 + $0x8] sm:$0xff]  }
 0x23e   : > { %2467 = vmatprep.mubr.bf16.mxu1 %v2124_v30  ;;  %v4323_v24 = vunpack.i.h.bf16 %v4321_v13  ;;  %v4322_v47 = vunpack.i.l.bf16 %v4321_v13  ;;  %v4386_v30 = vld [vmem:[%s4655_s27 + $0x10] sm:$0xff]   ;;  %v4388_v13 = vld [vmem:[%s4655_s27 + $0x20] sm:$0xff]  }
 0x23f   : > { %v2017_v23 = vsel %vm745_vm1, %v5188_v14, %v4298_v3  ;;  %v2016_v62 = vsel %vm745_vm1, %v5186_v18, %v4297_v36  ;;  %2468 = vmatmul.mubr.bf16.gmra.mxu1 %v2123_v60  ;;  %v1984_v18 = vsel %vm1955_vm3, %v1951_v38, %v4312_v41  ;;  %v4389_v60 = vld [vmem:[%s4655_s27 + $0x28] sm:$0xff]  }
 0x240   : > { %v4301_v17 = vpop.permute.xlu0 %4300  ;;  %v2048_v55 = vsel %vm503_vm0, %v2016_v62, %v4277_v44  ;;  %v2049_v4 = vsel %vm503_vm0, %v2017_v23, %v4278_v21  ;;  %v2126_v10 = vpack.c.bf16 %v1985_v46, %v1984_v18  ;;  %v1953_v35 = vsel %vm503_vm0, %v1921_v25, %v4322_v47  ;;  %v4390_v21 = vld [vmem:[%s4655_s27 + $0x30] sm:$0xff]   ;;  %v4392_v62 = vld [vmem:[%s4655_s27 + $0x40] sm:$0xff]   ;;  %v4393_v46 = vld [vmem:[%s4655_s27 + $0x48] sm:$0xff]  }
 0x241   : > { %v2080_v8 = vsel %vm1955_vm3, %v2048_v55, %v4282_v56  ;;  %v2081_v14 = vsel %vm1955_vm3, %v2049_v4, %v4283_v40  ;;  %v4331_v58 = vpop.permute.xlu1 %4330  ;;  %v4303_v34 = vunpack.i.h.bf16 %v4301_v17  ;;  %v4302_v27 = vunpack.i.l.bf16 %v4301_v17  ;;  %v4391_v56 = vld [vmem:[%s4655_s27 + $0x38] sm:$0xff]   ;;  %v4396_v25 = vld [vmem:[%s4655_s27 + $0x60] sm:$0xff]  }
 0x242   : > { %v2127_v26 = vpack.c.bf16 %v2081_v14, %v2080_v8  ;;  %v4333_v52 = vunpack.i.h.bf16 %v4331_v58  ;;  %v4332_v48 = vunpack.i.l.bf16 %v4331_v58  ;;  %v1954_v15 = vsel %vm503_vm0, %v1922_v63, %v4323_v24  ;;  %v4395_v63 = vld [vmem:[%s4655_s27 + $0x58] sm:$0xff]  }
 0x243   : > { %v2019_v32 = vsel %vm745_vm1, %v4382_v59, %v4303_v34  ;;  %v2018_v16 = vsel %vm745_vm1, %v4383_v20, %v4302_v27 }
 0x244   : > { %v4306_v42 = vpop.permute.xlu0 %4305  ;;  %2475 = vmatprep.mubr.bf16.mxu1 %v2127_v26  ;;  %v1986_v37 = vsel %vm1955_vm3, %v1953_v35, %v4332_v48  ;;  %v1987_v43 = vsel %vm1955_vm3, %v1954_v15, %v4333_v52 }
 0x245   : > { %v4308_v1 = vunpack.i.h.bf16 %v4306_v42  ;;  %v4307_v9 = vunpack.i.l.bf16 %v4306_v42  ;;  %v2129_v31 = vpack.c.bf16 %v1987_v43, %v1986_v37  ;;  %v4397_v37 = vld [vmem:[%s4655_s27 + $0x68] sm:$0xff]   ;;  %v4398_v43 = vld [vmem:[%s4655_s27 + $0x70] sm:$0xff]  }
 0x247   : > { %2476 = vmatmul.mubr.bf16.gmra.mxu1 %v2126_v10  ;;  %v2050_v2 = vsel %vm503_vm0, %v2018_v16, %v4307_v9  ;;  %v2051_v7 = vsel %vm503_vm0, %v2019_v32, %v4308_v1 }
 0x248   : > { %v4326_v11 = vpop.permute.xlu0 %4325 }
 0x249   : > { %v4328_v51 = vunpack.i.h.bf16 %v4326_v11  ;;  %v4327_v39 = vunpack.i.l.bf16 %v4326_v11 }
 0x24b   : > { %v2082_v6 = vsel %vm1955_vm3, %v2050_v2, %v4327_v39  ;;  %v2083_v54 = vsel %vm1955_vm3, %v2051_v7, %v4328_v51 }
 0x24c   : > { %v2130_v28 = vpack.c.bf16 %v2083_v54, %v2082_v6 }
 0x24e   : > { %2483 = vmatprep.mubr.bf16.mxu1 %v2130_v28 }
 0x24f   : > { %2484 = vmatmul.mubr.bf16.gmra.mxu1 %v2129_v31 }
 0x250   : > { %3752 = vmatprep.mubr.msk.bf16.mxu1 %vm503_vm0, %v4384_v29 }
 0x257   : > { %3753 = vmatmul.mubr.msk.bf16.vlgmr.msra.gmra.mxu1 %vm503_vm0, %v4385_v12 }
 0x258   : > { %3756 = vmatprep.mubr.msk.bf16.mxu1 %vm503_vm0, %v4386_v30  ;;  %v4399_v30 = vld [vmem:[%s4655_s27 + $0x78] sm:$0xff]   ;;  %s4432_s27 = sshll.u32 %s4501_s13, 4  ;;  %s4433_s27 = int_to_ptr.vmem [resolvable:$false] %s4432_s27 }
 0x259   : > { %s4434_s16 = scalar_lea.vmem %s4433_s27, 8192  ;;  %p4435_p5 = scmp.lt.s32.totalorder %s5754_s23, %s4433_s27 }
 0x25a   : > { %p4436_p7 = scmp.lt.s32.totalorder %s4434_s16, %s4428_s26 }
 0x25c   : > { %p4437_p8 = por %p4436_p7, %p4435_p5 }
 0x25e   : > { %p4438_p10 = pnand %p4437_p8, %p4431_p4 }
 0x25f   : > { %3757 = vmatmul.mubr.msk.bf16.gmra.mxu1 %vm503_vm0, %v4387_v33 }
 0x260   : > { %3760 = vmatprep.mubr.msk.bf16.mxu1 %vm503_vm0, %v4388_v13 }
 0x265   : > { %v3480_v3 = vpop.f32.mrf.mxu0 }
 0x267   : > { %v3481_v36 = vpop.f32.mrf.mxu0  ;;  %3761 = vmatmul.mubr.msk.bf16.gmra.mxu1 %vm503_vm0, %v4389_v60 }
 0x268   : > { %3764 = vmatprep.mubr.msk.bf16.mxu1 %vm503_vm0, %v4390_v21  ;;  %v3482_v41 = vadd.f32 %v3481_v36, %v3480_v3 }
 0x269   : > { %v3483_v44 = vpop.f32.mrf.mxu0 }
 0x26a   : > { %v2366_v0 = vadd.f32 %v3482_v41, %v5572_v5 }
 0x26b   : > { %v3484_v22 = vpop.f32.mrf.mxu0 }
 0x26c   : > { %v3485_v40 = vadd.f32 %v3484_v22, %v3483_v44 }
 0x26d   : > { %v3678_v57 = vpop.f32.mrf.mxu0 }
 0x26e   : > { %v2369_v55 = vadd.f32 %v3485_v40, %v5572_v5 }
 0x26f   : > { %3765 = vmatmul.mubr.msk.bf16.gmra.mxu1 %vm503_vm0, %v4391_v56  ;;  %v2526_v23 = vpop.f32.mrf.mxu0 }
 0x270   : > { %3768 = vmatprep.mubr.msk.bf16.mxu1 %vm503_vm0, %v4392_v62  ;;  %v2527_v17 = vadd.f32 %v2526_v23, %v2366_v0 }
 0x271   : > { %v3679_v61 = vpop.f32.mrf.mxu0 }
 0x272   : > { %v2653_v14 = vmax.f32 %v2527_v17, 0.0 }
 0x273   : > { %v2529_v4 = vpop.f32.mrf.mxu0 }
 0x274   : > { %v2530_v49 = vadd.f32 %v2529_v4, %v2369_v55 }
 0x275   : > { %v3486_v38 = vpop.f32.mrf.mxu1  ;;  %v3682_v47 = vpop.f32.mrf.mxu0 }
 0x276   : > { %v2654_v26 = vmax.f32 %v2530_v49, 0.0 }
 0x277   : > { %v3487_v8 = vpop.f32.mrf.mxu1  ;;  %3769 = vmatmul.mubr.msk.bf16.gmra.mxu1 %vm503_vm0, %v4393_v46  ;;  %v2542_v48 = vpop.f32.mrf.mxu0 }
 0x278   : > { %v3488_v18 = vadd.f32 %v3487_v8, %v3486_v38  ;;  %3772 = vmatprep.mubr.msk.bf16.mxu1 %vm503_vm0, %v4394_v19  ;;  %v2685_v58 = vpack.c.bf16 %v2654_v26, %v2653_v14 }
 0x279   : > { %v3489_v50 = vpop.f32.mrf.mxu1  ;;  %v3683_v59 = vpop.f32.mrf.mxu0 }
 0x27a   : > { %v2374_v24 = vadd.f32 %v3488_v18, %v5572_v5  ;;  %3712 = vmatprep.mubr.msk.bf16.mxu0 %vm745_vm1, %v2685_v58 }
 0x27b   : > { %v3490_v42 = vpop.f32.mrf.mxu1  ;;  %v2545_v2 = vpop.f32.mrf.mxu0 }
 0x27c   : > { %v3491_v34 = vadd.f32 %v3490_v42, %v3489_v50  ;;  %v2535_v10 = vadd.f32 %v3678_v57, %v2374_v24 }
 0x27d   : > { %v3492_v27 = vpop.f32.mrf.mxu1  ;;  %v3686_v3 = vpop.f32.mrf.mxu0 }
 0x27e   : > { %v2377_v52 = vadd.f32 %v3491_v34, %v5572_v5  ;;  %v2655_v35 = vmax.f32 %v2535_v10, 0.0 }
 0x27f   : > { %v3493_v1 = vpop.f32.mrf.mxu1  ;;  %3773 = vmatmul.mubr.msk.bf16.gmra.mxu1 %vm503_vm0, %v4395_v63  ;;  %v2558_v41 = vpop.f32.mrf.mxu0 }
 0x280   : > { %v2538_v9 = vadd.f32 %v3679_v61, %v2377_v52  ;;  %v3494_v53 = vadd.f32 %v3493_v1, %v3492_v27  ;;  %3776 = vmatprep.mubr.msk.bf16.mxu1 %vm503_vm0, %v4396_v25 }
 0x281   : > { %v3495_v45 = vpop.f32.mrf.mxu1  ;;  %v3687_v17 = vpop.f32.mrf.mxu0 }
 0x282   : > { %v2656_v15 = vmax.f32 %v2538_v9, 0.0  ;;  %v2382_v11 = vadd.f32 %v3494_v53, %v5572_v5 }
 0x283   : > { %v3496_v32 = vpop.f32.mrf.mxu1  ;;  %v2561_v14 = vpop.f32.mrf.mxu0 }
 0x284   : > { %v2686_v20 = vpack.c.bf16 %v2656_v15, %v2655_v35  ;;  %v3497_v16 = vadd.f32 %v3496_v32, %v3495_v45  ;;  %v2543_v51 = vadd.f32 %v2542_v48, %v2382_v11 }
 0x285   : > { %v3690_v34 = vpop.f32.mrf.mxu0 }
 0x286   : > { %v2385_v39 = vadd.f32 %v3497_v16, %v5572_v5  ;;  %3713 = vmatmul.mubr.msk.bf16.vlgmr.msra.gmra.mxu0 %vm745_vm1, %v2686_v20  ;;  %v2657_v6 = vmax.f32 %v2543_v51, 0.0 }
 0x287   : > { %3777 = vmatmul.mubr.msk.bf16.gmra.mxu1 %vm503_vm0, %v4397_v37  ;;  %v2574_v9 = vpop.f32.mrf.mxu0 }
 0x288   : > { %v2546_v7 = vadd.f32 %v2545_v2, %v2385_v39  ;;  %3780 = vmatprep.mubr.msk.bf16.mxu1 %vm503_vm0, %v4398_v43 }
 0x28a   : > { %v2658_v54 = vmax.f32 %v2546_v7, 0.0 }
 0x28b   : > { %v3498_v31 = vpop.f32.mrf.mxu1 }
 0x28c   : > { %v2687_v28 = vpack.c.bf16 %v2658_v54, %v2657_v6 }
 0x28d   : > { %v3499_v29 = vpop.f32.mrf.mxu1 }
 0x28e   : > { %3716 = vmatprep.mubr.msk.bf16.mxu0 %vm745_vm1, %v2687_v28  ;;  %v3500_v12 = vadd.f32 %v3499_v29, %v3498_v31 }
 0x28f   : > { %3781 = vmatmul.mubr.msk.bf16.gmra.mxu1 %vm503_vm0, %v4399_v30  ;;  %v3501_v33 = vpop.f32.mrf.mxu1 }
 0x290   : > { %v2390_v13 = vadd.f32 %v3500_v12, %v5572_v5 }
 0x291   : > { %v3502_v36 = vpop.f32.mrf.mxu1 }
 0x292   : > { %v3503_v60 = vadd.f32 %v3502_v36, %v3501_v33  ;;  %v2551_v44 = vadd.f32 %v3682_v47, %v2390_v13 }
 0x293   : > { %v3504_v21 = vpop.f32.mrf.mxu1 }
 0x294   : > { %v2393_v22 = vadd.f32 %v3503_v60, %v5572_v5  ;;  %v2659_v62 = vmax.f32 %v2551_v44, 0.0 }
 0x295   : > { %v3505_v57 = vpop.f32.mrf.mxu1 }
 0x296   : > { %v2554_v40 = vadd.f32 %v3683_v59, %v2393_v22  ;;  %v3506_v56 = vadd.f32 %v3505_v57, %v3504_v21  ;;  %v3691_v59 = vpop.f32.mrf.mxu0 }
 0x297   : > { %v3507_v23 = vpop.f32.mrf.mxu1 }
 0x298   : > { %v2660_v0 = vmax.f32 %v2554_v40, 0.0  ;;  %v2398_v61 = vadd.f32 %v3506_v56, %v5572_v5  ;;  %v2577_v2 = vpop.f32.mrf.mxu0 }
 0x299   : > { %v3508_v55 = vpop.f32.mrf.mxu1 }
 0x29a   : > { %v2688_v4 = vpack.c.bf16 %v2660_v0, %v2659_v62  ;;  %v3509_v38 = vadd.f32 %v3508_v55, %v3507_v23  ;;  %v2559_v49 = vadd.f32 %v2558_v41, %v2398_v61  ;;  %v3694_v30 = vpop.f32.mrf.mxu0 }
 0x29c   : > { %v2401_v8 = vadd.f32 %v3509_v38, %v5572_v5  ;;  %3717 = vmatmul.mubr.msk.bf16.gmra.mxu0 %vm745_vm1, %v2688_v4  ;;  %v2661_v18 = vmax.f32 %v2559_v49, 0.0  ;;  %v2590_v21 = vpop.f32.mrf.mxu0 }
 0x29e   : > { %v2562_v26 = vadd.f32 %v2561_v14, %v2401_v8  ;;  %v3695_v62 = vpop.f32.mrf.mxu0 }
 0x2a0   : > { %v2662_v46 = vmax.f32 %v2562_v26, 0.0  ;;  %v2593_v38 = vpop.f32.mrf.mxu0 }
 0x2a2   : > { %v2689_v19 = vpack.c.bf16 %v2662_v46, %v2661_v18 }
 0x2a3   : > { %v3510_v50 = vpop.f32.mrf.mxu1 }
 0x2a4   : > { %3720 = vmatprep.mubr.msk.bf16.mxu0 %vm745_vm1, %v2689_v19 }
 0x2a5   : > { %v3511_v58 = vpop.f32.mrf.mxu1 }
 0x2a6   : > { %v3512_v24 = vadd.f32 %v3511_v58, %v3510_v50 }
 0x2a7   : > { %v3513_v47 = vpop.f32.mrf.mxu1 }
 0x2a8   : > { %v2406_v42 = vadd.f32 %v3512_v24, %v5572_v5  ;;  %v3698_v24 = vpop.f32.mrf.mxu0 }
 0x2a9   : > { %v3514_v27 = vpop.f32.mrf.mxu1 }
 0x2aa   : > { %v3515_v10 = vadd.f32 %v3514_v27, %v3513_v47  ;;  %v2567_v48 = vadd.f32 %v3686_v3, %v2406_v42 }
 0x2ab   : > { %v3516_v52 = vpop.f32.mrf.mxu1 }
 0x2ac   : > { %v2409_v1 = vadd.f32 %v3515_v10, %v5572_v5  ;;  %v2663_v35 = vmax.f32 %v2567_v48, 0.0 }
 0x2ad   : > { %v3517_v53 = vpop.f32.mrf.mxu1 }
 0x2ae   : > { %v2570_v63 = vadd.f32 %v3687_v17, %v2409_v1  ;;  %v3518_v45 = vadd.f32 %v3517_v53, %v3516_v52  ;;  %v2606_v52 = vpop.f32.mrf.mxu0 }
 0x2af   : > { %v3519_v25 = vpop.f32.mrf.mxu1 }
 0x2b0   : > { %v2664_v15 = vmax.f32 %v2570_v63, 0.0  ;;  %v2414_v11 = vadd.f32 %v3518_v45, %v5572_v5 }
 0x2b1   : > { %v3520_v32 = vpop.f32.mrf.mxu1 }
 0x2b2   : > { %v2690_v20 = vpack.c.bf16 %v2664_v15, %v2663_v35  ;;  %v3521_v16 = vadd.f32 %v3520_v32, %v3519_v25  ;;  %v2575_v51 = vadd.f32 %v2574_v9, %v2414_v11  ;;  %v3699_v35 = vpop.f32.mrf.mxu0 }
 0x2b4   : > { %v2417_v39 = vadd.f32 %v3521_v16, %v5572_v5  ;;  %3721 = vmatmul.mubr.msk.bf16.gmra.mxu0 %vm745_vm1, %v2690_v20  ;;  %v2665_v37 = vmax.f32 %v2575_v51, 0.0  ;;  %v2609_v16 = vpop.f32.mrf.mxu0 }
 0x2b6   : > { %v2578_v7 = vadd.f32 %v2577_v2, %v2417_v39 }
 0x2b8   : > { %v2666_v43 = vmax.f32 %v2578_v7, 0.0 }
 0x2ba   : > { %v2691_v6 = vpack.c.bf16 %v2666_v43, %v2665_v37 }
 0x2bb   : > { %v3522_v54 = vpop.f32.mrf.mxu1 }
 0x2bc   : > { %3724 = vmatprep.mubr.msk.bf16.mxu0 %vm745_vm1, %v2691_v6 }
 0x2bd   : > { %v3523_v28 = vpop.f32.mrf.mxu1 }
 0x2be   : > { %v3524_v31 = vadd.f32 %v3523_v28, %v3522_v54 }
 0x2bf   : > { %v3525_v29 = vpop.f32.mrf.mxu1 }
 0x2c0   : > { %v2422_v12 = vadd.f32 %v3524_v31, %v5572_v5  ;;  %v3702_v31 = vpop.f32.mrf.mxu0 }
 0x2c1   : > { %v3526_v33 = vpop.f32.mrf.mxu1 }
 0x2c2   : > { %v3527_v13 = vadd.f32 %v3526_v33, %v3525_v29  ;;  %v2583_v36 = vadd.f32 %v3690_v34, %v2422_v12 }
 0x2c3   : > { %v3528_v3 = vpop.f32.mrf.mxu1 }
 0x2c4   : > { %v2425_v60 = vadd.f32 %v3527_v13, %v5572_v5  ;;  %v2667_v40 = vmax.f32 %v2583_v36, 0.0 }
 0x2c5   : > { %v3529_v44 = vpop.f32.mrf.mxu1 }
 0x2c6   : > { %v2586_v22 = vadd.f32 %v3691_v59, %v2425_v60  ;;  %v3530_v41 = vadd.f32 %v3529_v44, %v3528_v3  ;;  %v2622_v3 = vpop.f32.mrf.mxu0 }
 0x2c7   : > { %v3531_v57 = vpop.f32.mrf.mxu1 }
 0x2c8   : > { %v2668_v56 = vmax.f32 %v2586_v22, 0.0  ;;  %v2430_v23 = vadd.f32 %v3530_v41, %v5572_v5 }
 0x2c9   : > { %v3532_v0 = vpop.f32.mrf.mxu1 }
 0x2ca   : > { %v2692_v61 = vpack.c.bf16 %v2668_v56, %v2667_v40  ;;  %v3533_v17 = vadd.f32 %v3532_v0, %v3531_v57  ;;  %v2591_v55 = vadd.f32 %v2590_v21, %v2430_v23  ;;  %v3703_v40 = vpop.f32.mrf.mxu0 }
 0x2cc   : > { %v2433_v4 = vadd.f32 %v3533_v17, %v5572_v5  ;;  %3725 = vmatmul.mubr.msk.bf16.gmra.mxu0 %vm745_vm1, %v2692_v61  ;;  %v2669_v8 = vmax.f32 %v2591_v55, 0.0  ;;  %v2625_v17 = vpop.f32.mrf.mxu0 }
 0x2ce   : > { %v2594_v49 = vadd.f32 %v2593_v38, %v2433_v4 }
 0x2d0   : > { %v2670_v14 = vmax.f32 %v2594_v49, 0.0 }
 0x2d2   : > { %v2693_v26 = vpack.c.bf16 %v2670_v14, %v2669_v8 }
 0x2d3   : > { %v3534_v18 = vpop.f32.mrf.mxu1 }
 0x2d4   : > { %3728 = vmatprep.mubr.msk.bf16.mxu0 %vm745_vm1, %v2693_v26 }
 0x2d5   : > { %v3535_v46 = vpop.f32.mrf.mxu1 }
 0x2d6   : > { %v3536_v50 = vadd.f32 %v3535_v46, %v3534_v18  ;;  %v3706_v46 = vpop.f32.mrf.mxu0 }
 0x2d7   : > { %v3537_v19 = vpop.f32.mrf.mxu1 }
 0x2d8   : > { %v2438_v58 = vadd.f32 %v3536_v50, %v5572_v5 }
 0x2d9   : > { %v3538_v47 = vpop.f32.mrf.mxu1 }
 0x2da   : > { %v3539_v42 = vadd.f32 %v3538_v47, %v3537_v19  ;;  %v2599_v27 = vadd.f32 %v3694_v30, %v2438_v58  ;;  %v2638_v47 = vpop.f32.mrf.mxu0 }
 0x2db   : > { %v3540_v34 = vpop.f32.mrf.mxu1 }
 0x2dc   : > { %v2441_v10 = vadd.f32 %v3539_v42, %v5572_v5  ;;  %v2671_v63 = vmax.f32 %v2599_v27, 0.0 }
 0x2dd   : > { %v3541_v48 = vpop.f32.mrf.mxu1 }
 0x2de   : > { %v2602_v1 = vadd.f32 %v3695_v62, %v2441_v10  ;;  %v3542_v9 = vadd.f32 %v3541_v48, %v3540_v34 }
 0x2df   : > { %v3543_v53 = vpop.f32.mrf.mxu1 }
 0x2e0   : > { %v2672_v45 = vmax.f32 %v2602_v1, 0.0  ;;  %v2446_v25 = vadd.f32 %v3542_v9, %v5572_v5  ;;  %v3707_v1 = vpop.f32.mrf.mxu0 }
 0x2e1   : > { %v3544_v15 = vpop.f32.mrf.mxu1 }
 0x2e2   : > { %v2694_v11 = vpack.c.bf16 %v2672_v45, %v2671_v63  ;;  %v3545_v59 = vadd.f32 %v3544_v15, %v3543_v53  ;;  %v2607_v32 = vadd.f32 %v2606_v52, %v2446_v25 }
 0x2e4   : > { %v2449_v20 = vadd.f32 %v3545_v59, %v5572_v5  ;;  %3729 = vmatmul.mubr.msk.bf16.gmra.mxu0 %vm745_vm1, %v2694_v11  ;;  %v2673_v39 = vmax.f32 %v2607_v32, 0.0  ;;  %v2641_v11 = vpop.f32.mrf.mxu0 }
 0x2e6   : > { %v2610_v51 = vadd.f32 %v2609_v16, %v2449_v20 }
 0x2e8   : > { %v2674_v2 = vmax.f32 %v2610_v51, 0.0 }
 0x2ea   : > { %v2695_v7 = vpack.c.bf16 %v2674_v2, %v2673_v39 }
 0x2eb   : > { %v3546_v37 = vpop.f32.mrf.mxu1 }
 0x2ec   : > { %3732 = vmatprep.mubr.msk.bf16.mxu0 %vm745_vm1, %v2695_v7 }
 0x2ed   : > { %v3547_v43 = vpop.f32.mrf.mxu1 }
 0x2ee   : > { %v3548_v6 = vadd.f32 %v3547_v43, %v3546_v37 }
 0x2ef   : > { %v3549_v54 = vpop.f32.mrf.mxu1 }
 0x2f0   : > { %v2454_v28 = vadd.f32 %v3548_v6, %v5572_v5 }
 0x2f1   : > { %v3550_v29 = vpop.f32.mrf.mxu1 }
 0x2f2   : > { %v3551_v12 = vadd.f32 %v3550_v29, %v3549_v54  ;;  %v2615_v33 = vadd.f32 %v3698_v24, %v2454_v28 }
 0x2f3   : > { %v3552_v30 = vpop.f32.mrf.mxu1 }
 0x2f4   : > { %v2457_v13 = vadd.f32 %v3551_v12, %v5572_v5  ;;  %v2675_v22 = vmax.f32 %v2615_v33, 0.0 }
 0x2f5   : > { %v3553_v36 = vpop.f32.mrf.mxu1 }
 0x2f6   : > { %v2618_v60 = vadd.f32 %v3699_v35, %v2457_v13  ;;  %v3554_v21 = vadd.f32 %v3553_v36, %v3552_v30  ;;  %v5643_v36 = vld [vmem:[%s5807_s8] ss:$0 sm:$0xff] }
 0x2f7   : > { %v3555_v44 = vpop.f32.mrf.mxu1 }
 0x2f8   : > { %v2676_v41 = vmax.f32 %v2618_v60, 0.0  ;;  %v2462_v57 = vadd.f32 %v3554_v21, %v5572_v5  ;;  %v5648_v60 = vld [vmem:[%s5805_s6] ss:$0 sm:$0xff] }
 0x2f9   : > { %v3556_v56 = vpop.f32.mrf.mxu1 }
 0x2fa   : > { %v2696_v23 = vpack.c.bf16 %v2676_v41, %v2675_v22  ;;  %v3557_v62 = vadd.f32 %v3556_v56, %v3555_v44  ;;  %v2623_v0 = vadd.f32 %v2622_v3, %v2462_v57 }
 0x2fc   : > { %v2465_v61 = vadd.f32 %v3557_v62, %v5572_v5  ;;  %3733 = vmatmul.mubr.msk.bf16.gmra.mxu0 %vm745_vm1, %v2696_v23  ;;  %v2677_v38 = vmax.f32 %v2623_v0, 0.0 }
 0x2fe   : > { %v2626_v55 = vadd.f32 %v2625_v17, %v2465_v61 }
 0x2ff   : > { %v3558_v4 = vpop.f32.mrf.mxu1 }
 0x300   : > { %v2678_v49 = vmax.f32 %v2626_v55, 0.0 }
 0x301   : > { %v3559_v8 = vpop.f32.mrf.mxu1 }
 0x302   : > { %v2697_v14 = vpack.c.bf16 %v2678_v49, %v2677_v38  ;;  %v3560_v26 = vadd.f32 %v3559_v8, %v3558_v4 }
 0x303   : > { %v3561_v18 = vpop.f32.mrf.mxu1 }
 0x304   : > { %v2470_v50 = vadd.f32 %v3560_v26, %v5572_v5  ;;  %3736 = vmatprep.mubr.msk.bf16.mxu0 %vm745_vm1, %v2697_v14 }
 0x305   : > { %v3562_v19 = vpop.f32.mrf.mxu1 }
 0x306   : > { %v3563_v58 = vadd.f32 %v3562_v19, %v3561_v18  ;;  %v2631_v42 = vadd.f32 %v3702_v31, %v2470_v50 }
 0x307   : > { %v3564_v24 = vpop.f32.mrf.mxu1 }
 0x308   : > { %v2473_v34 = vadd.f32 %v3563_v58, %v5572_v5  ;;  %v2679_v9 = vmax.f32 %v2631_v42, 0.0 }
 0x309   : > { %v3565_v27 = vpop.f32.mrf.mxu1 }
 0x30a   : > { %v2634_v10 = vadd.f32 %v3703_v40, %v2473_v34  ;;  %v3566_v52 = vadd.f32 %v3565_v27, %v3564_v24 }
 0x30b   : > { %v3567_v48 = vpop.f32.mrf.mxu1 }
 0x30c   : > { %v2680_v53 = vmax.f32 %v2634_v10, 0.0  ;;  %v2478_v63 = vadd.f32 %v3566_v52, %v5572_v5 }
 0x30d   : > { %v3568_v45 = vpop.f32.mrf.mxu1 }
 0x30e   : > { %v2698_v25 = vpack.c.bf16 %v2680_v53, %v2679_v9  ;;  %v3569_v35 = vadd.f32 %v3568_v45, %v3567_v48  ;;  %v2639_v59 = vadd.f32 %v2638_v47, %v2478_v63 }
 0x30f   : > { %v3570_v15 = vpop.f32.mrf.mxu1 }
 0x310   : > { %3737 = vmatmul.mubr.msk.bf16.gmra.mxu0 %vm745_vm1, %v2698_v25  ;;  %v2481_v32 = vadd.f32 %v3569_v35, %v5572_v5  ;;  %v2681_v2 = vmax.f32 %v2639_v59, 0.0 }
 0x311   : > { %v3571_v20 = vpop.f32.mrf.mxu1 }
 0x312   : > { %v3572_v16 = vadd.f32 %v3571_v20, %v3570_v15  ;;  %v2642_v51 = vadd.f32 %v2641_v11, %v2481_v32 }
 0x313   : > { %v3573_v39 = vpop.f32.mrf.mxu1 }
 0x314   : > { %v2486_v7 = vadd.f32 %v3572_v16, %v5572_v5  ;;  %v2682_v37 = vmax.f32 %v2642_v51, 0.0 }
 0x315   : > { %v3574_v43 = vpop.f32.mrf.mxu1 }
 0x316   : > { %v2699_v6 = vpack.c.bf16 %v2682_v37, %v2681_v2  ;;  %v3575_v54 = vadd.f32 %v3574_v43, %v3573_v39  ;;  %v2647_v28 = vadd.f32 %v3706_v46, %v2486_v7 }
 0x317   : > { %v3754_v13 = vpop.f32.mrf.mxu1 }
 0x318   : > { %v2489_v31 = vadd.f32 %v3575_v54, %v5572_v5  ;;  %3740 = vmatprep.mubr.msk.bf16.mxu0 %vm745_vm1, %v2699_v6  ;;  %v2683_v12 = vmax.f32 %v2647_v28, 0.0  ;;  %v3015_v21 = vadd.f32 %v3754_v13, %v5643_v36 }
 0x319   : > { %v3006_v3 = vpop.f32.mrf.mxu1 }
 0x31a   : > { %v2650_v29 = vadd.f32 %v3707_v1, %v2489_v31  ;;  %v3007_v41 = vadd.f32 %v5643_v36, %v3006_v3 }
 0x31b   : > { %v3755_v5 = vpop.f32.mrf.mxu1 }
 0x31c   : > { %v2684_v30 = vmax.f32 %v2650_v29, 0.0  ;;  %v3018_v62 = vadd.f32 %v3755_v5, %v5643_v36 }
 0x31d   : > { %v3009_v40 = vpop.f32.mrf.mxu1 }
 0x31e   : > { %v2700_v33 = vpack.c.bf16 %v2684_v30, %v2683_v12  ;;  %v3010_v4 = vadd.f32 %v5643_v36, %v3009_v40 }
 0x31f   : > { %v3758_v50 = vpop.f32.mrf.mxu1 }
 0x320   : > { %3741 = vmatmul.mubr.msk.bf16.gmra.mxu0 %vm745_vm1, %v2700_v33  ;;  %v3031_v24 = vadd.f32 %v3758_v50, %v5643_v36 }
 0x321   : > { %v3022_v19 = vpop.f32.mrf.mxu1 }
 0x322   : > { %v3023_v34 = vadd.f32 %v5643_v36, %v3022_v19 }
 0x323   : > { %v3759_v58 = vpop.f32.mrf.mxu1 }
 0x324   : > { %v3034_v1 = vadd.f32 %v3759_v58, %v5643_v36 }
 0x325   : > { %v3025_v10 = vpop.f32.mrf.mxu1 }
 0x326   : > { %v3026_v25 = vadd.f32 %v5643_v36, %v3025_v10 }
 0x327   : > { %v3762_v51 = vpop.f32.mrf.mxu1 }
 0x328   : > { %v3047_v7 = vadd.f32 %v3762_v51, %v5643_v36 }
 0x329   : > { %v3038_v39 = vpop.f32.mrf.mxu1 }
 0x32a   : > { %v3039_v6 = vadd.f32 %v5643_v36, %v3038_v39 }
 0x32b   : > { %v3763_v2 = vpop.f32.mrf.mxu1 }
 0x32c   : > { %v3050_v12 = vadd.f32 %v3763_v2, %v5643_v36 }
 0x32d   : > { %v3041_v28 = vpop.f32.mrf.mxu1 }
 0x32e   : > { %v3042_v5 = vadd.f32 %v5643_v36, %v3041_v28 }
 0x346   : > { %v3714_v44 = vpop.f32.mrf.mxu0 }
 0x347   : > { %v2815_v22 = vadd.f32 %v3714_v44, %v5648_v60 }
 0x348   : > { %v2806_v57 = vpop.f32.mrf.mxu0 }
 0x349   : > { %v3135_v56 = vadd.f32 %v3015_v21, %v2815_v22  ;;  %v2807_v23 = vadd.f32 %v5648_v60, %v2806_v57 }
 0x34a   : > { %v3715_v0 = vpop.f32.mrf.mxu0 }
 0x34b   : > { %v3167_v61 = vmax.f32 %v3135_v56, 0.0  ;;  %v3133_v17 = vadd.f32 %v3007_v41, %v2807_v23  ;;  %v2818_v55 = vadd.f32 %v3715_v0, %v5648_v60  ;;  %v3766_v23 = vpop.f32.mrf.mxu1 }
 0x34c   : > { %v2809_v38 = vpop.f32.mrf.mxu0 }
 0x34d   : > { %3199 = vst [vmem:[%s5658_s14 + $0x10] sm:$0xff] %v3167_v61  ;;  %v3165_v49 = vmax.f32 %v3133_v17, 0.0  ;;  %v3136_v8 = vadd.f32 %v3018_v62, %v2818_v55  ;;  %v2810_v14 = vadd.f32 %v5648_v60, %v2809_v38  ;;  %v3054_v62 = vpop.f32.mrf.mxu1  ;;  %v3063_v61 = vadd.f32 %v3766_v23, %v5643_v36 }
 0x34f   : > { %3197 = vst [vmem:[%s5658_s14] sm:$0xff] %v3165_v49  ;;  %v3168_v26 = vmax.f32 %v3136_v8, 0.0  ;;  %v3134_v18 = vadd.f32 %v3010_v4, %v2810_v14  ;;  %v3767_v0 = vpop.f32.mrf.mxu1  ;;  %v3055_v4 = vadd.f32 %v5643_v36, %v3054_v62 }
 0x351   : > { %3200 = vst [vmem:[%s5658_s14 + $0x18] sm:$0xff] %v3168_v26  ;;  %v3166_v46 = vmax.f32 %v3134_v18, 0.0  ;;  %v3057_v49 = vpop.f32.mrf.mxu1  ;;  %v3066_v26 = vadd.f32 %v3767_v0, %v5643_v36 }
 0x352   : > { %v3058_v58 = vadd.f32 %v5643_v36, %v3057_v49 }
 0x353   : > { %3198 = vst [vmem:[%s5658_s14 + $0x8] sm:$0xff] %v3166_v46 }
 0x35c   : > { %v3718_v47 = vpop.f32.mrf.mxu0 }
 0x35d   : > { %v2831_v42 = vadd.f32 %v3718_v47, %v5648_v60 }
 0x35e   : > { %v2822_v27 = vpop.f32.mrf.mxu0 }
 0x35f   : > { %v3139_v52 = vadd.f32 %v3031_v24, %v2831_v42  ;;  %v2823_v48 = vadd.f32 %v5648_v60, %v2822_v27 }
 0x360   : > { %v3719_v9 = vpop.f32.mrf.mxu0 }
 0x361   : > { %v3171_v53 = vmax.f32 %v3139_v52, 0.0  ;;  %v3137_v63 = vadd.f32 %v3023_v34, %v2823_v48  ;;  %v2834_v45 = vadd.f32 %v3719_v9, %v5648_v60  ;;  %v3770_v48 = vpop.f32.mrf.mxu1 }
 0x362   : > { %v2825_v35 = vpop.f32.mrf.mxu0 }
 0x363   : > { %3203 = vst [vmem:[%s5658_s14 + $0x30] sm:$0xff] %v3171_v53  ;;  %v3169_v15 = vmax.f32 %v3137_v63, 0.0  ;;  %v3140_v11 = vadd.f32 %v3034_v1, %v2834_v45  ;;  %v2826_v59 = vadd.f32 %v5648_v60, %v2825_v35  ;;  %v3070_v1 = vpop.f32.mrf.mxu1  ;;  %v3079_v53 = vadd.f32 %v3770_v48, %v5643_v36 }
 0x365   : > { %3201 = vst [vmem:[%s5658_s14 + $0x20] sm:$0xff] %v3169_v15  ;;  %v3172_v32 = vmax.f32 %v3140_v11, 0.0  ;;  %v3138_v20 = vadd.f32 %v3026_v25, %v2826_v59  ;;  %v3771_v9 = vpop.f32.mrf.mxu1  ;;  %v3071_v25 = vadd.f32 %v5643_v36, %v3070_v1 }
 0x367   : > { %3204 = vst [vmem:[%s5658_s14 + $0x38] sm:$0xff] %v3172_v32  ;;  %v3170_v16 = vmax.f32 %v3138_v20, 0.0  ;;  %v3073_v15 = vpop.f32.mrf.mxu1  ;;  %v3082_v32 = vadd.f32 %v3771_v9, %v5643_v36 }
 0x368   : > { %v3074_v2 = vadd.f32 %v5643_v36, %v3073_v15 }
 0x369   : > { %3202 = vst [vmem:[%s5658_s14 + $0x28] sm:$0xff] %v3170_v16 }
 0x374   : > { %v3722_v37 = vpop.f32.mrf.mxu0 }
 0x375   : > { %v2847_v43 = vadd.f32 %v3722_v37, %v5648_v60 }
 0x376   : > { %v2838_v54 = vpop.f32.mrf.mxu0 }
 0x377   : > { %v3143_v31 = vadd.f32 %v3047_v7, %v2847_v43  ;;  %v2839_v29 = vadd.f32 %v5648_v60, %v2838_v54 }
 0x378   : > { %v3723_v30 = vpop.f32.mrf.mxu0 }
 0x379   : > { %v3175_v33 = vmax.f32 %v3143_v31, 0.0  ;;  %v3141_v13 = vadd.f32 %v3039_v6, %v2839_v29  ;;  %v2850_v3 = vadd.f32 %v3723_v30, %v5648_v60  ;;  %v3774_v29 = vpop.f32.mrf.mxu1 }
 0x37a   : > { %v2841_v21 = vpop.f32.mrf.mxu0 }
 0x37b   : > { %3207 = vst [vmem:[%s5658_s14 + $0x50] sm:$0xff] %v3175_v33  ;;  %v3173_v44 = vmax.f32 %v3141_v13, 0.0  ;;  %v3144_v22 = vadd.f32 %v3050_v12, %v2850_v3  ;;  %v2842_v41 = vadd.f32 %v5648_v60, %v2841_v21  ;;  %v3086_v12 = vpop.f32.mrf.mxu1  ;;  %v3095_v33 = vadd.f32 %v3774_v29, %v5643_v36 }
 0x37d   : > { %3205 = vst [vmem:[%s5658_s14 + $0x40] sm:$0xff] %v3173_v44  ;;  %v3176_v57 = vmax.f32 %v3144_v22, 0.0  ;;  %v3142_v40 = vadd.f32 %v3042_v5, %v2842_v41  ;;  %v3775_v30 = vpop.f32.mrf.mxu1  ;;  %v3087_v5 = vadd.f32 %v5643_v36, %v3086_v12 }
 0x37f   : > { %3208 = vst [vmem:[%s5658_s14 + $0x58] sm:$0xff] %v3176_v57  ;;  %v3174_v56 = vmax.f32 %v3142_v40, 0.0  ;;  %v3089_v44 = vpop.f32.mrf.mxu1  ;;  %v3098_v57 = vadd.f32 %v3775_v30, %v5643_v36 }
 0x380   : > { %v3090_v0 = vadd.f32 %v5643_v36, %v3089_v44 }
 0x381   : > { %3206 = vst [vmem:[%s5658_s14 + $0x48] sm:$0xff] %v3174_v56 }
 0x38c   : > { %v3726_v17 = vpop.f32.mrf.mxu0 }
 0x38d   : > { %v2863_v55 = vadd.f32 %v3726_v17, %v5648_v60 }
 0x38e   : > { %v2854_v38 = vpop.f32.mrf.mxu0 }
 0x38f   : > { %v3147_v8 = vadd.f32 %v3063_v61, %v2863_v55  ;;  %v2855_v14 = vadd.f32 %v5648_v60, %v2854_v38 }
 0x390   : > { %v3727_v18 = vpop.f32.mrf.mxu0 }
 0x391   : > { %v3179_v46 = vmax.f32 %v3147_v8, 0.0  ;;  %v3145_v50 = vadd.f32 %v3055_v4, %v2855_v14  ;;  %v2866_v19 = vadd.f32 %v3727_v18, %v5648_v60  ;;  %v3778_v8 = vpop.f32.mrf.mxu1 }
 0x392   : > { %v2857_v24 = vpop.f32.mrf.mxu0 }
 0x393   : > { %3211 = vst [vmem:[%s5658_s14 + $0x70] sm:$0xff] %v3179_v46  ;;  %v3177_v47 = vmax.f32 %v3145_v50, 0.0  ;;  %v3148_v42 = vadd.f32 %v3066_v26, %v2866_v19  ;;  %v2858_v34 = vadd.f32 %v5648_v60, %v2857_v24  ;;  %v3102_v26 = vpop.f32.mrf.mxu1  ;;  %v3111_v46 = vadd.f32 %v3778_v8, %v5643_v36 }
 0x395   : > { %3209 = vst [vmem:[%s5658_s14 + $0x60] sm:$0xff] %v3177_v47  ;;  %v3180_v27 = vmax.f32 %v3148_v42, 0.0  ;;  %v3146_v10 = vadd.f32 %v3058_v58, %v2858_v34  ;;  %v3779_v18 = vpop.f32.mrf.mxu1  ;;  %v3103_v58 = vadd.f32 %v5643_v36, %v3102_v26 }
 0x397   : > { %3212 = vst [vmem:[%s5658_s14 + $0x78] sm:$0xff] %v3180_v27  ;;  %v3178_v52 = vmax.f32 %v3146_v10, 0.0  ;;  %v3105_v47 = vpop.f32.mrf.mxu1  ;;  %v3114_v27 = vadd.f32 %v3779_v18, %v5643_v36 }
 0x398   : > { %v3106_v9 = vadd.f32 %v5643_v36, %v3105_v47 }
 0x399   : > { %3210 = vst [vmem:[%s5658_s14 + $0x68] sm:$0xff] %v3178_v52 }
 0x3a4   : > { %v3730_v63 = vpop.f32.mrf.mxu0 }
 0x3a5   : > { %v2879_v45 = vadd.f32 %v3730_v63, %v5648_v60 }
 0x3a6   : > { %v2870_v35 = vpop.f32.mrf.mxu0 }
 0x3a7   : > { %v3151_v11 = vadd.f32 %v3079_v53, %v2879_v45  ;;  %v2871_v59 = vadd.f32 %v5648_v60, %v2870_v35  ;;  %v3782_v35 = vpop.f32.mrf.mxu1 }
 0x3a8   : > { %v3731_v20 = vpop.f32.mrf.mxu0 }
 0x3a9   : > { %v3183_v16 = vmax.f32 %v3151_v11, 0.0  ;;  %v3149_v51 = vadd.f32 %v3071_v25, %v2871_v59  ;;  %v2882_v39 = vadd.f32 %v3731_v20, %v5648_v60  ;;  %v3127_v20 = vadd.f32 %v3782_v35, %v5643_v36 }
 0x3aa   : > { %v2873_v7 = vpop.f32.mrf.mxu0 }
 0x3ab   : > { %3215 = vst [vmem:[%s5658_s14 + $0x90] sm:$0xff] %v3183_v16  ;;  %v3181_v37 = vmax.f32 %v3149_v51, 0.0  ;;  %v3152_v43 = vadd.f32 %v3082_v32, %v2882_v39  ;;  %v2874_v6 = vadd.f32 %v5648_v60, %v2873_v7  ;;  %v3118_v32 = vpop.f32.mrf.mxu1 }
 0x3ac   : > { %v3119_v7 = vadd.f32 %v5643_v36, %v3118_v32 }
 0x3ad   : > { %3213 = vst [vmem:[%s5658_s14 + $0x80] sm:$0xff] %v3181_v37  ;;  %v3184_v54 = vmax.f32 %v3152_v43, 0.0  ;;  %v3150_v28 = vadd.f32 %v3074_v2, %v2874_v6  ;;  %v3783_v16 = vpop.f32.mrf.mxu1 }
 0x3af   : > { %3216 = vst [vmem:[%s5658_s14 + $0x98] sm:$0xff] %v3184_v54  ;;  %v3182_v31 = vmax.f32 %v3150_v28, 0.0  ;;  %v3121_v6 = vpop.f32.mrf.mxu1  ;;  %v3130_v28 = vadd.f32 %v3783_v16, %v5643_v36 }
 0x3b1   : > { %3214 = vst [vmem:[%s5658_s14 + $0x88] sm:$0xff] %v3182_v31 }
 0x3bc   : > { %v3734_v13 = vpop.f32.mrf.mxu0 }
 0x3bd   : > { %v2895_v3 = vadd.f32 %v3734_v13, %v5648_v60 }
 0x3be   : > { %v2886_v21 = vpop.f32.mrf.mxu0 }
 0x3bf   : > { %v3155_v22 = vadd.f32 %v3095_v33, %v2895_v3  ;;  %v2887_v41 = vadd.f32 %v5648_v60, %v2886_v21  ;;  %v3122_v33 = vadd.f32 %v5643_v36, %v3121_v6 }
 0x3c0   : > { %v3735_v40 = vpop.f32.mrf.mxu0 }
 0x3c1   : > { %v3187_v56 = vmax.f32 %v3155_v22, 0.0  ;;  %v3153_v23 = vadd.f32 %v3087_v5, %v2887_v41  ;;  %v2898_v62 = vadd.f32 %v3735_v40, %v5648_v60 }
 0x3c2   : > { %v2889_v61 = vpop.f32.mrf.mxu0 }
 0x3c3   : > { %3219 = vst [vmem:[%s5658_s14 + $0xb0] sm:$0xff] %v3187_v56  ;;  %v3185_v17 = vmax.f32 %v3153_v23, 0.0  ;;  %v3156_v55 = vadd.f32 %v3098_v57, %v2898_v62  ;;  %v2890_v4 = vadd.f32 %v5648_v60, %v2889_v61 }
 0x3c5   : > { %3217 = vst [vmem:[%s5658_s14 + $0xa0] sm:$0xff] %v3185_v17  ;;  %v3188_v38 = vmax.f32 %v3156_v55, 0.0  ;;  %v3154_v49 = vadd.f32 %v3090_v0, %v2890_v4 }
 0x3c7   : > { %3220 = vst [vmem:[%s5658_s14 + $0xb8] sm:$0xff] %v3188_v38  ;;  %v3186_v14 = vmax.f32 %v3154_v49, 0.0 }
 0x3c9   : > { %3218 = vst [vmem:[%s5658_s14 + $0xa8] sm:$0xff] %v3186_v14 }
 0x3d0   : > { %v3738_v50 = vpop.f32.mrf.mxu0 }
 0x3d1   : > { %v2911_v19 = vadd.f32 %v3738_v50, %v5648_v60 }
 0x3d2   : > { %v2902_v24 = vpop.f32.mrf.mxu0 }
 0x3d3   : > { %v3159_v42 = vadd.f32 %v3111_v46, %v2911_v19  ;;  %v2903_v34 = vadd.f32 %v5648_v60, %v2902_v24 }
 0x3d4   : > { %v3739_v10 = vpop.f32.mrf.mxu0 }
 0x3d5   : > { %v3191_v52 = vmax.f32 %v3159_v42, 0.0  ;;  %v3157_v48 = vadd.f32 %v3103_v58, %v2903_v34  ;;  %v2914_v1 = vadd.f32 %v3739_v10, %v5648_v60 }
 0x3d6   : > { %v2905_v53 = vpop.f32.mrf.mxu0 }
 0x3d7   : > { %3223 = vst [vmem:[%s5658_s14 + $0xd0] sm:$0xff] %v3191_v52  ;;  %v3189_v63 = vmax.f32 %v3157_v48, 0.0  ;;  %v3160_v45 = vadd.f32 %v3114_v27, %v2914_v1  ;;  %v2906_v25 = vadd.f32 %v5648_v60, %v2905_v53 }
 0x3d9   : > { %3221 = vst [vmem:[%s5658_s14 + $0xc0] sm:$0xff] %v3189_v63  ;;  %v3192_v15 = vmax.f32 %v3160_v45, 0.0  ;;  %v3158_v11 = vadd.f32 %v3106_v9, %v2906_v25 }
 0x3db   : > { %3224 = vst [vmem:[%s5658_s14 + $0xd8] sm:$0xff] %v3192_v15  ;;  %v3190_v59 = vmax.f32 %v3158_v11, 0.0 }
 0x3dd   : > { %3222 = vst [vmem:[%s5658_s14 + $0xc8] sm:$0xff] %v3190_v59 }
 0x3e0   : > { %v3742_v51 = vpop.f32.mrf.mxu0 }
 0x3e1   : > { %v2927_v39 = vadd.f32 %v3742_v51, %v5648_v60 }
 0x3e2   : > { %v2918_v2 = vpop.f32.mrf.mxu0 }
 0x3e3   : > { %v3163_v37 = vadd.f32 %v3127_v20, %v2927_v39  ;;  %v2919_v43 = vadd.f32 %v5648_v60, %v2918_v2 }
 0x3e4   : > { %v3743_v54 = vpop.f32.mrf.mxu0 }
 0x3e5   : > { %v3195_v31 = vmax.f32 %v3163_v37, 0.0  ;;  %v3161_v29 = vadd.f32 %v3119_v7, %v2919_v43  ;;  %v2930_v12 = vadd.f32 %v3743_v54, %v5648_v60 }
 0x3e6   : > { %v2921_v30 = vpop.f32.mrf.mxu0 }
 0x3e7   : > { %3227 = vst [vmem:[%s5658_s14 + $0xf0] sm:$0xff] %v3195_v31  ;;  %v3193_v13 = vmax.f32 %v3161_v29, 0.0  ;;  %v3164_v3 = vadd.f32 %v3130_v28, %v2930_v12  ;;  %v2922_v5 = vadd.f32 %v5648_v60, %v2921_v30 }
 0x3e9   : > { %3225 = vst [vmem:[%s5658_s14 + $0xe0] sm:$0xff] %v3193_v13  ;;  %v3196_v21 = vmax.f32 %v3164_v3, 0.0  ;;  %v3162_v44 = vadd.f32 %v3122_v33, %v2922_v5 }
 0x3eb   : > { %3228 = vst [vmem:[%s5658_s14 + $0xf8] sm:$0xff] %v3196_v21  ;;  %v3194_v36 = vmax.f32 %v3162_v44, 0.0 }
 0x3ed   : > { %3226 = vst [vmem:[%s5658_s14 + $0xe8] sm:$0xff] %v3194_v36 }
 0x3ee   : > { %4441 = shalt.err (!%p4438_p10)
}
 0x3ef   : > { %s4442_s25 = scalar_lea.hbm %s5752_s24, 4096  ;;  %s4446_s14 = scalar_lea.hbm %s5808_s9, 8192 }
 0x3f0   : > { %p4443_p0 = scmp.ne.s32.totalorder %s5752_s24, %s4442_s25  ;;  %p4447_p1 = scmp.lt.s32.totalorder %s5752_s24, %s5808_s9 }
 0x3f1   : > { %p4448_p3 = scmp.lt.s32.totalorder %s4446_s14, %s4442_s25 }
 0x3f2   : > { %p4444_p2 = pnand %p4443_p0, %p5820_p12 }
 0x3f3   : > { %p4449_p6 = por %p4448_p3, %p4447_p1 }
 0x3f4   : > { %p4445_p9 = pneg %p4444_p2 }
 0x3f6   : > { %p4450_p11 = pnand %p4449_p6, %p4445_p9 }
 0x3f8   : > { %4453 = shalt.err (!%p4450_p11)
}
 0x3f9   : > { %s4502_s20 = smov 128   ;;  %s4503_s26 = smov 8  }
 0x3fa   : > { %3802 = dma.vmem_to_hbm [thread:$0]  (%p5820_p12), %s5754_s23, 4096, %s5752_s24, %s3230_s18, %s4502_s20, %s4502_s20, %s4503_s26  }
 0x3fb PF: > { %s3258_s13 = sand.u32 1, %s4480_s30   ;;  %p5821_p13 = scmp.ne.s32.totalorder %s5817_s22, 0 }
 0x3fc   : > { %p5822_p4 = scmp.ge.s32.totalorder %s4492_s12, 2  ;;  %s3259_s27 = scalar_lea.sflag [#allocation5], %s3258_s13 }
 0x3fe   : > { %p3809_p5 = pnand %p5822_p4, %p5821_p13 }
 0x400   : > { %p3810_p7 = pneg %p3809_p5 }
 0x402   : > { %4475 = dma.done.wait (%p3810_p7), %s3259_s27, 4096  }
 0x403   : > { %4477 = vsyncadd (%p3810_p7), %s3259_s27, 4294963200  ;;  %s5823_s16 = sld [smem:[#allocation9_spill]]  ;;  %p22_p8 = scmp.ge.s32.totalorder %s4579_s15, 4  }
 0x404   : > { %s5824_s11 = sld [smem:[#allocation10_spill]]  ;;  %s5825_s30 = smov %s4484_s10 }
 0x405   : > { %s5827_s12 = smov %s4579_s15  ;;  %24 = sbr.rel (!%p22_p8) target bundleno = 5 (0x5), region = 103 }
 0x409   : > { %s5826_s10 = smov %s5823_s16 }
 0x40a   :  { %3264 = vsyncpa [#allocation4], 1 }
 0x40b   :  { %3266 = vsyncpa [#allocation4 + $0x1], 1 }
 0x40c   :  { %3267 = vsyncpa [#allocation5], 1 }
 0x40d   :  { %3269 = vsyncpa [#allocation5 + $0x1], 1 }

</bundles_post_ra>
